<compile_context>
chip_gen: v6e
topology: v6e:2x2x1
jax: 0.10.0
libtpu: 0.0.40
codegen_flags: <defaults>
</compile_context>

<pallas_src>
import functools

import jax
import jax.numpy as jnp
from jax import lax
from jax.experimental import pallas as pl
from jax.experimental.pallas import tpu as pltpu


def _round_up(x, m):
    return (x + m - 1) // m * m


def _make_lstm_kernel(tt, hp):
    """Recurrent LSTM kernel over one time tile of TT steps.

    xw_ref  : (Bp, TT, 4*Hp)  precomputed x@W_ih^T + bias for this time tile
    whh_ref : (Hp, 4*Hp)      hidden->gates weights (pre-transposed, gate-padded)
    out_ref : (Bp, TT, Hp)    per-timestep hidden states (batch-first block)
    cn_ref  : (Bp, Hp)        running cell state (written every grid step)
    h_scr   : (Bp, Hp) VMEM scratch, hidden state carried across grid steps
    c_scr   : (Bp, Hp) VMEM scratch, cell state carried across grid steps
    """

    def kernel(xw_ref, whh_ref, out_ref, cn_ref, h_scr, c_scr):
        @pl.when(pl.program_id(0) == 0)
        def _():
            h_scr[...] = jnp.zeros_like(h_scr)
            c_scr[...] = jnp.zeros_like(c_scr)

        whh = whh_ref[...]          # hoisted: stays in vregs/VMEM for the whole tile
        h = h_scr[...]
        c = c_scr[...]

        # Fully unrolled inner time loop (tt is a small static constant), so every
        # load/store uses static, lane/sublane-aligned indices.
        for j in range(tt):
            # gates = xW_t + h_{t-1} @ W_hh^T   -> (Bp, 4*Hp), each gate = 128*k lanes
            gates = xw_ref[:, j, :] + jnp.dot(
                h, whh, preferred_element_type=jnp.float32)

            # PyTorch gate order i, f, g, o; sigmoid via tanh (single EUP op each).
            i_g = 0.5 * (jnp.tanh(0.5 * gates[:, 0 * hp:1 * hp]) + 1.0)
            f_g = 0.5 * (jnp.tanh(0.5 * gates[:, 1 * hp:2 * hp]) + 1.0)
            g_g = jnp.tanh(gates[:, 2 * hp:3 * hp])
            o_g = 0.5 * (jnp.tanh(0.5 * gates[:, 3 * hp:4 * hp]) + 1.0)

            c = f_g * c + i_g * g_g
            h = o_g * jnp.tanh(c)
            out_ref[:, j, :] = h.astype(out_ref.dtype)   # lane-dense (Hp=128*k) store

        h_scr[...] = h
        c_scr[...] = c
        cn_ref[...] = c.astype(cn_ref.dtype)   # written every grid step (never stale)

    return kernel


@functools.partial(jax.jit, static_argnames=("time_tile",))
def lstm_encoder_forward(x, w_ih, w_hh, b_ih, b_hh, time_tile=8):
    """x: (B, T, I) batch-first.  Weights follow PyTorch nn.LSTM layout:
       w_ih: (4H, I), w_hh: (4H, H), b_ih/b_hh: (4H,)."""
    B, T, I = x.shape
    H = w_hh.shape[1]

    Hp = _round_up(max(H, 128), 128)   # lane-dense gates / hidden state
    Bp = _round_up(max(B, 8), 8)       # full f32 sublanes for the recurrent matmul

    # Time tile: largest value <= time_tile that divides T (keeps blocks exact).
    tt = min(T, time_tile)
    while T % tt:
        tt -= 1

    x = x.astype(jnp.float32)
    w_ih = w_ih.astype(jnp.float32)
    w_hh = w_hh.astype(jnp.float32)
    bias = (b_ih + b_hh).astype(jnp.float32)            # (4H,)

    # ---- hoisted input projection: one big MXU-friendly matmul, no recurrence ----
    xw = jnp.einsum("bti,gi->btg", x, w_ih) + bias      # (B, T, 4H)

    # ---- pad each gate block H -> Hp so every gate occupies whole 128-lane vregs ----
    def pad_gates_last(a):                               # (..., 4H) -> (..., 4Hp)
        a4 = a.reshape(a.shape[:-1] + (4, H))
        a4 = jnp.pad(a4, [(0, 0)] * (a4.ndim - 1) + [(0, Hp - H)])
        return a4.reshape(a.shape[:-1] + (4 * Hp,))

    xw = pad_gates_last(xw)                              # (B, T, 4Hp)
    xw = jnp.pad(xw, ((0, Bp - B), (0, 0), (0, 0)))      # (Bp, T, 4Hp)

    whh = pad_gates_last(w_hh.T)                         # (H, 4Hp)
    whh = jnp.pad(whh, ((0, Hp - H), (0, 0)))            # (Hp, 4Hp)

    out_p, cn_p = pl.pallas_call(
        _make_lstm_kernel(tt, Hp),
        out_shape=(
            jax.ShapeDtypeStruct((Bp, T, Hp), jnp.float32),
            jax.ShapeDtypeStruct((Bp, Hp), jnp.float32),
        ),
        grid_spec=pltpu.PrefetchScalarGridSpec(
            num_scalar_prefetch=0,
            grid=(T // tt,),
            in_specs=[
                pl.BlockSpec((Bp, tt, 4 * Hp), lambda i: (0, i, 0)),  # xW time tile
                pl.BlockSpec((Hp, 4 * Hp), lambda i: (0, 0)),         # W_hh resident
            ],
            out_specs=[
                pl.BlockSpec((Bp, tt, Hp), lambda i: (0, i, 0)),      # batch-first out
                pl.BlockSpec((Bp, Hp), lambda i: (0, 0)),             # cell state
            ],
            scratch_shapes=[
                pltpu.VMEM((Bp, Hp), jnp.float32),   # h carried across grid steps
                pltpu.VMEM((Bp, Hp), jnp.float32),   # c carried across grid steps
            ],
        ),
        compiler_params=pltpu.CompilerParams(
            dimension_semantics=("arbitrary",)),     # time-tile axis is sequential
    )(xw, whh)

    lstm_out = out_p[:B, :, :H]                      # (B, T, H) batch-first, no transpose
    c_n = cn_p[:B, :H][None]                         # (1, B, H)
    h_n = lstm_out[:, -1, :][None]                   # (1, B, H) == final hidden state
    return lstm_out, (h_n, c_n)


def _reference_lstm(x, w_ih, w_hh, b_ih, b_hh):
    """Pure-JAX reference matching PyTorch nn.LSTM semantics (num_layers=1, zero init)."""
    B, T, I = x.shape
    H = w_hh.shape[1]
    h0 = jnp.zeros((B, H), jnp.float32)
    c0 = jnp.zeros((B, H), jnp.float32)

    def step(carry, x_t):
        h, c = carry
        g = x_t @ w_ih.T + b_ih + h @ w_hh.T + b_hh
        i = jax.nn.sigmoid(g[:, 0 * H:1 * H])
        f = jax.nn.sigmoid(g[:, 1 * H:2 * H])
        gg = jnp.tanh(g[:, 2 * H:3 * H])
        o = jax.nn.sigmoid(g[:, 3 * H:4 * H])
        c_new = f * c + i * gg
        h_new = o * jnp.tanh(c_new)
        return (h_new, c_new), h_new

    (h_n, c_n), outs = lax.scan(step, (h0, c0), jnp.transpose(x, (1, 0, 2)))
    return jnp.transpose(outs, (1, 0, 2)), (h_n[None], c_n[None])


if __name__ == "__main__":
    # Small shapes consistent with the module: batch=2, seq=8, input_size=16, hidden=32.
    B, T, input_size, hidden_size = 2, 8, 16, 32
    num_layers = 1  # module default; kernel implements a single layer

    key = jax.random.PRNGKey(0)
    kx, k1, k2, k3, k4 = jax.random.split(key, 5)

    # Deterministic "PyTorch-style" init: U(-1/sqrt(H), 1/sqrt(H)).
    bound = 1.0 / (hidden_size ** 0.5)
    w_ih = jax.random.uniform(k1, (4 * hidden_size, input_size),
                              minval=-bound, maxval=bound, dtype=jnp.float32)
    w_hh = jax.random.uniform(k2, (4 * hidden_size, hidden_size),
                              minval=-bound, maxval=bound, dtype=jnp.float32)
    b_ih = jax.random.uniform(k3, (4 * hidden_size,),
                              minval=-bound, maxval=bound, dtype=jnp.float32)
    b_hh = jax.random.uniform(k4, (4 * hidden_size,),
                              minval=-bound, maxval=bound, dtype=jnp.float32)

    x = jax.random.normal(kx, (B, T, input_size), dtype=jnp.float32)

    lstm_out, (h_n, c_n) = lstm_encoder_forward(x, w_ih, w_hh, b_ih, b_hh)
    jax.block_until_ready((lstm_out, h_n, c_n))

    # Correctness check against pure-JAX reference (same math as torch nn.LSTM).
    ref_out, (ref_h, ref_c) = _reference_lstm(x, w_ih, w_hh, b_ih, b_hh)
    assert lstm_out.shape == (B, T, hidden_size)
    assert h_n.shape == (num_layers, B, hidden_size)
    assert c_n.shape == (num_layers, B, hidden_size)
    assert jnp.allclose(lstm_out, ref_out, atol=1e-4, rtol=1e-4)
    assert jnp.allclose(h_n, ref_h, atol=1e-4, rtol=1e-4)
    assert jnp.allclose(c_n, ref_c, atol=1e-4, rtol=1e-4)

    print("KERNEL_OK")
</pallas_src>

<mosaic_0001>
module attributes {stable_mosaic.version = 11 : i64} {
  func.func @kernel(%arg0: i32, %arg1: memref<8x8x512xf32, #tpu.memory_space<vmem>>, %arg2: memref<128x512xf32, #tpu.memory_space<vmem>>, %arg3: memref<8x8x128xf32, #tpu.memory_space<vmem>>, %arg4: memref<8x128xf32, #tpu.memory_space<vmem>>, %arg5: memref<8x128xf32, #tpu.memory_space<vmem>>, %arg6: memref<8x128xf32, #tpu.memory_space<vmem>>) attributes {dimension_semantics = [#tpu.dimension_semantics<arbitrary>], iteration_bounds = array<i64: 1>, scalar_prefetch = 0 : i64, scratch_operands = 2 : i64, tpu.core_type = #tpu.core_type<tc>, window_params = [{transform_indices = @transform_0, window_bounds = array<i64: 8, 8, 512>}, {pipeline_mode = #tpu.pipeline_mode<synchronous>, transform_indices = @transform_1, window_bounds = array<i64: 128, 512>}, {transform_indices = @transform_2, window_bounds = array<i64: 8, 8, 128>}, {pipeline_mode = #tpu.pipeline_mode<synchronous>, transform_indices = @transform_3, window_bounds = array<i64: 8, 128>}]} {
    %c0_i32 = arith.constant 0 : i32
    %0 = arith.cmpi eq, %arg0, %c0_i32 : i32
    %1 = arith.extui %0 : i1 to i32
    %c0_i32_0 = arith.constant 0 : i32
    %2 = arith.cmpi ne, %1, %c0_i32_0 : i32
    scf.if %2 {
      %cst_132 = arith.constant 0.000000e+00 : f32
      %313 = vector.broadcast %cst_132 : f32 to vector<8x128xf32>
      %c0_133 = arith.constant 0 : index
      %c0_134 = arith.constant 0 : index
      %314 = vector.load %arg5[%c0_133, %c0_134] : memref<8x128xf32, #tpu.memory_space<vmem>>, vector<8x128xf32>
      tpu.vector_store %arg5[%c0_133, %c0_134], %313 {strides = array<i32>} : memref<8x128xf32, #tpu.memory_space<vmem>>, vector<8x128xf32>,
      %cst_135 = arith.constant 0.000000e+00 : f32
      %315 = vector.broadcast %cst_135 : f32 to vector<8x128xf32>
      %c0_136 = arith.constant 0 : index
      %c0_137 = arith.constant 0 : index
      %316 = vector.load %arg6[%c0_136, %c0_137] : memref<8x128xf32, #tpu.memory_space<vmem>>, vector<8x128xf32>
      tpu.vector_store %arg6[%c0_136, %c0_137], %315 {strides = array<i32>} : memref<8x128xf32, #tpu.memory_space<vmem>>, vector<8x128xf32>,
    } else {
    }
    %c0 = arith.constant 0 : index
    %c0_1 = arith.constant 0 : index
    %3 = vector.load %arg2[%c0, %c0_1] : memref<128x512xf32, #tpu.memory_space<vmem>>, vector<128x512xf32>
    %c0_2 = arith.constant 0 : index
    %c0_3 = arith.constant 0 : index
    %4 = vector.load %arg5[%c0_2, %c0_3] : memref<8x128xf32, #tpu.memory_space<vmem>>, vector<8x128xf32>
    %c0_4 = arith.constant 0 : index
    %c0_5 = arith.constant 0 : index
    %5 = vector.load %arg6[%c0_4, %c0_5] : memref<8x128xf32, #tpu.memory_space<vmem>>, vector<8x128xf32>
    %c0_6 = arith.constant 0 : index
    %c0_7 = arith.constant 0 : index
    %c0_8 = arith.constant 0 : index
    %6 = vector.load %arg1[%c0_6, %c0_7, %c0_8] : memref<8x8x512xf32, #tpu.memory_space<vmem>>, vector<8x1x512xf32>
    %7 = vector.shape_cast %6 : vector<8x1x512xf32> to vector<8x512xf32>
    %cst = arith.constant dense<0.000000e+00> : vector<8x512xf32>
    %8 = tpu.matmul %4, %3, %cst {dimension_numbers = #tpu.dot_dimension_numbers<[1], [0], [0], [1], [0, 0, 1, 1], [], []>} : vector<8x128xf32>, vector<128x512xf32>, vector<8x512xf32> -> vector<8x512xf32>
    %9 = arith.addf %7, %8 : vector<8x512xf32>
    %10 = vector.extract_strided_slice %9 {offsets = [0, 0], sizes = [8, 128], strides = [1, 1]} : vector<8x512xf32> to vector<8x128xf32>
    %cst_9 = arith.constant 5.000000e-01 : f32
    %11 = vector.broadcast %cst_9 : f32 to vector<8x128xf32>
    %12 = arith.mulf %11, %10 : vector<8x128xf32>
    %13 = math.tanh %12 : vector<8x128xf32>
    %cst_10 = arith.constant 1.000000e+00 : f32
    %14 = vector.broadcast %cst_10 : f32 to vector<8x128xf32>
    %15 = arith.addf %13, %14 : vector<8x128xf32>
    %cst_11 = arith.constant 5.000000e-01 : f32
    %16 = vector.broadcast %cst_11 : f32 to vector<8x128xf32>
    %17 = arith.mulf %16, %15 : vector<8x128xf32>
    %18 = vector.extract_strided_slice %9 {offsets = [0, 128], sizes = [8, 128], strides = [1, 1]} : vector<8x512xf32> to vector<8x128xf32>
    %cst_12 = arith.constant 5.000000e-01 : f32
    %19 = vector.broadcast %cst_12 : f32 to vector<8x128xf32>
    %20 = arith.mulf %19, %18 : vector<8x128xf32>
    %21 = math.tanh %20 : vector<8x128xf32>
    %cst_13 = arith.constant 1.000000e+00 : f32
    %22 = vector.broadcast %cst_13 : f32 to vector<8x128xf32>
    %23 = arith.addf %21, %22 : vector<8x128xf32>
    %cst_14 = arith.constant 5.000000e-01 : f32
    %24 = vector.broadcast %cst_14 : f32 to vector<8x128xf32>
    %25 = arith.mulf %24, %23 : vector<8x128xf32>
    %26 = vector.extract_strided_slice %9 {offsets = [0, 256], sizes = [8, 128], strides = [1, 1]} : vector<8x512xf32> to vector<8x128xf32>
    %27 = math.tanh %26 : vector<8x128xf32>
    %28 = vector.extract_strided_slice %9 {offsets = [0, 384], sizes = [8, 128], strides = [1, 1]} : vector<8x512xf32> to vector<8x128xf32>
    %cst_15 = arith.constant 5.000000e-01 : f32
    %29 = vector.broadcast %cst_15 : f32 to vector<8x128xf32>
    %30 = arith.mulf %29, %28 : vector<8x128xf32>
    %31 = math.tanh %30 : vector<8x128xf32>
    %cst_16 = arith.constant 1.000000e+00 : f32
    %32 = vector.broadcast %cst_16 : f32 to vector<8x128xf32>
    %33 = arith.addf %31, %32 : vector<8x128xf32>
    %cst_17 = arith.constant 5.000000e-01 : f32
    %34 = vector.broadcast %cst_17 : f32 to vector<8x128xf32>
    %35 = arith.mulf %34, %33 : vector<8x128xf32>
    %36 = arith.mulf %25, %5 : vector<8x128xf32>
    %37 = arith.mulf %17, %27 : vector<8x128xf32>
    %38 = arith.addf %36, %37 : vector<8x128xf32>
    %39 = math.tanh %38 : vector<8x128xf32>
    %40 = arith.mulf %35, %39 : vector<8x128xf32>
    %c0_18 = arith.constant 0 : index
    %c0_19 = arith.constant 0 : index
    %c0_20 = arith.constant 0 : index
    %41 = vector.load %arg3[%c0_18, %c0_19, %c0_20] : memref<8x8x128xf32, #tpu.memory_space<vmem>>, vector<8x1x128xf32>
    %42 = vector.shape_cast %41 : vector<8x1x128xf32> to vector<8x128xf32>
    %43 = vector.shape_cast %40 : vector<8x128xf32> to vector<8x1x128xf32>
    tpu.vector_store %arg3[%c0_18, %c0_19, %c0_20], %43 {strides = array<i32>} : memref<8x8x128xf32, #tpu.memory_space<vmem>>, vector<8x1x128xf32>,
    %c0_21 = arith.constant 0 : index
    %c1 = arith.constant 1 : index
    %c0_22 = arith.constant 0 : index
    %44 = vector.load %arg1[%c0_21, %c1, %c0_22] : memref<8x8x512xf32, #tpu.memory_space<vmem>>, vector<8x1x512xf32>
    %45 = vector.shape_cast %44 : vector<8x1x512xf32> to vector<8x512xf32>
    %cst_23 = arith.constant dense<0.000000e+00> : vector<8x512xf32>
    %46 = tpu.matmul %40, %3, %cst_23 {dimension_numbers = #tpu.dot_dimension_numbers<[1], [0], [0], [1], [0, 0, 1, 1], [], []>} : vector<8x128xf32>, vector<128x512xf32>, vector<8x512xf32> -> vector<8x512xf32>
    %47 = arith.addf %45, %46 : vector<8x512xf32>
    %48 = vector.extract_strided_slice %47 {offsets = [0, 0], sizes = [8, 128], strides = [1, 1]} : vector<8x512xf32> to vector<8x128xf32>
    %cst_24 = arith.constant 5.000000e-01 : f32
    %49 = vector.broadcast %cst_24 : f32 to vector<8x128xf32>
    %50 = arith.mulf %49, %48 : vector<8x128xf32>
    %51 = math.tanh %50 : vector<8x128xf32>
    %cst_25 = arith.constant 1.000000e+00 : f32
    %52 = vector.broadcast %cst_25 : f32 to vector<8x128xf32>
    %53 = arith.addf %51, %52 : vector<8x128xf32>
    %cst_26 = arith.constant 5.000000e-01 : f32
    %54 = vector.broadcast %cst_26 : f32 to vector<8x128xf32>
    %55 = arith.mulf %54, %53 : vector<8x128xf32>
    %56 = vector.extract_strided_slice %47 {offsets = [0, 128], sizes = [8, 128], strides = [1, 1]} : vector<8x512xf32> to vector<8x128xf32>
    %cst_27 = arith.constant 5.000000e-01 : f32
    %57 = vector.broadcast %cst_27 : f32 to vector<8x128xf32>
    %58 = arith.mulf %57, %56 : vector<8x128xf32>
    %59 = math.tanh %58 : vector<8x128xf32>
    %cst_28 = arith.constant 1.000000e+00 : f32
    %60 = vector.broadcast %cst_28 : f32 to vector<8x128xf32>
    %61 = arith.addf %59, %60 : vector<8x128xf32>
    %cst_29 = arith.constant 5.000000e-01 : f32
    %62 = vector.broadcast %cst_29 : f32 to vector<8x128xf32>
    %63 = arith.mulf %62, %61 : vector<8x128xf32>
    %64 = vector.extract_strided_slice %47 {offsets = [0, 256], sizes = [8, 128], strides = [1, 1]} : vector<8x512xf32> to vector<8x128xf32>
    %65 = math.tanh %64 : vector<8x128xf32>
    %66 = vector.extract_strided_slice %47 {offsets = [0, 384], sizes = [8, 128], strides = [1, 1]} : vector<8x512xf32> to vector<8x128xf32>
    %cst_30 = arith.constant 5.000000e-01 : f32
    %67 = vector.broadcast %cst_30 : f32 to vector<8x128xf32>
    %68 = arith.mulf %67, %66 : vector<8x128xf32>
    %69 = math.tanh %68 : vector<8x128xf32>
    %cst_31 = arith.constant 1.000000e+00 : f32
    %70 = vector.broadcast %cst_31 : f32 to vector<8x128xf32>
    %71 = arith.addf %69, %70 : vector<8x128xf32>
    %cst_32 = arith.constant 5.000000e-01 : f32
    %72 = vector.broadcast %cst_32 : f32 to vector<8x128xf32>
    %73 = arith.mulf %72, %71 : vector<8x128xf32>
    %74 = arith.mulf %63, %38 : vector<8x128xf32>
    %75 = arith.mulf %55, %65 : vector<8x128xf32>
    %76 = arith.addf %74, %75 : vector<8x128xf32>
    %77 = math.tanh %76 : vector<8x128xf32>
    %78 = arith.mulf %73, %77 : vector<8x128xf32>
    %c0_33 = arith.constant 0 : index
    %c1_34 = arith.constant 1 : index
    %c0_35 = arith.constant 0 : index
    %79 = vector.load %arg3[%c0_33, %c1_34, %c0_35] : memref<8x8x128xf32, #tpu.memory_space<vmem>>, vector<8x1x128xf32>
    %80 = vector.shape_cast %79 : vector<8x1x128xf32> to vector<8x128xf32>
    %81 = vector.shape_cast %78 : vector<8x128xf32> to vector<8x1x128xf32>
    tpu.vector_store %arg3[%c0_33, %c1_34, %c0_35], %81 {strides = array<i32>} : memref<8x8x128xf32, #tpu.memory_space<vmem>>, vector<8x1x128xf32>,
    %c0_36 = arith.constant 0 : index
    %c2 = arith.constant 2 : index
    %c0_37 = arith.constant 0 : index
    %82 = vector.load %arg1[%c0_36, %c2, %c0_37] : memref<8x8x512xf32, #tpu.memory_space<vmem>>, vector<8x1x512xf32>
    %83 = vector.shape_cast %82 : vector<8x1x512xf32> to vector<8x512xf32>
    %cst_38 = arith.constant dense<0.000000e+00> : vector<8x512xf32>
    %84 = tpu.matmul %78, %3, %cst_38 {dimension_numbers = #tpu.dot_dimension_numbers<[1], [0], [0], [1], [0, 0, 1, 1], [], []>} : vector<8x128xf32>, vector<128x512xf32>, vector<8x512xf32> -> vector<8x512xf32>
    %85 = arith.addf %83, %84 : vector<8x512xf32>
    %86 = vector.extract_strided_slice %85 {offsets = [0, 0], sizes = [8, 128], strides = [1, 1]} : vector<8x512xf32> to vector<8x128xf32>
    %cst_39 = arith.constant 5.000000e-01 : f32
    %87 = vector.broadcast %cst_39 : f32 to vector<8x128xf32>
    %88 = arith.mulf %87, %86 : vector<8x128xf32>
    %89 = math.tanh %88 : vector<8x128xf32>
    %cst_40 = arith.constant 1.000000e+00 : f32
    %90 = vector.broadcast %cst_40 : f32 to vector<8x128xf32>
    %91 = arith.addf %89, %90 : vector<8x128xf32>
    %cst_41 = arith.constant 5.000000e-01 : f32
    %92 = vector.broadcast %cst_41 : f32 to vector<8x128xf32>
    %93 = arith.mulf %92, %91 : vector<8x128xf32>
    %94 = vector.extract_strided_slice %85 {offsets = [0, 128], sizes = [8, 128], strides = [1, 1]} : vector<8x512xf32> to vector<8x128xf32>
    %cst_42 = arith.constant 5.000000e-01 : f32
    %95 = vector.broadcast %cst_42 : f32 to vector<8x128xf32>
    %96 = arith.mulf %95, %94 : vector<8x128xf32>
    %97 = math.tanh %96 : vector<8x128xf32>
    %cst_43 = arith.constant 1.000000e+00 : f32
    %98 = vector.broadcast %cst_43 : f32 to vector<8x128xf32>
    %99 = arith.addf %97, %98 : vector<8x128xf32>
    %cst_44 = arith.constant 5.000000e-01 : f32
    %100 = vector.broadcast %cst_44 : f32 to vector<8x128xf32>
    %101 = arith.mulf %100, %99 : vector<8x128xf32>
    %102 = vector.extract_strided_slice %85 {offsets = [0, 256], sizes = [8, 128], strides = [1, 1]} : vector<8x512xf32> to vector<8x128xf32>
    %103 = math.tanh %102 : vector<8x128xf32>
    %104 = vector.extract_strided_slice %85 {offsets = [0, 384], sizes = [8, 128], strides = [1, 1]} : vector<8x512xf32> to vector<8x128xf32>
    %cst_45 = arith.constant 5.000000e-01 : f32
    %105 = vector.broadcast %cst_45 : f32 to vector<8x128xf32>
    %106 = arith.mulf %105, %104 : vector<8x128xf32>
    %107 = math.tanh %106 : vector<8x128xf32>
    %cst_46 = arith.constant 1.000000e+00 : f32
    %108 = vector.broadcast %cst_46 : f32 to vector<8x128xf32>
    %109 = arith.addf %107, %108 : vector<8x128xf32>
    %cst_47 = arith.constant 5.000000e-01 : f32
    %110 = vector.broadcast %cst_47 : f32 to vector<8x128xf32>
    %111 = arith.mulf %110, %109 : vector<8x128xf32>
    %112 = arith.mulf %101, %76 : vector<8x128xf32>
    %113 = arith.mulf %93, %103 : vector<8x128xf32>
    %114 = arith.addf %112, %113 : vector<8x128xf32>
    %115 = math.tanh %114 : vector<8x128xf32>
    %116 = arith.mulf %111, %115 : vector<8x128xf32>
    %c0_48 = arith.constant 0 : index
    %c2_49 = arith.constant 2 : index
    %c0_50 = arith.constant 0 : index
    %117 = vector.load %arg3[%c0_48, %c2_49, %c0_50] : memref<8x8x128xf32, #tpu.memory_space<vmem>>, vector<8x1x128xf32>
    %118 = vector.shape_cast %117 : vector<8x1x128xf32> to vector<8x128xf32>
    %119 = vector.shape_cast %116 : vector<8x128xf32> to vector<8x1x128xf32>
    tpu.vector_store %arg3[%c0_48, %c2_49, %c0_50], %119 {strides = array<i32>} : memref<8x8x128xf32, #tpu.memory_space<vmem>>, vector<8x1x128xf32>,
    %c0_51 = arith.constant 0 : index
    %c3 = arith.constant 3 : index
    %c0_52 = arith.constant 0 : index
    %120 = vector.load %arg1[%c0_51, %c3, %c0_52] : memref<8x8x512xf32, #tpu.memory_space<vmem>>, vector<8x1x512xf32>
    %121 = vector.shape_cast %120 : vector<8x1x512xf32> to vector<8x512xf32>
    %cst_53 = arith.constant dense<0.000000e+00> : vector<8x512xf32>
    %122 = tpu.matmul %116, %3, %cst_53 {dimension_numbers = #tpu.dot_dimension_numbers<[1], [0], [0], [1], [0, 0, 1, 1], [], []>} : vector<8x128xf32>, vector<128x512xf32>, vector<8x512xf32> -> vector<8x512xf32>
    %123 = arith.addf %121, %122 : vector<8x512xf32>
    %124 = vector.extract_strided_slice %123 {offsets = [0, 0], sizes = [8, 128], strides = [1, 1]} : vector<8x512xf32> to vector<8x128xf32>
    %cst_54 = arith.constant 5.000000e-01 : f32
    %125 = vector.broadcast %cst_54 : f32 to vector<8x128xf32>
    %126 = arith.mulf %125, %124 : vector<8x128xf32>
    %127 = math.tanh %126 : vector<8x128xf32>
    %cst_55 = arith.constant 1.000000e+00 : f32
    %128 = vector.broadcast %cst_55 : f32 to vector<8x128xf32>
    %129 = arith.addf %127, %128 : vector<8x128xf32>
    %cst_56 = arith.constant 5.000000e-01 : f32
    %130 = vector.broadcast %cst_56 : f32 to vector<8x128xf32>
    %131 = arith.mulf %130, %129 : vector<8x128xf32>
    %132 = vector.extract_strided_slice %123 {offsets = [0, 128], sizes = [8, 128], strides = [1, 1]} : vector<8x512xf32> to vector<8x128xf32>
    %cst_57 = arith.constant 5.000000e-01 : f32
    %133 = vector.broadcast %cst_57 : f32 to vector<8x128xf32>
    %134 = arith.mulf %133, %132 : vector<8x128xf32>
    %135 = math.tanh %134 : vector<8x128xf32>
    %cst_58 = arith.constant 1.000000e+00 : f32
    %136 = vector.broadcast %cst_58 : f32 to vector<8x128xf32>
    %137 = arith.addf %135, %136 : vector<8x128xf32>
    %cst_59 = arith.constant 5.000000e-01 : f32
    %138 = vector.broadcast %cst_59 : f32 to vector<8x128xf32>
    %139 = arith.mulf %138, %137 : vector<8x128xf32>
    %140 = vector.extract_strided_slice %123 {offsets = [0, 256], sizes = [8, 128], strides = [1, 1]} : vector<8x512xf32> to vector<8x128xf32>
    %141 = math.tanh %140 : vector<8x128xf32>
    %142 = vector.extract_strided_slice %123 {offsets = [0, 384], sizes = [8, 128], strides = [1, 1]} : vector<8x512xf32> to vector<8x128xf32>
    %cst_60 = arith.constant 5.000000e-01 : f32
    %143 = vector.broadcast %cst_60 : f32 to vector<8x128xf32>
    %144 = arith.mulf %143, %142 : vector<8x128xf32>
    %145 = math.tanh %144 : vector<8x128xf32>
    %cst_61 = arith.constant 1.000000e+00 : f32
    %146 = vector.broadcast %cst_61 : f32 to vector<8x128xf32>
    %147 = arith.addf %145, %146 : vector<8x128xf32>
    %cst_62 = arith.constant 5.000000e-01 : f32
    %148 = vector.broadcast %cst_62 : f32 to vector<8x128xf32>
    %149 = arith.mulf %148, %147 : vector<8x128xf32>
    %150 = arith.mulf %139, %114 : vector<8x128xf32>
    %151 = arith.mulf %131, %141 : vector<8x128xf32>
    %152 = arith.addf %150, %151 : vector<8x128xf32>
    %153 = math.tanh %152 : vector<8x128xf32>
    %154 = arith.mulf %149, %153 : vector<8x128xf32>
    %c0_63 = arith.constant 0 : index
    %c3_64 = arith.constant 3 : index
    %c0_65 = arith.constant 0 : index
    %155 = vector.load %arg3[%c0_63, %c3_64, %c0_65] : memref<8x8x128xf32, #tpu.memory_space<vmem>>, vector<8x1x128xf32>
    %156 = vector.shape_cast %155 : vector<8x1x128xf32> to vector<8x128xf32>
    %157 = vector.shape_cast %154 : vector<8x128xf32> to vector<8x1x128xf32>
    tpu.vector_store %arg3[%c0_63, %c3_64, %c0_65], %157 {strides = array<i32>} : memref<8x8x128xf32, #tpu.memory_space<vmem>>, vector<8x1x128xf32>,
    %c0_66 = arith.constant 0 : index
    %c4 = arith.constant 4 : index
    %c0_67 = arith.constant 0 : index
    %158 = vector.load %arg1[%c0_66, %c4, %c0_67] : memref<8x8x512xf32, #tpu.memory_space<vmem>>, vector<8x1x512xf32>
    %159 = vector.shape_cast %158 : vector<8x1x512xf32> to vector<8x512xf32>
    %cst_68 = arith.constant dense<0.000000e+00> : vector<8x512xf32>
    %160 = tpu.matmul %154, %3, %cst_68 {dimension_numbers = #tpu.dot_dimension_numbers<[1], [0], [0], [1], [0, 0, 1, 1], [], []>} : vector<8x128xf32>, vector<128x512xf32>, vector<8x512xf32> -> vector<8x512xf32>
    %161 = arith.addf %159, %160 : vector<8x512xf32>
    %162 = vector.extract_strided_slice %161 {offsets = [0, 0], sizes = [8, 128], strides = [1, 1]} : vector<8x512xf32> to vector<8x128xf32>
    %cst_69 = arith.constant 5.000000e-01 : f32
    %163 = vector.broadcast %cst_69 : f32 to vector<8x128xf32>
    %164 = arith.mulf %163, %162 : vector<8x128xf32>
    %165 = math.tanh %164 : vector<8x128xf32>
    %cst_70 = arith.constant 1.000000e+00 : f32
    %166 = vector.broadcast %cst_70 : f32 to vector<8x128xf32>
    %167 = arith.addf %165, %166 : vector<8x128xf32>
    %cst_71 = arith.constant 5.000000e-01 : f32
    %168 = vector.broadcast %cst_71 : f32 to vector<8x128xf32>
    %169 = arith.mulf %168, %167 : vector<8x128xf32>
    %170 = vector.extract_strided_slice %161 {offsets = [0, 128], sizes = [8, 128], strides = [1, 1]} : vector<8x512xf32> to vector<8x128xf32>
    %cst_72 = arith.constant 5.000000e-01 : f32
    %171 = vector.broadcast %cst_72 : f32 to vector<8x128xf32>
    %172 = arith.mulf %171, %170 : vector<8x128xf32>
    %173 = math.tanh %172 : vector<8x128xf32>
    %cst_73 = arith.constant 1.000000e+00 : f32
    %174 = vector.broadcast %cst_73 : f32 to vector<8x128xf32>
    %175 = arith.addf %173, %174 : vector<8x128xf32>
    %cst_74 = arith.constant 5.000000e-01 : f32
    %176 = vector.broadcast %cst_74 : f32 to vector<8x128xf32>
    %177 = arith.mulf %176, %175 : vector<8x128xf32>
    %178 = vector.extract_strided_slice %161 {offsets = [0, 256], sizes = [8, 128], strides = [1, 1]} : vector<8x512xf32> to vector<8x128xf32>
    %179 = math.tanh %178 : vector<8x128xf32>
    %180 = vector.extract_strided_slice %161 {offsets = [0, 384], sizes = [8, 128], strides = [1, 1]} : vector<8x512xf32> to vector<8x128xf32>
    %cst_75 = arith.constant 5.000000e-01 : f32
    %181 = vector.broadcast %cst_75 : f32 to vector<8x128xf32>
    %182 = arith.mulf %181, %180 : vector<8x128xf32>
    %183 = math.tanh %182 : vector<8x128xf32>
    %cst_76 = arith.constant 1.000000e+00 : f32
    %184 = vector.broadcast %cst_76 : f32 to vector<8x128xf32>
    %185 = arith.addf %183, %184 : vector<8x128xf32>
    %cst_77 = arith.constant 5.000000e-01 : f32
    %186 = vector.broadcast %cst_77 : f32 to vector<8x128xf32>
    %187 = arith.mulf %186, %185 : vector<8x128xf32>
    %188 = arith.mulf %177, %152 : vector<8x128xf32>
    %189 = arith.mulf %169, %179 : vector<8x128xf32>
    %190 = arith.addf %188, %189 : vector<8x128xf32>
    %191 = math.tanh %190 : vector<8x128xf32>
    %192 = arith.mulf %187, %191 : vector<8x128xf32>
    %c0_78 = arith.constant 0 : index
    %c4_79 = arith.constant 4 : index
    %c0_80 = arith.constant 0 : index
    %193 = vector.load %arg3[%c0_78, %c4_79, %c0_80] : memref<8x8x128xf32, #tpu.memory_space<vmem>>, vector<8x1x128xf32>
    %194 = vector.shape_cast %193 : vector<8x1x128xf32> to vector<8x128xf32>
    %195 = vector.shape_cast %192 : vector<8x128xf32> to vector<8x1x128xf32>
    tpu.vector_store %arg3[%c0_78, %c4_79, %c0_80], %195 {strides = array<i32>} : memref<8x8x128xf32, #tpu.memory_space<vmem>>, vector<8x1x128xf32>,
    %c0_81 = arith.constant 0 : index
    %c5 = arith.constant 5 : index
    %c0_82 = arith.constant 0 : index
    %196 = vector.load %arg1[%c0_81, %c5, %c0_82] : memref<8x8x512xf32, #tpu.memory_space<vmem>>, vector<8x1x512xf32>
    %197 = vector.shape_cast %196 : vector<8x1x512xf32> to vector<8x512xf32>
    %cst_83 = arith.constant dense<0.000000e+00> : vector<8x512xf32>
    %198 = tpu.matmul %192, %3, %cst_83 {dimension_numbers = #tpu.dot_dimension_numbers<[1], [0], [0], [1], [0, 0, 1, 1], [], []>} : vector<8x128xf32>, vector<128x512xf32>, vector<8x512xf32> -> vector<8x512xf32>
    %199 = arith.addf %197, %198 : vector<8x512xf32>
    %200 = vector.extract_strided_slice %199 {offsets = [0, 0], sizes = [8, 128], strides = [1, 1]} : vector<8x512xf32> to vector<8x128xf32>
    %cst_84 = arith.constant 5.000000e-01 : f32
    %201 = vector.broadcast %cst_84 : f32 to vector<8x128xf32>
    %202 = arith.mulf %201, %200 : vector<8x128xf32>
    %203 = math.tanh %202 : vector<8x128xf32>
    %cst_85 = arith.constant 1.000000e+00 : f32
    %204 = vector.broadcast %cst_85 : f32 to vector<8x128xf32>
    %205 = arith.addf %203, %204 : vector<8x128xf32>
    %cst_86 = arith.constant 5.000000e-01 : f32
    %206 = vector.broadcast %cst_86 : f32 to vector<8x128xf32>
    %207 = arith.mulf %206, %205 : vector<8x128xf32>
    %208 = vector.extract_strided_slice %199 {offsets = [0, 128], sizes = [8, 128], strides = [1, 1]} : vector<8x512xf32> to vector<8x128xf32>
    %cst_87 = arith.constant 5.000000e-01 : f32
    %209 = vector.broadcast %cst_87 : f32 to vector<8x128xf32>
    %210 = arith.mulf %209, %208 : vector<8x128xf32>
    %211 = math.tanh %210 : vector<8x128xf32>
    %cst_88 = arith.constant 1.000000e+00 : f32
    %212 = vector.broadcast %cst_88 : f32 to vector<8x128xf32>
    %213 = arith.addf %211, %212 : vector<8x128xf32>
    %cst_89 = arith.constant 5.000000e-01 : f32
    %214 = vector.broadcast %cst_89 : f32 to vector<8x128xf32>
    %215 = arith.mulf %214, %213 : vector<8x128xf32>
    %216 = vector.extract_strided_slice %199 {offsets = [0, 256], sizes = [8, 128], strides = [1, 1]} : vector<8x512xf32> to vector<8x128xf32>
    %217 = math.tanh %216 : vector<8x128xf32>
    %218 = vector.extract_strided_slice %199 {offsets = [0, 384], sizes = [8, 128], strides = [1, 1]} : vector<8x512xf32> to vector<8x128xf32>
    %cst_90 = arith.constant 5.000000e-01 : f32
    %219 = vector.broadcast %cst_90 : f32 to vector<8x128xf32>
    %220 = arith.mulf %219, %218 : vector<8x128xf32>
    %221 = math.tanh %220 : vector<8x128xf32>
    %cst_91 = arith.constant 1.000000e+00 : f32
    %222 = vector.broadcast %cst_91 : f32 to vector<8x128xf32>
    %223 = arith.addf %221, %222 : vector<8x128xf32>
    %cst_92 = arith.constant 5.000000e-01 : f32
    %224 = vector.broadcast %cst_92 : f32 to vector<8x128xf32>
    %225 = arith.mulf %224, %223 : vector<8x128xf32>
    %226 = arith.mulf %215, %190 : vector<8x128xf32>
    %227 = arith.mulf %207, %217 : vector<8x128xf32>
    %228 = arith.addf %226, %227 : vector<8x128xf32>
    %229 = math.tanh %228 : vector<8x128xf32>
    %230 = arith.mulf %225, %229 : vector<8x128xf32>
    %c0_93 = arith.constant 0 : index
    %c5_94 = arith.constant 5 : index
    %c0_95 = arith.constant 0 : index
    %231 = vector.load %arg3[%c0_93, %c5_94, %c0_95] : memref<8x8x128xf32, #tpu.memory_space<vmem>>, vector<8x1x128xf32>
    %232 = vector.shape_cast %231 : vector<8x1x128xf32> to vector<8x128xf32>
    %233 = vector.shape_cast %230 : vector<8x128xf32> to vector<8x1x128xf32>
    tpu.vector_store %arg3[%c0_93, %c5_94, %c0_95], %233 {strides = array<i32>} : memref<8x8x128xf32, #tpu.memory_space<vmem>>, vector<8x1x128xf32>,
    %c0_96 = arith.constant 0 : index
    %c6 = arith.constant 6 : index
    %c0_97 = arith.constant 0 : index
    %234 = vector.load %arg1[%c0_96, %c6, %c0_97] : memref<8x8x512xf32, #tpu.memory_space<vmem>>, vector<8x1x512xf32>
    %235 = vector.shape_cast %234 : vector<8x1x512xf32> to vector<8x512xf32>
    %cst_98 = arith.constant dense<0.000000e+00> : vector<8x512xf32>
    %236 = tpu.matmul %230, %3, %cst_98 {dimension_numbers = #tpu.dot_dimension_numbers<[1], [0], [0], [1], [0, 0, 1, 1], [], []>} : vector<8x128xf32>, vector<128x512xf32>, vector<8x512xf32> -> vector<8x512xf32>
    %237 = arith.addf %235, %236 : vector<8x512xf32>
    %238 = vector.extract_strided_slice %237 {offsets = [0, 0], sizes = [8, 128], strides = [1, 1]} : vector<8x512xf32> to vector<8x128xf32>
    %cst_99 = arith.constant 5.000000e-01 : f32
    %239 = vector.broadcast %cst_99 : f32 to vector<8x128xf32>
    %240 = arith.mulf %239, %238 : vector<8x128xf32>
    %241 = math.tanh %240 : vector<8x128xf32>
    %cst_100 = arith.constant 1.000000e+00 : f32
    %242 = vector.broadcast %cst_100 : f32 to vector<8x128xf32>
    %243 = arith.addf %241, %242 : vector<8x128xf32>
    %cst_101 = arith.constant 5.000000e-01 : f32
    %244 = vector.broadcast %cst_101 : f32 to vector<8x128xf32>
    %245 = arith.mulf %244, %243 : vector<8x128xf32>
    %246 = vector.extract_strided_slice %237 {offsets = [0, 128], sizes = [8, 128], strides = [1, 1]} : vector<8x512xf32> to vector<8x128xf32>
    %cst_102 = arith.constant 5.000000e-01 : f32
    %247 = vector.broadcast %cst_102 : f32 to vector<8x128xf32>
    %248 = arith.mulf %247, %246 : vector<8x128xf32>
    %249 = math.tanh %248 : vector<8x128xf32>
    %cst_103 = arith.constant 1.000000e+00 : f32
    %250 = vector.broadcast %cst_103 : f32 to vector<8x128xf32>
    %251 = arith.addf %249, %250 : vector<8x128xf32>
    %cst_104 = arith.constant 5.000000e-01 : f32
    %252 = vector.broadcast %cst_104 : f32 to vector<8x128xf32>
    %253 = arith.mulf %252, %251 : vector<8x128xf32>
    %254 = vector.extract_strided_slice %237 {offsets = [0, 256], sizes = [8, 128], strides = [1, 1]} : vector<8x512xf32> to vector<8x128xf32>
    %255 = math.tanh %254 : vector<8x128xf32>
    %256 = vector.extract_strided_slice %237 {offsets = [0, 384], sizes = [8, 128], strides = [1, 1]} : vector<8x512xf32> to vector<8x128xf32>
    %cst_105 = arith.constant 5.000000e-01 : f32
    %257 = vector.broadcast %cst_105 : f32 to vector<8x128xf32>
    %258 = arith.mulf %257, %256 : vector<8x128xf32>
    %259 = math.tanh %258 : vector<8x128xf32>
    %cst_106 = arith.constant 1.000000e+00 : f32
    %260 = vector.broadcast %cst_106 : f32 to vector<8x128xf32>
    %261 = arith.addf %259, %260 : vector<8x128xf32>
    %cst_107 = arith.constant 5.000000e-01 : f32
    %262 = vector.broadcast %cst_107 : f32 to vector<8x128xf32>
    %263 = arith.mulf %262, %261 : vector<8x128xf32>
    %264 = arith.mulf %253, %228 : vector<8x128xf32>
    %265 = arith.mulf %245, %255 : vector<8x128xf32>
    %266 = arith.addf %264, %265 : vector<8x128xf32>
    %267 = math.tanh %266 : vector<8x128xf32>
    %268 = arith.mulf %263, %267 : vector<8x128xf32>
    %c0_108 = arith.constant 0 : index
    %c6_109 = arith.constant 6 : index
    %c0_110 = arith.constant 0 : index
    %269 = vector.load %arg3[%c0_108, %c6_109, %c0_110] : memref<8x8x128xf32, #tpu.memory_space<vmem>>, vector<8x1x128xf32>
    %270 = vector.shape_cast %269 : vector<8x1x128xf32> to vector<8x128xf32>
    %271 = vector.shape_cast %268 : vector<8x128xf32> to vector<8x1x128xf32>
    tpu.vector_store %arg3[%c0_108, %c6_109, %c0_110], %271 {strides = array<i32>} : memref<8x8x128xf32, #tpu.memory_space<vmem>>, vector<8x1x128xf32>,
    %c0_111 = arith.constant 0 : index
    %c7 = arith.constant 7 : index
    %c0_112 = arith.constant 0 : index
    %272 = vector.load %arg1[%c0_111, %c7, %c0_112] : memref<8x8x512xf32, #tpu.memory_space<vmem>>, vector<8x1x512xf32>
    %273 = vector.shape_cast %272 : vector<8x1x512xf32> to vector<8x512xf32>
    %cst_113 = arith.constant dense<0.000000e+00> : vector<8x512xf32>
    %274 = tpu.matmul %268, %3, %cst_113 {dimension_numbers = #tpu.dot_dimension_numbers<[1], [0], [0], [1], [0, 0, 1, 1], [], []>} : vector<8x128xf32>, vector<128x512xf32>, vector<8x512xf32> -> vector<8x512xf32>
    %275 = arith.addf %273, %274 : vector<8x512xf32>
    %276 = vector.extract_strided_slice %275 {offsets = [0, 0], sizes = [8, 128], strides = [1, 1]} : vector<8x512xf32> to vector<8x128xf32>
    %cst_114 = arith.constant 5.000000e-01 : f32
    %277 = vector.broadcast %cst_114 : f32 to vector<8x128xf32>
    %278 = arith.mulf %277, %276 : vector<8x128xf32>
    %279 = math.tanh %278 : vector<8x128xf32>
    %cst_115 = arith.constant 1.000000e+00 : f32
    %280 = vector.broadcast %cst_115 : f32 to vector<8x128xf32>
    %281 = arith.addf %279, %280 : vector<8x128xf32>
    %cst_116 = arith.constant 5.000000e-01 : f32
    %282 = vector.broadcast %cst_116 : f32 to vector<8x128xf32>
    %283 = arith.mulf %282, %281 : vector<8x128xf32>
    %284 = vector.extract_strided_slice %275 {offsets = [0, 128], sizes = [8, 128], strides = [1, 1]} : vector<8x512xf32> to vector<8x128xf32>
    %cst_117 = arith.constant 5.000000e-01 : f32
    %285 = vector.broadcast %cst_117 : f32 to vector<8x128xf32>
    %286 = arith.mulf %285, %284 : vector<8x128xf32>
    %287 = math.tanh %286 : vector<8x128xf32>
    %cst_118 = arith.constant 1.000000e+00 : f32
    %288 = vector.broadcast %cst_118 : f32 to vector<8x128xf32>
    %289 = arith.addf %287, %288 : vector<8x128xf32>
    %cst_119 = arith.constant 5.000000e-01 : f32
    %290 = vector.broadcast %cst_119 : f32 to vector<8x128xf32>
    %291 = arith.mulf %290, %289 : vector<8x128xf32>
    %292 = vector.extract_strided_slice %275 {offsets = [0, 256], sizes = [8, 128], strides = [1, 1]} : vector<8x512xf32> to vector<8x128xf32>
    %293 = math.tanh %292 : vector<8x128xf32>
    %294 = vector.extract_strided_slice %275 {offsets = [0, 384], sizes = [8, 128], strides = [1, 1]} : vector<8x512xf32> to vector<8x128xf32>
    %cst_120 = arith.constant 5.000000e-01 : f32
    %295 = vector.broadcast %cst_120 : f32 to vector<8x128xf32>
    %296 = arith.mulf %295, %294 : vector<8x128xf32>
    %297 = math.tanh %296 : vector<8x128xf32>
    %cst_121 = arith.constant 1.000000e+00 : f32
    %298 = vector.broadcast %cst_121 : f32 to vector<8x128xf32>
    %299 = arith.addf %297, %298 : vector<8x128xf32>
    %cst_122 = arith.constant 5.000000e-01 : f32
    %300 = vector.broadcast %cst_122 : f32 to vector<8x128xf32>
    %301 = arith.mulf %300, %299 : vector<8x128xf32>
    %302 = arith.mulf %291, %266 : vector<8x128xf32>
    %303 = arith.mulf %283, %293 : vector<8x128xf32>
    %304 = arith.addf %302, %303 : vector<8x128xf32>
    %305 = math.tanh %304 : vector<8x128xf32>
    %306 = arith.mulf %301, %305 : vector<8x128xf32>
    %c0_123 = arith.constant 0 : index
    %c7_124 = arith.constant 7 : index
    %c0_125 = arith.constant 0 : index
    %307 = vector.load %arg3[%c0_123, %c7_124, %c0_125] : memref<8x8x128xf32, #tpu.memory_space<vmem>>, vector<8x1x128xf32>
    %308 = vector.shape_cast %307 : vector<8x1x128xf32> to vector<8x128xf32>
    %309 = vector.shape_cast %306 : vector<8x128xf32> to vector<8x1x128xf32>
    tpu.vector_store %arg3[%c0_123, %c7_124, %c0_125], %309 {strides = array<i32>} : memref<8x8x128xf32, #tpu.memory_space<vmem>>, vector<8x1x128xf32>,
    %c0_126 = arith.constant 0 : index
    %c0_127 = arith.constant 0 : index
    %310 = vector.load %arg5[%c0_126, %c0_127] : memref<8x128xf32, #tpu.memory_space<vmem>>, vector<8x128xf32>
    tpu.vector_store %arg5[%c0_126, %c0_127], %306 {strides = array<i32>} : memref<8x128xf32, #tpu.memory_space<vmem>>, vector<8x128xf32>,
    %c0_128 = arith.constant 0 : index
    %c0_129 = arith.constant 0 : index
    %311 = vector.load %arg6[%c0_128, %c0_129] : memref<8x128xf32, #tpu.memory_space<vmem>>, vector<8x128xf32>
    tpu.vector_store %arg6[%c0_128, %c0_129], %304 {strides = array<i32>} : memref<8x128xf32, #tpu.memory_space<vmem>>, vector<8x128xf32>,
    %c0_130 = arith.constant 0 : index
    %c0_131 = arith.constant 0 : index
    %312 = vector.load %arg4[%c0_130, %c0_131] : memref<8x128xf32, #tpu.memory_space<vmem>>, vector<8x128xf32>
    tpu.vector_store %arg4[%c0_130, %c0_131], %304 {strides = array<i32>} : memref<8x128xf32, #tpu.memory_space<vmem>>, vector<8x128xf32>,
    return
  }
  func.func @transform_0(%arg0: i32) -> (i32, i32, i32) {
    %c0_i32 = arith.constant 0 : i32
    %c0_i32_0 = arith.constant 0 : i32
    %c0_i32_1 = arith.constant 0 : i32
    return %c0_i32, %arg0, %c0_i32_0 : i32, i32, i32
  }
  func.func @transform_1(%arg0: i32) -> (i32, i32) {
    %c0_i32 = arith.constant 0 : i32
    %c0_i32_0 = arith.constant 0 : i32
    %c0_i32_1 = arith.constant 0 : i32
    return %c0_i32, %c0_i32_0 : i32, i32
  }
  func.func @transform_2(%arg0: i32) -> (i32, i32, i32) {
    %c0_i32 = arith.constant 0 : i32
    %c0_i32_0 = arith.constant 0 : i32
    %c0_i32_1 = arith.constant 0 : i32
    return %c0_i32, %arg0, %c0_i32_0 : i32, i32, i32
  }
  func.func @transform_3(%arg0: i32) -> (i32, i32) {
    %c0_i32 = arith.constant 0 : i32
    %c0_i32_0 = arith.constant 0 : i32
    %c0_i32_1 = arith.constant 0 : i32
    return %c0_i32, %c0_i32_0 : i32, i32
  }
}

</mosaic_0001>

<bundles_post_ra>
// kernel: lstm_encoder_forward.1
= control target key start
LH: loop header
LB: loop body
LE: loop exit
PB: predicated region body
PF: predicated region fallthrough
CT: control target
= control target key end

     0   :  { %v7998_v3 = vmov 0.0   ;;  %s7994_s1 = inlined_call_operand.vmem [shape: f32[128,512], index: 1, kind: input, shape index: {}]   ;;  %s7995_s0 = inlined_call_operand.vmem [shape: f32[8,8,512], index: 0, kind: input, shape index: {}]   ;;  %s7996_s2 = inlined_call_operand.vmem [shape: f32[8,8,128], index: 2, kind: output, shape index: {0}]   ;;  %s7997_s3 = inlined_call_operand.vmem [shape: f32[8,128], index: 3, kind: output, shape index: {1}]  }
   0x1   :  { %v5229_v0 = vld [vmem:[%s7994_s1 + $0x1e8] sm:$0xff]  ;;  %v5234_v1 = vld [vmem:[%s7994_s1 + $0x1f8] sm:$0xff]  ;;  %v5239_v2 = vld [vmem:[%s7994_s1 + $0x1e0] sm:$0xff]  ;;  %164 = vmatprep.mubr.f32.mxu0 %v7998_v3  ;;  %235 = vmatprep.mubr.f32.mxu1 %v7998_v3 }
   0x2   :  { %100 = vmatprep.subr.mxu0 %v5229_v0  ;;  %171 = vmatprep.subr.mxu1 %v5234_v1  ;;  %v5248_v4 = vld [vmem:[%s7994_s1 + $0x1f0] sm:$0xff]  ;;  %v5253_v5 = vld [vmem:[%s7994_s1 + $0x1c8] sm:$0xff]  ;;  %v5258_v6 = vld [vmem:[%s7994_s1 + $0x1d8] sm:$0xff] }
   0x3   :  { %101 = vmatpush1.msra.mxu0 %v5239_v2  ;;  %172 = vmatpush1.msra.mxu1 %v5248_v4  ;;  %v5265_v7 = vld [vmem:[%s7994_s1 + $0x1c0] sm:$0xff]  ;;  %v5270_v8 = vld [vmem:[%s7994_s1 + $0x1d0] sm:$0xff]  ;;  %v5275_v9 = vld [vmem:[%s7994_s1 + $0x1a8] sm:$0xff] }
   0x4   :  { %102 = vmatprep.subr.mxu0 %v5253_v5  ;;  %173 = vmatprep.subr.mxu1 %v5258_v6  ;;  %v5282_v10 = vld [vmem:[%s7994_s1 + $0x1b8] sm:$0xff]  ;;  %v5287_v11 = vld [vmem:[%s7994_s1 + $0x1a0] sm:$0xff]  ;;  %v5292_v12 = vld [vmem:[%s7994_s1 + $0x1b0] sm:$0xff] }
   0x5   :  { %103 = vmatpush1.msra.mxu0 %v5265_v7  ;;  %174 = vmatpush1.msra.mxu1 %v5270_v8  ;;  %v5299_v13 = vld [vmem:[%s7994_s1 + $0x188] sm:$0xff]  ;;  %v5304_v14 = vld [vmem:[%s7994_s1 + $0x198] sm:$0xff]  ;;  %v5311_v15 = vld [vmem:[%s7994_s1 + $0x180] sm:$0xff] }
   0x6   :  { %104 = vmatprep.subr.mxu0 %v5275_v9  ;;  %175 = vmatprep.subr.mxu1 %v5282_v10  ;;  %v5316_v16 = vld [vmem:[%s7994_s1 + $0x190] sm:$0xff]  ;;  %v5323_v17 = vld [vmem:[%s7994_s1 + $0x168] sm:$0xff]  ;;  %v5328_v18 = vld [vmem:[%s7994_s1 + $0x178] sm:$0xff] }
   0x7   :  { %105 = vmatpush1.msra.mxu0 %v5287_v11  ;;  %176 = vmatpush1.msra.mxu1 %v5292_v12  ;;  %v5335_v19 = vld [vmem:[%s7994_s1 + $0x160] sm:$0xff]  ;;  %v5340_v20 = vld [vmem:[%s7994_s1 + $0x170] sm:$0xff]  ;;  %v5347_v21 = vld [vmem:[%s7994_s1 + $0x148] sm:$0xff] }
   0x8   :  { %106 = vmatprep.subr.mxu0 %v5299_v13  ;;  %177 = vmatprep.subr.mxu1 %v5304_v14  ;;  %v5352_v22 = vld [vmem:[%s7994_s1 + $0x158] sm:$0xff]  ;;  %v5359_v23 = vld [vmem:[%s7994_s1 + $0x140] sm:$0xff]  ;;  %v5364_v24 = vld [vmem:[%s7994_s1 + $0x150] sm:$0xff] }
   0x9   :  { %107 = vmatpush1.msra.mxu0 %v5311_v15  ;;  %178 = vmatpush1.msra.mxu1 %v5316_v16  ;;  %8135 = vst [vmem:[#allocation4_spill] sm:$0xff] %v5364_v24  ;;  %v5371_v25 = vld [vmem:[%s7994_s1 + $0x128] sm:$0xff]  ;;  %v5376_v26 = vld [vmem:[%s7994_s1 + $0x138] sm:$0xff]  ;;  %v5383_v27 = vld [vmem:[%s7994_s1 + $0x120] sm:$0xff] }
   0xa   :  { %108 = vmatprep.subr.mxu0 %v5323_v17  ;;  %179 = vmatprep.subr.mxu1 %v5328_v18  ;;  %8136 = vst [vmem:[#allocation5_spill] sm:$0xff] %v5371_v25  ;;  %8137 = vst [vmem:[#allocation6_spill] sm:$0xff] %v5376_v26  ;;  %v5388_v28 = vld [vmem:[%s7994_s1 + $0x130] sm:$0xff]  ;;  %v5395_v29 = vld [vmem:[%s7994_s1 + $0x108] sm:$0xff] }
   0xb   :  { %109 = vmatpush1.msra.mxu0 %v5335_v19  ;;  %180 = vmatpush1.msra.mxu1 %v5340_v20  ;;  %8138 = vst [vmem:[#allocation7_spill] sm:$0xff] %v5383_v27  ;;  %8139 = vst [vmem:[#allocation8_spill] sm:$0xff] %v5388_v28  ;;  %v5400_v30 = vld [vmem:[%s7994_s1 + $0x118] sm:$0xff]  ;;  %v5407_v31 = vld [vmem:[%s7994_s1 + $0x100] sm:$0xff] }
   0xc   :  { %110 = vmatprep.subr.mxu0 %v5347_v21  ;;  %181 = vmatprep.subr.mxu1 %v5352_v22  ;;  %8140 = vst [vmem:[#allocation9_spill] sm:$0xff] %v5395_v29  ;;  %8141 = vst [vmem:[#allocation10_spill] sm:$0xff] %v5400_v30  ;;  %v5412_v32 = vld [vmem:[%s7994_s1 + $0x110] sm:$0xff]  ;;  %v5419_v33 = vld [vmem:[%s7994_s1 + $0xe8] sm:$0xff] }
   0xd   :  { %111 = vmatpush1.msra.mxu0 %v5359_v23  ;;  %182 = vmatpush1.msra.mxu1 %v5364_v24  ;;  %8142 = vst [vmem:[#allocation11_spill] sm:$0xff] %v5407_v31  ;;  %8143 = vst [vmem:[#allocation12_spill] sm:$0xff] %v5412_v32  ;;  %v5424_v34 = vld [vmem:[%s7994_s1 + $0xf8] sm:$0xff]  ;;  %v5431_v35 = vld [vmem:[%s7994_s1 + $0xe0] sm:$0xff] }
   0xe   :  { %112 = vmatprep.subr.mxu0 %v5371_v25  ;;  %183 = vmatprep.subr.mxu1 %v5376_v26  ;;  %8144 = vst [vmem:[#allocation13_spill] sm:$0xff] %v5419_v33  ;;  %8145 = vst [vmem:[#allocation14_spill] sm:$0xff] %v5424_v34  ;;  %v5436_v36 = vld [vmem:[%s7994_s1 + $0xf0] sm:$0xff]  ;;  %v5443_v37 = vld [vmem:[%s7994_s1 + $0xc8] sm:$0xff] }
   0xf   :  { %113 = vmatpush1.msra.mxu0 %v5383_v27  ;;  %184 = vmatpush1.msra.mxu1 %v5388_v28  ;;  %8146 = vst [vmem:[#allocation15_spill] sm:$0xff] %v5431_v35  ;;  %8147 = vst [vmem:[#allocation16_spill] sm:$0xff] %v5436_v36  ;;  %v5448_v38 = vld [vmem:[%s7994_s1 + $0xd8] sm:$0xff]  ;;  %v5455_v39 = vld [vmem:[%s7994_s1 + $0xc0] sm:$0xff] }
  0x10   :  { %114 = vmatprep.subr.mxu0 %v5395_v29  ;;  %185 = vmatprep.subr.mxu1 %v5400_v30  ;;  %8148 = vst [vmem:[#allocation17_spill] sm:$0xff] %v5443_v37  ;;  %8149 = vst [vmem:[#allocation18_spill] sm:$0xff] %v5448_v38  ;;  %v5460_v40 = vld [vmem:[%s7994_s1 + $0xd0] sm:$0xff]  ;;  %v5467_v41 = vld [vmem:[%s7994_s1 + $0xa8] sm:$0xff] }
  0x11   :  { %115 = vmatpush1.msra.mxu0 %v5407_v31  ;;  %186 = vmatpush1.msra.mxu1 %v5412_v32  ;;  %8150 = vst [vmem:[#allocation19_spill] sm:$0xff] %v5455_v39  ;;  %8151 = vst [vmem:[#allocation20_spill] sm:$0xff] %v5460_v40  ;;  %v5472_v42 = vld [vmem:[%s7994_s1 + $0xb8] sm:$0xff]  ;;  %v5479_v43 = vld [vmem:[%s7994_s1 + $0xa0] sm:$0xff] }
  0x12   :  { %116 = vmatprep.subr.mxu0 %v5419_v33  ;;  %187 = vmatprep.subr.mxu1 %v5424_v34  ;;  %8152 = vst [vmem:[#allocation21_spill] sm:$0xff] %v5467_v41  ;;  %8153 = vst [vmem:[#allocation22_spill] sm:$0xff] %v5472_v42  ;;  %v5484_v44 = vld [vmem:[%s7994_s1 + $0xb0] sm:$0xff]  ;;  %v5491_v45 = vld [vmem:[%s7994_s1 + $0x88] sm:$0xff] }
  0x13   :  { %117 = vmatpush1.msra.mxu0 %v5431_v35  ;;  %188 = vmatpush1.msra.mxu1 %v5436_v36  ;;  %8154 = vst [vmem:[#allocation23_spill] sm:$0xff] %v5479_v43  ;;  %8155 = vst [vmem:[#allocation24_spill] sm:$0xff] %v5484_v44  ;;  %v5496_v46 = vld [vmem:[%s7994_s1 + $0x98] sm:$0xff]  ;;  %v5503_v47 = vld [vmem:[%s7994_s1 + $0x80] sm:$0xff] }
  0x14   :  { %118 = vmatprep.subr.mxu0 %v5443_v37  ;;  %189 = vmatprep.subr.mxu1 %v5448_v38  ;;  %8156 = vst [vmem:[#allocation25_spill] sm:$0xff] %v5491_v45  ;;  %8157 = vst [vmem:[#allocation26_spill] sm:$0xff] %v5496_v46  ;;  %v5508_v48 = vld [vmem:[%s7994_s1 + $0x90] sm:$0xff]  ;;  %v5515_v49 = vld [vmem:[%s7994_s1 + $0x68] sm:$0xff] }
  0x15   :  { %119 = vmatpush1.msra.mxu0 %v5455_v39  ;;  %190 = vmatpush1.msra.mxu1 %v5460_v40  ;;  %8158 = vst [vmem:[#allocation27_spill] sm:$0xff] %v5503_v47  ;;  %8159 = vst [vmem:[#allocation28_spill] sm:$0xff] %v5508_v48  ;;  %v5520_v50 = vld [vmem:[%s7994_s1 + $0x78] sm:$0xff]  ;;  %v5527_v51 = vld [vmem:[%s7994_s1 + $0x60] sm:$0xff] }
  0x16   :  { %120 = vmatprep.subr.mxu0 %v5467_v41  ;;  %191 = vmatprep.subr.mxu1 %v5472_v42  ;;  %8160 = vst [vmem:[#allocation29_spill] sm:$0xff] %v5515_v49  ;;  %8161 = vst [vmem:[#allocation30_spill] sm:$0xff] %v5520_v50  ;;  %v5532_v52 = vld [vmem:[%s7994_s1 + $0x70] sm:$0xff]  ;;  %v5539_v53 = vld [vmem:[%s7994_s1 + $0x48] sm:$0xff] }
  0x17   :  { %121 = vmatpush1.msra.mxu0 %v5479_v43  ;;  %192 = vmatpush1.msra.mxu1 %v5484_v44  ;;  %8162 = vst [vmem:[#allocation31_spill] sm:$0xff] %v5527_v51  ;;  %8163 = vst [vmem:[#allocation32_spill] sm:$0xff] %v5532_v52  ;;  %v5544_v54 = vld [vmem:[%s7994_s1 + $0x58] sm:$0xff]  ;;  %v5551_v55 = vld [vmem:[%s7994_s1 + $0x40] sm:$0xff] }
  0x18   :  { %122 = vmatprep.subr.mxu0 %v5491_v45  ;;  %193 = vmatprep.subr.mxu1 %v5496_v46  ;;  %8164 = vst [vmem:[#allocation33_spill] sm:$0xff] %v5539_v53  ;;  %8165 = vst [vmem:[#allocation34_spill] sm:$0xff] %v5544_v54  ;;  %v5556_v56 = vld [vmem:[%s7994_s1 + $0x50] sm:$0xff]  ;;  %v5563_v57 = vld [vmem:[%s7994_s1 + $0x28] sm:$0xff] }
  0x19   :  { %123 = vmatpush1.msra.mxu0 %v5503_v47  ;;  %194 = vmatpush1.msra.mxu1 %v5508_v48  ;;  %8166 = vst [vmem:[#allocation35_spill] sm:$0xff] %v5551_v55  ;;  %8167 = vst [vmem:[#allocation36_spill] sm:$0xff] %v5556_v56  ;;  %v5568_v58 = vld [vmem:[%s7994_s1 + $0x38] sm:$0xff]  ;;  %v5575_v59 = vld [vmem:[%s7994_s1 + $0x20] sm:$0xff] }
  0x1a   :  { %124 = vmatprep.subr.mxu0 %v5515_v49  ;;  %195 = vmatprep.subr.mxu1 %v5520_v50  ;;  %8168 = vst [vmem:[#allocation37_spill] sm:$0xff] %v5563_v57  ;;  %8169 = vst [vmem:[#allocation38_spill] sm:$0xff] %v5568_v58  ;;  %v5580_v60 = vld [vmem:[%s7994_s1 + $0x30] sm:$0xff]  ;;  %v5587_v61 = vld [vmem:[%s7994_s1 + $0x8] sm:$0xff] }
  0x1b   :  { %125 = vmatpush1.msra.mxu0 %v5527_v51  ;;  %196 = vmatpush1.msra.mxu1 %v5532_v52  ;;  %8170 = vst [vmem:[#allocation39_spill] sm:$0xff] %v5575_v59  ;;  %8171 = vst [vmem:[#allocation40_spill] sm:$0xff] %v5580_v60  ;;  %v5592_v62 = vld [vmem:[%s7994_s1 + $0x18] sm:$0xff]  ;;  %v5599_v63 = vld [vmem:[%s7994_s1] sm:$0xff] }
  0x1c   :  { %126 = vmatprep.subr.mxu0 %v5539_v53  ;;  %197 = vmatprep.subr.mxu1 %v5544_v54  ;;  %8172 = vst [vmem:[#allocation41_spill] sm:$0xff] %v5587_v61  ;;  %8173 = vst [vmem:[#allocation42_spill] sm:$0xff] %v5592_v62  ;;  %v5604_v3 = vld [vmem:[%s7994_s1 + $0x10] sm:$0xff] }
  0x1d   :  { %127 = vmatpush1.msra.mxu0 %v5551_v55  ;;  %198 = vmatpush1.msra.mxu1 %v5556_v56  ;;  %8174 = vst [vmem:[#allocation43_spill] sm:$0xff] %v5599_v63  ;;  %8175 = vst [vmem:[#allocation44_spill] sm:$0xff] %v5604_v3 }
  0x1e   :  { %128 = vmatprep.subr.mxu0 %v5563_v57  ;;  %199 = vmatprep.subr.mxu1 %v5568_v58  ;;  %v8176_v58 = vmov 0.0  }
  0x1f   :  { %129 = vmatpush1.msra.mxu0 %v5575_v59  ;;  %200 = vmatpush1.msra.mxu1 %v5580_v60 }
  0x20   :  { %130 = vmatprep.subr.mxu0 %v5587_v61  ;;  %201 = vmatprep.subr.mxu1 %v5592_v62 }
  0x21   :  { %131 = vmatpush1.msra.mxu0 %v5599_v63  ;;  %202 = vmatpush1.msra.mxu1 %v5604_v3 }
  0x22   :  { %165 = vmatmul.mubr.f32.vlgmr.msra.gmra.mxu0 %v8176_v58  ;;  %236 = vmatmul.mubr.f32.vlgmr.msra.gmra.mxu1 %v8176_v58 }
  0x23   :  { %670 = vmatprep.subr.mxu0 %v5229_v0  ;;  %741 = vmatprep.subr.mxu1 %v5234_v1 }
  0x24   :  { %671 = vmatpush1.msra.mxu0 %v5239_v2  ;;  %742 = vmatpush1.msra.mxu1 %v5248_v4 }
  0x25   :  { %672 = vmatprep.subr.mxu0 %v5253_v5  ;;  %743 = vmatprep.subr.mxu1 %v5258_v6 }
  0x26   :  { %673 = vmatpush1.msra.mxu0 %v5265_v7  ;;  %744 = vmatpush1.msra.mxu1 %v5270_v8 }
  0x27   :  { %674 = vmatprep.subr.mxu0 %v5275_v9  ;;  %745 = vmatprep.subr.mxu1 %v5282_v10 }
  0x28   :  { %675 = vmatpush1.msra.mxu0 %v5287_v11  ;;  %746 = vmatpush1.msra.mxu1 %v5292_v12 }
  0x29   :  { %676 = vmatprep.subr.mxu0 %v5299_v13  ;;  %747 = vmatprep.subr.mxu1 %v5304_v14 }
  0x2a   :  { %677 = vmatpush1.msra.mxu0 %v5311_v15  ;;  %748 = vmatpush1.msra.mxu1 %v5316_v16 }
  0x2b   :  { %678 = vmatprep.subr.mxu0 %v5323_v17  ;;  %749 = vmatprep.subr.mxu1 %v5328_v18 }
  0x2c   :  { %679 = vmatpush1.msra.mxu0 %v5335_v19  ;;  %750 = vmatpush1.msra.mxu1 %v5340_v20 }
  0x2d   :  { %680 = vmatprep.subr.mxu0 %v5347_v21  ;;  %751 = vmatprep.subr.mxu1 %v5352_v22 }
  0x2e   :  { %681 = vmatpush1.msra.mxu0 %v5359_v23  ;;  %752 = vmatpush1.msra.mxu1 %v5364_v24 }
  0x2f   :  { %682 = vmatprep.subr.mxu0 %v5371_v25  ;;  %753 = vmatprep.subr.mxu1 %v5376_v26 }
  0x30   :  { %683 = vmatpush1.msra.mxu0 %v5383_v27  ;;  %754 = vmatpush1.msra.mxu1 %v5388_v28 }
  0x31   :  { %684 = vmatprep.subr.mxu0 %v5395_v29  ;;  %755 = vmatprep.subr.mxu1 %v5400_v30 }
  0x32   :  { %685 = vmatpush1.msra.mxu0 %v5407_v31  ;;  %756 = vmatpush1.msra.mxu1 %v5412_v32 }
  0x33   :  { %686 = vmatprep.subr.mxu0 %v5419_v33  ;;  %757 = vmatprep.subr.mxu1 %v5424_v34 }
  0x34   :  { %687 = vmatpush1.msra.mxu0 %v5431_v35  ;;  %758 = vmatpush1.msra.mxu1 %v5436_v36 }
  0x35   :  { %688 = vmatprep.subr.mxu0 %v5443_v37  ;;  %759 = vmatprep.subr.mxu1 %v5448_v38 }
  0x36   :  { %689 = vmatpush1.msra.mxu0 %v5455_v39  ;;  %760 = vmatpush1.msra.mxu1 %v5460_v40 }
  0x37   :  { %690 = vmatprep.subr.mxu0 %v5467_v41  ;;  %761 = vmatprep.subr.mxu1 %v5472_v42 }
  0x38   :  { %691 = vmatpush1.msra.mxu0 %v5479_v43  ;;  %762 = vmatpush1.msra.mxu1 %v5484_v44 }
  0x39   :  { %692 = vmatprep.subr.mxu0 %v5491_v45  ;;  %763 = vmatprep.subr.mxu1 %v5496_v46 }
  0x3a   :  { %693 = vmatpush1.msra.mxu0 %v5503_v47  ;;  %764 = vmatpush1.msra.mxu1 %v5508_v48  ;;  %v8177_v47 = vld [vmem:[#allocation38_spill] sm:$0xff] }
  0x3b   :  { %694 = vmatprep.subr.mxu0 %v5515_v49  ;;  %765 = vmatprep.subr.mxu1 %v5520_v50 }
  0x3c   :  { %695 = vmatpush1.msra.mxu0 %v5527_v51  ;;  %766 = vmatpush1.msra.mxu1 %v5532_v52 }
  0x3d   :  { %696 = vmatprep.subr.mxu0 %v5539_v53  ;;  %767 = vmatprep.subr.mxu1 %v5544_v54 }
  0x3e   :  { %697 = vmatpush1.msra.mxu0 %v5551_v55  ;;  %768 = vmatpush1.msra.mxu1 %v5556_v56 }
  0x3f   :  { %698 = vmatprep.subr.mxu0 %v5563_v57  ;;  %769 = vmatprep.subr.mxu1 %v8177_v47  ;;  %v5205_v47 = vmov 1966171168   ;;  %v253_v57 = vlaneseq }
  0x40   :  { %699 = vmatpush1.msra.mxu0 %v5575_v59  ;;  %770 = vmatpush1.msra.mxu1 %v5580_v60  ;;  %v251_v59 = vunpack.c.l.s4 %v5205_v47 }
  0x41   :  { %700 = vmatprep.subr.mxu0 %v5587_v61  ;;  %771 = vmatprep.subr.mxu1 %v5592_v62  ;;  %v254_v56 = vshrl.u32 %v253_v57, 7 }
  0x42   :  { %701 = vmatpush1.msra.mxu0 %v5599_v63  ;;  %734 = vmatprep.mubr.f32.mxu0 %v8176_v58  ;;  %v252_v60 = vunpack.c.0.s8 %v251_v59 }
  0x43   :  { %772 = vmatpush1.msra.mxu1 %v5604_v3  ;;  %805 = vmatprep.mubr.f32.mxu1 %v8176_v58 }
  0x44   :  { %1182 = vmatprep.subr.mxu0 %v5229_v0  ;;  %1253 = vmatprep.subr.mxu1 %v5234_v1  ;;  %v5682_v62 = vsub.s32 %v252_v60, %v254_v56  ;;  %v85_v56 = vld [vmem:[%s7995_s0] ss:$8 sm:$0xf] }
  0x45   :  { %v4309_v60 = vld [vmem:[%s7995_s0 + $0x60] ss:$8 sm:$0xf] }
  0xe2   :  { %v166_v61 = vpop.f32.mrf.mxu0  ;;  %v237_v55 = vpop.f32.mrf.mxu1 }
  0xe4   :  { %v168_v63 = vpop.f32.mrf.mxu0  ;;  %v239_v54 = vpop.f32.mrf.mxu1 }
  0xe5   :  { %v246_v53 = vcombine.low %v166_v61, %v168_v63  ;;  %v247_v52 = vcombine.high %v166_v61, %v168_v63  ;;  %v248_v3 = vcombine.low %v237_v55, %v239_v54  ;;  %v249_v51 = vcombine.high %v237_v55, %v239_v54  ;;  %v4307_v54 = vld [vmem:[%s7995_s0 + $0x20] ss:$8 sm:$0xf] }
  0xe6   :  { %v4311_v61 = vld [vmem:[%s7995_s0 + $0xa0] ss:$8 sm:$0xf]  ;;  %v491_v63 = vcombine.high %v8176_v58, %v8176_v58 }
  0xe7   :  { %v256_v50 = vrot.slane %v246_v53, %v5682_v62  ;;  %v263_v0 = vrot.slane %v247_v52, %v5682_v62  ;;  %v270_v1 = vrot.slane %v248_v3, %v5682_v62  ;;  %v277_v47 = vrot.slane %v249_v51, %v5682_v62  ;;  %v4308_v52 = vld [vmem:[%s7995_s0 + $0x40] ss:$8 sm:$0xf] }
  0xe8   :  { %v4310_v3 = vld [vmem:[%s7995_s0 + $0x80] ss:$8 sm:$0xf] }
  0xe9   :  { %v278_v59 = vcombine.low %v256_v50, %v270_v1  ;;  %v279_v57 = vcombine.high %v256_v50, %v270_v1  ;;  %v280_v49 = vcombine.low %v263_v0, %v277_v47  ;;  %v281_v48 = vcombine.high %v263_v0, %v277_v47  ;;  %v4312_v0 = vld [vmem:[%s7995_s0 + $0xc0] ss:$8 sm:$0xf] }
  0xeb   :  { %v288_v50 = vrot.slane %v278_v59, %v5682_v62  ;;  %v295_v51 = vrot.slane %v280_v49, %v5682_v62  ;;  %v302_v53 = vrot.slane %v279_v57, %v5682_v62  ;;  %v309_v55 = vrot.slane %v281_v48, %v5682_v62  ;;  %v4313_v48 = vld [vmem:[%s7995_s0 + $0xe0] ss:$8 sm:$0xf] }
  0xed   :  { %v310_v49 = vcombine.high %v288_v50, %v288_v50  ;;  %v311_v1 = vcombine.high %v295_v51, %v295_v51  ;;  %v312_v47 = vcombine.high %v302_v53, %v302_v53  ;;  %v313_v59 = vcombine.high %v309_v55, %v309_v55 }
  0xee   :  { %v5718_v57 = vadd.f32 %v288_v50, %v85_v56  ;;  %v5720_v46 = vadd.f32 %v4307_v54, %v302_v53  ;;  %v5722_v45 = vadd.f32 %v4310_v3, %v295_v51  ;;  %v5728_v42 = vadd.f32 %v4311_v61, %v309_v55 }
  0xef   :  { %v5724_v44 = vadd.f32 %v4308_v52, %v310_v49  ;;  %v5726_v43 = vadd.f32 %v4309_v60, %v312_v47  ;;  %v5730_v41 = vadd.f32 %v4312_v0, %v311_v1  ;;  %v498_v56 = vrot.slane %v8176_v58, %v5682_v62 }
  0xf0   :  { %v330_v40 = vmul.f32 0.5, %v5718_v57  ;;  %v331_v39 = vmul.f32 0.5, %v5720_v46  ;;  %v5736_v50 = vadd.f32 %v4313_v48, %v313_v59  ;;  %v505_v3 = vrot.slane %v491_v63, %v5682_v62 }
  0xf1   :  { %v332_v54 = vmul.f32 0.5, %v5724_v44  ;;  %v333_v52 = vmul.f32 0.5, %v5726_v43  ;;  %v334_v51 = vmul.f32 0.5, %v5722_v45  ;;  %v370_v53 = vrot.slane %v5718_v57, 1 }
  0xf2   :  { %4372 = vtanh.f32 %v330_v40  ;;  %v335_v55 = vmul.f32 0.5, %v5728_v42  ;;  %v371_v60 = vrot.slane %v5720_v46, 1  ;;  %v336_v61 = vmul.f32 0.5, %v5730_v41 }
  0xf3   :  { %4374 = vtanh.f32 %v331_v39  ;;  %v372_v0 = vrot.slane %v5724_v44, 1  ;;  %v506_v49 = vcombine.high %v498_v56, %v498_v56  ;;  %v337_v1 = vmul.f32 0.5, %v5736_v50 }
  0xf4   :  { %4376 = vtanh.f32 %v332_v54  ;;  %v373_v63 = vrot.slane %v5726_v43, 1  ;;  %v507_v47 = vcombine.high %v505_v3, %v505_v3  ;;  %v374_v40 = vrot.slane %v5722_v45, 1 }
  0xf5   :  { %4378 = vtanh.f32 %v333_v52  ;;  %v386_v59 = vmul.f32 0.5, %v370_v53  ;;  %v5751_v39 = vrot.slane %v498_v56, %v5682_v62  ;;  %v375_v48 = vrot.slane %v5728_v42, 1 }
  0xf6   :  { %4380 = vtanh.f32 %v334_v51  ;;  %v387_v54 = vmul.f32 0.5, %v371_v60  ;;  %v5755_v58 = vrot.slane %v505_v3, %v5682_v62  ;;  %v376_v52 = vrot.slane %v5730_v41, 1 }
  0xf7   :  { %4382 = vtanh.f32 %v335_v55  ;;  %v388_v38 = vmul.f32 0.5, %v372_v0  ;;  %v5759_v37 = vrot.slane %v506_v49, %v5682_v62  ;;  %v377_v51 = vrot.slane %v5736_v50, 1 }
  0xf8   :  { %4384 = vtanh.f32 %v336_v61  ;;  %v389_v53 = vmul.f32 0.5, %v373_v63  ;;  %v5763_v56 = vrot.slane %v507_v47, %v5682_v62  ;;  %v390_v55 = vmul.f32 0.5, %v374_v40 }
  0xf9   :  { %4386 = vtanh.f32 %v337_v1  ;;  %v391_v60 = vmul.f32 0.5, %v375_v48  ;;  %v392_v3 = vmul.f32 0.5, %v376_v52  ;;  %v393_v49 = vmul.f32 0.5, %v377_v51 }
  0xfa   :  { %4388 = vtanh.f32 %v386_v59  ;;  %v418_v47 = vrot.slane %v5718_v57, 2  ;;  %v419_v40 = vrot.slane %v5720_v46, 2  ;;  %v421_v48 = vrot.slane %v5726_v43, 2 }
  0xfb   :  { %4390 = vtanh.f32 %v387_v54  ;;  %v442_v54 = vrot.slane %v5718_v57, 3  ;;  %v443_v52 = vrot.slane %v5720_v46, 3  ;;  %v445_v63 = vrot.slane %v5726_v43, 3 }
  0xfc   :  { %4392 = vtanh.f32 %v388_v38  ;;  %v420_v38 = vrot.slane %v5724_v44, 2  ;;  %v423_v1 = vrot.slane %v5728_v42, 2  ;;  %v447_v61 = vrot.slane %v5728_v42, 3 }
  0xfd   :  { %4394 = vtanh.f32 %v389_v53  ;;  %v422_v53 = vrot.slane %v5722_v45, 2  ;;  %v424_v57 = vrot.slane %v5730_v41, 2  ;;  %v425_v46 = vrot.slane %v5736_v50, 2 }
  0xfe   :  { %4396 = vtanh.f32 %v390_v55  ;;  %v444_v55 = vrot.slane %v5724_v44, 3  ;;  %v449_v43 = vrot.slane %v5736_v50, 3  ;;  %v458_v44 = vmul.f32 0.5, %v442_v54 }
  0xff   :  { %v4373_v59 = vpop.eup %4372  ;;  %4398 = vtanh.f32 %v391_v60  ;;  %v446_v60 = vrot.slane %v5722_v45, 3  ;;  %v461_v32 = vmul.f32 0.5, %v445_v63  ;;  %v463_v29 = vmul.f32 0.5, %v447_v61 }
 0x100   :  { %v4375_v51 = vpop.eup %4374  ;;  %4400 = vtanh.f32 %v392_v3  ;;  %v448_v3 = vrot.slane %v5730_v41, 3  ;;  %v346_v33 = vadd.f32 1.0, %v4373_v59  ;;  %v460_v45 = vmul.f32 0.5, %v444_v55 }
 0x101   :  { %v4377_v0 = vpop.eup %4376  ;;  %4402 = vtanh.f32 %v393_v49  ;;  %v459_v49 = vmul.f32 0.5, %v443_v52  ;;  %v347_v31 = vadd.f32 1.0, %v4375_v51  ;;  %v462_v30 = vmul.f32 0.5, %v446_v60 }
 0x102   :  { %v4379_v36 = vpop.eup %4378  ;;  %4404 = vtanh.f32 %v418_v47  ;;  %v348_v47 = vadd.f32 1.0, %v4377_v0  ;;  %v464_v41 = vmul.f32 0.5, %v448_v3  ;;  %v465_v54 = vmul.f32 0.5, %v449_v43 }
 0x103   :  { %v4381_v35 = vpop.eup %4380  ;;  %4406 = vtanh.f32 %v419_v40  ;;  %v349_v27 = vadd.f32 1.0, %v4379_v36 }
 0x104   :  { %v4383_v34 = vpop.eup %4382  ;;  %4408 = vtanh.f32 %v420_v38  ;;  %v350_v26 = vadd.f32 1.0, %v4381_v35  ;;  %v354_v38 = vmul.f32 0.5, %v346_v33  ;;  %v356_v0 = vmul.f32 0.5, %v348_v47 }
 0x105   :  { %v4385_v42 = vpop.eup %4384  ;;  %4410 = vtanh.f32 %v421_v48  ;;  %v351_v50 = vadd.f32 1.0, %v4383_v34  ;;  %v355_v48 = vmul.f32 0.5, %v347_v31  ;;  %v357_v36 = vmul.f32 0.5, %v349_v27 }
 0x106   :  { %v4387_v28 = vpop.eup %4386  ;;  %4412 = vtanh.f32 %v422_v53  ;;  %v352_v59 = vadd.f32 1.0, %v4385_v42  ;;  %v358_v35 = vmul.f32 0.5, %v350_v26 }
 0x107   :  { %v4389_v40 = vpop.eup %4388  ;;  %4414 = vtanh.f32 %v423_v1  ;;  %v353_v51 = vadd.f32 1.0, %v4387_v28  ;;  %v359_v34 = vmul.f32 0.5, %v351_v50 }
 0x108   :  { %v4391_v52 = vpop.eup %4390  ;;  %v402_v55 = vadd.f32 1.0, %v4389_v40  ;;  %4416 = vtanh.f32 %v424_v57  ;;  %v360_v42 = vmul.f32 0.5, %v352_v59 }
 0x109   :  { %v4393_v63 = vpop.eup %4392  ;;  %v403_v60 = vadd.f32 1.0, %v4391_v52  ;;  %4418 = vtanh.f32 %v425_v46  ;;  %v361_v28 = vmul.f32 0.5, %v353_v51 }
 0x10a   :  { %v4395_v61 = vpop.eup %4394  ;;  %v404_v53 = vadd.f32 1.0, %v4393_v63  ;;  %v410_v3 = vmul.f32 0.5, %v402_v55  ;;  %4420 = vtanh.f32 %v458_v44 }
 0x10b   :  { %v4397_v25 = vpop.eup %4396  ;;  %v405_v1 = vadd.f32 1.0, %v4395_v61  ;;  %v411_v43 = vmul.f32 0.5, %v403_v60  ;;  %4422 = vtanh.f32 %v459_v49 }
 0x10c   :  { %v4399_v24 = vpop.eup %4398  ;;  %v406_v33 = vadd.f32 1.0, %v4397_v25  ;;  %v412_v40 = vmul.f32 0.5, %v404_v53  ;;  %4424 = vtanh.f32 %v460_v45  ;;  %v548_v55 = vmul.f32 %v5751_v39, %v410_v3 }
 0x10d   :  { %v4401_v57 = vpop.eup %4400  ;;  %v407_v31 = vadd.f32 1.0, %v4399_v24  ;;  %v413_v52 = vmul.f32 0.5, %v405_v1  ;;  %4426 = vtanh.f32 %v461_v32  ;;  %v549_v59 = vmul.f32 %v5759_v37, %v411_v43 }
 0x10e   :  { %v4403_v46 = vpop.eup %4402  ;;  %v408_v47 = vadd.f32 1.0, %v4401_v57  ;;  %v414_v27 = vmul.f32 0.5, %v406_v33  ;;  %4428 = vtanh.f32 %v462_v30  ;;  %v8178_v24 = vcombine.high %v5751_v39, %v5751_v39 }
 0x10f   :  { %v4405_v26 = vpop.eup %4404  ;;  %v409_v50 = vadd.f32 1.0, %v4403_v46  ;;  %v415_v63 = vmul.f32 0.5, %v407_v31  ;;  %4430 = vtanh.f32 %v463_v29  ;;  %v8179_v45 = vcombine.high %v5759_v37, %v5759_v37 }
 0x110   :  { %v4407_v25 = vpop.eup %4406  ;;  %v416_v60 = vmul.f32 0.5, %v408_v47  ;;  %v550_v44 = vmul.f32 %v8178_v24, %v412_v40  ;;  %v556_v49 = vmul.f32 %v4405_v26, %v354_v38  ;;  %4432 = vtanh.f32 %v464_v41 }
 0x111   :  { %v4409_v51 = vpop.eup %4408  ;;  %v417_v61 = vmul.f32 0.5, %v409_v50  ;;  %v551_v53 = vmul.f32 %v8179_v45, %v413_v52  ;;  %v557_v3 = vmul.f32 %v4407_v25, %v355_v48  ;;  %v552_v32 = vmul.f32 %v5755_v58, %v414_v27 }
 0x112   :  { %v4411_v1 = vpop.eup %4410  ;;  %v558_v43 = vmul.f32 %v4409_v51, %v356_v0  ;;  %v5798_v33 = vadd.f32 %v556_v49, %v548_v55  ;;  %4434 = vtanh.f32 %v465_v54  ;;  %v553_v39 = vmul.f32 %v5763_v56, %v415_v63 }
 0x113   :  { %v4413_v30 = vpop.eup %4412  ;;  %v559_v38 = vmul.f32 %v4411_v1, %v357_v36  ;;  %v5801_v40 = vadd.f32 %v557_v3, %v549_v59  ;;  %v8180_v37 = vcombine.high %v5755_v58, %v5755_v58  ;;  %v8181_v0 = vcombine.high %v5763_v56, %v5763_v56 }
 0x114   :  { %v4415_v29 = vpop.eup %4414  ;;  %v560_v48 = vmul.f32 %v4413_v30, %v358_v35  ;;  %v5806_v31 = vadd.f32 %v558_v43, %v550_v44  ;;  %4436 = vtanh.f32 %v5798_v33 }
 0x115   :  { %v554_v57 = vmul.f32 %v8180_v37, %v416_v60  ;;  %v4417_v41 = vpop.eup %4416  ;;  %v555_v54 = vmul.f32 %v8181_v0, %v417_v61  ;;  %v561_v52 = vmul.f32 %v4415_v29, %v359_v34  ;;  %v5812_v46 = vadd.f32 %v559_v38, %v551_v53 }
 0x116   :  { %4438 = vtanh.f32 %v5801_v40  ;;  %v4419_v36 = vpop.eup %4418  ;;  %v562_v47 = vmul.f32 %v4417_v41, %v360_v42  ;;  %v5815_v27 = vadd.f32 %v560_v48, %v552_v32 }
 0x117   :  { %4440 = vtanh.f32 %v5806_v31  ;;  %v563_v58 = vmul.f32 %v4419_v36, %v361_v28  ;;  %v5818_v35 = vadd.f32 %v561_v52, %v553_v39  ;;  %v4421_v56 = vpop.eup %4420 }
 0x118   :  { %4442 = vtanh.f32 %v5812_v46  ;;  %v5821_v55 = vadd.f32 %v562_v47, %v554_v57  ;;  %v4423_v26 = vpop.eup %4422  ;;  %v474_v50 = vadd.f32 1.0, %v4421_v56 }
 0x119   :  { %4444 = vtanh.f32 %v5815_v27  ;;  %v5824_v34 = vadd.f32 %v563_v58, %v555_v54  ;;  %v4425_v42 = vpop.eup %4424  ;;  %v475_v59 = vadd.f32 1.0, %v4423_v26 }
 0x11a   :  { %4446 = vtanh.f32 %v5818_v35  ;;  %v4427_v28 = vpop.eup %4426  ;;  %v476_v60 = vadd.f32 1.0, %v4425_v42  ;;  %v482_v61 = vmul.f32 0.5, %v474_v50 }
 0x11b   :  { %4448 = vtanh.f32 %v5821_v55  ;;  %v4429_v63 = vpop.eup %4428  ;;  %v477_v44 = vadd.f32 1.0, %v4427_v28  ;;  %v483_v3 = vmul.f32 0.5, %v475_v59 }
 0x11c   :  { %4450 = vtanh.f32 %v5824_v34  ;;  %v4431_v25 = vpop.eup %4430  ;;  %v478_v51 = vadd.f32 1.0, %v4429_v63  ;;  %v484_v43 = vmul.f32 0.5, %v476_v60 }
 0x11d   :  { %v4433_v24 = vpop.eup %4432  ;;  %v479_v53 = vadd.f32 1.0, %v4431_v25  ;;  %v485_v29 = vmul.f32 0.5, %v477_v44 }
 0x11e   :  { %v480_v32 = vadd.f32 1.0, %v4433_v24  ;;  %v486_v48 = vmul.f32 0.5, %v478_v51 }
 0x11f   :  { %v4435_v49 = vpop.eup %4434  ;;  %v487_v54 = vmul.f32 0.5, %v479_v53 }
 0x120   :  { %v481_v38 = vadd.f32 1.0, %v4435_v49  ;;  %v488_v58 = vmul.f32 0.5, %v480_v32 }
 0x121   :  { %v4437_v45 = vpop.eup %4436 }
 0x122   :  { %v580_v30 = vmul.f32 %v4437_v45, %v482_v61  ;;  %v489_v42 = vmul.f32 0.5, %v481_v38  ;;  %v8206_v38 = vld [vmem:[#allocation28_spill] sm:$0xff] }
 0x123   :  { %v4439_v1 = vpop.eup %4438 }
 0x124   :  { %v4441_v39 = vpop.eup %4440  ;;  %v581_v37 = vmul.f32 %v4439_v1, %v483_v3  ;;  %588 = vst [vmem:[%s7996_s2] sm:$0x1] %v580_v30 }
 0x125   :  { %v4443_v57 = vpop.eup %4442  ;;  %v582_v41 = vmul.f32 %v4441_v39, %v484_v43  ;;  %v8203_v43 = vld [vmem:[#allocation25_spill] sm:$0xff]  ;;  %v8205_v39 = vld [vmem:[#allocation27_spill] sm:$0xff] }
 0x126   :  { %v4445_v0 = vpop.eup %4444  ;;  %v583_v52 = vmul.f32 %v4443_v57, %v485_v29  ;;  %589 = vst [vmem:[%s7996_s2 + $0x8] sm:$0x1] %v581_v37  ;;  %v620_v36 = vcombine.low %v580_v30, %v581_v37  ;;  %v8204_v30 = vld [vmem:[#allocation26_spill] sm:$0xff]  ;;  %v8207_v29 = vld [vmem:[#allocation29_spill] sm:$0xff]  ;;  %v8209_v57 = vld [vmem:[#allocation31_spill] sm:$0xff] }
 0x127   :  { %v4447_v47 = vpop.eup %4446  ;;  %v584_v56 = vmul.f32 %v4445_v0, %v486_v48  ;;  %590 = vst [vmem:[%s7996_s2 + $0x10] sm:$0x1] %v582_v41  ;;  %v8208_v37 = vld [vmem:[#allocation30_spill] sm:$0xff]  ;;  %v8210_v48 = vld [vmem:[#allocation32_spill] sm:$0xff] }
 0x128   :  { %v4449_v26 = vpop.eup %4448  ;;  %v585_v28 = vmul.f32 %v4447_v47, %v487_v54  ;;  %591 = vst [vmem:[%s7996_s2 + $0x18] sm:$0x1] %v583_v52  ;;  %v621_v50 = vcombine.low %v582_v41, %v583_v52  ;;  %v630_v24 = vrot.slane %v620_v36, %v5682_v62  ;;  %v8211_v41 = vld [vmem:[#allocation33_spill] sm:$0xff]  ;;  %v8212_v0 = vld [vmem:[#allocation34_spill] sm:$0xff]  ;;  %v8213_v54 = vld [vmem:[#allocation35_spill] sm:$0xff] }
 0x129   :  { %v4451_v63 = vpop.eup %4450  ;;  %v586_v59 = vmul.f32 %v4449_v26, %v488_v58  ;;  %592 = vst [vmem:[%s7996_s2 + $0x20] sm:$0x1] %v584_v56  ;;  %v8214_v52 = vld [vmem:[#allocation36_spill] sm:$0xff]  ;;  %v8215_v36 = vld [vmem:[#allocation37_spill] sm:$0xff]  ;;  %v8216_v47 = vld [vmem:[#allocation38_spill] sm:$0xff] }
 0x12a   :  { %v587_v25 = vmul.f32 %v4451_v63, %v489_v42  ;;  %593 = vst [vmem:[%s7996_s2 + $0x28] sm:$0x1] %v585_v28  ;;  %v622_v60 = vcombine.low %v584_v56, %v585_v28  ;;  %v637_v44 = vrot.slane %v621_v50, %v5682_v62  ;;  %v8217_v58 = vld [vmem:[#allocation39_spill] sm:$0xff]  ;;  %v8218_v56 = vld [vmem:[#allocation40_spill] sm:$0xff]  ;;  %v8219_v26 = vld [vmem:[#allocation41_spill] sm:$0xff]  ;;  %v8222_v50 = vmov 0.0  }
 0x12b   :  { %594 = vst [vmem:[%s7996_s2 + $0x30] sm:$0x1] %v586_v59  ;;  %v8220_v42 = vld [vmem:[#allocation42_spill] sm:$0xff]  ;;  %v8221_v28 = vld [vmem:[#allocation43_spill] sm:$0xff]  ;;  %v8223_v63 = vld [vmem:[#allocation44_spill] sm:$0xff] }
 0x12c   :  { %595 = vst [vmem:[%s7996_s2 + $0x38] sm:$0x1] %v587_v25  ;;  %v623_v49 = vcombine.low %v586_v59, %v587_v25  ;;  %v652_v51 = vcombine.low %v630_v24, %v637_v44  ;;  %v644_v61 = vrot.slane %v622_v60, %v5682_v62  ;;  %v5926_v59 = vld [vmem:[%s7994_s1 + $0x1e8] sm:$0xff]  ;;  %v5932_v25 = vld [vmem:[%s7994_s1 + $0x1f8] sm:$0xff] }
 0x12e   :  { %v651_v45 = vrot.slane %v623_v49, %v5682_v62  ;;  %v660_v3 = vrot.slane %v652_v51, %v5682_v62 }
 0x130   :  { %v653_v53 = vcombine.low %v644_v61, %v651_v45 }
 0x132   :  { %v667_v1 = vrot.slane %v653_v53, %v5682_v62 }
 0x134   :  { %v668_v32 = vcombine.low %v660_v3, %v667_v1 }
 0x136   :  { %735 = vmatmul.mubr.f32.vlgmr.msra.gmra.mxu0 %v668_v32  ;;  %806 = vmatmul.mubr.f32.vlgmr.msra.gmra.mxu1 %v668_v32 }
 0x137   :  { %1183 = vmatpush1.msra.mxu0 %v5239_v2  ;;  %1254 = vmatpush1.msra.mxu1 %v5248_v4  ;;  %v8182_v2 = vld [vmem:[#allocation4_spill] sm:$0xff]  ;;  %v8183_v4 = vld [vmem:[#allocation5_spill] sm:$0xff] }
 0x138   :  { %1184 = vmatprep.subr.mxu0 %v5253_v5  ;;  %1255 = vmatprep.subr.mxu1 %v5258_v6  ;;  %v8184_v5 = vld [vmem:[#allocation6_spill] sm:$0xff]  ;;  %v8185_v6 = vld [vmem:[#allocation7_spill] sm:$0xff] }
 0x139   :  { %1185 = vmatpush1.msra.mxu0 %v5265_v7  ;;  %1256 = vmatpush1.msra.mxu1 %v5270_v8  ;;  %v8186_v7 = vld [vmem:[#allocation8_spill] sm:$0xff]  ;;  %v8187_v8 = vld [vmem:[#allocation9_spill] sm:$0xff] }
 0x13a   :  { %1186 = vmatprep.subr.mxu0 %v5275_v9  ;;  %1257 = vmatprep.subr.mxu1 %v5282_v10  ;;  %v8188_v9 = vld [vmem:[#allocation10_spill] sm:$0xff]  ;;  %v8189_v10 = vld [vmem:[#allocation11_spill] sm:$0xff] }
 0x13b   :  { %1187 = vmatpush1.msra.mxu0 %v5287_v11  ;;  %1258 = vmatpush1.msra.mxu1 %v5292_v12  ;;  %v8190_v11 = vld [vmem:[#allocation12_spill] sm:$0xff]  ;;  %v8191_v12 = vld [vmem:[#allocation13_spill] sm:$0xff] }
 0x13c   :  { %1188 = vmatprep.subr.mxu0 %v5299_v13  ;;  %1259 = vmatprep.subr.mxu1 %v5304_v14  ;;  %v8192_v13 = vld [vmem:[#allocation14_spill] sm:$0xff]  ;;  %v8193_v14 = vld [vmem:[#allocation15_spill] sm:$0xff] }
 0x13d   :  { %1189 = vmatpush1.msra.mxu0 %v5311_v15  ;;  %1260 = vmatpush1.msra.mxu1 %v5316_v16  ;;  %v8194_v15 = vld [vmem:[#allocation16_spill] sm:$0xff]  ;;  %v8195_v16 = vld [vmem:[#allocation17_spill] sm:$0xff] }
 0x13e   :  { %1190 = vmatprep.subr.mxu0 %v5323_v17  ;;  %1261 = vmatprep.subr.mxu1 %v5328_v18  ;;  %v8196_v17 = vld [vmem:[#allocation18_spill] sm:$0xff]  ;;  %v8197_v18 = vld [vmem:[#allocation19_spill] sm:$0xff] }
 0x13f   :  { %1191 = vmatpush1.msra.mxu0 %v5335_v19  ;;  %1262 = vmatpush1.msra.mxu1 %v5340_v20  ;;  %v8198_v19 = vld [vmem:[#allocation20_spill] sm:$0xff]  ;;  %v8199_v20 = vld [vmem:[#allocation21_spill] sm:$0xff] }
 0x140   :  { %1192 = vmatprep.subr.mxu0 %v5347_v21  ;;  %1263 = vmatprep.subr.mxu1 %v5352_v22  ;;  %v8200_v21 = vld [vmem:[#allocation22_spill] sm:$0xff]  ;;  %v8201_v22 = vld [vmem:[#allocation23_spill] sm:$0xff] }
 0x141   :  { %1193 = vmatpush1.msra.mxu0 %v5359_v23  ;;  %1264 = vmatpush1.msra.mxu1 %v8182_v2  ;;  %v8202_v23 = vld [vmem:[#allocation24_spill] sm:$0xff] }
 0x142   :  { %1194 = vmatprep.subr.mxu0 %v8183_v4  ;;  %1265 = vmatprep.subr.mxu1 %v8184_v5 }
 0x143   :  { %1195 = vmatpush1.msra.mxu0 %v8185_v6  ;;  %1266 = vmatpush1.msra.mxu1 %v8186_v7 }
 0x144   :  { %1196 = vmatprep.subr.mxu0 %v8187_v8  ;;  %1267 = vmatprep.subr.mxu1 %v8188_v9  ;;  %v4314_v8 = vld [vmem:[%s7995_s0 + $0x1] ss:$8 sm:$0xf] }
 0x145   :  { %1197 = vmatpush1.msra.mxu0 %v8189_v10  ;;  %1268 = vmatpush1.msra.mxu1 %v8190_v11  ;;  %v4315_v9 = vld [vmem:[%s7995_s0 + $0x21] ss:$8 sm:$0xf] }
 0x146   :  { %1198 = vmatprep.subr.mxu0 %v8191_v12  ;;  %1269 = vmatprep.subr.mxu1 %v8192_v13  ;;  %v4316_v10 = vld [vmem:[%s7995_s0 + $0x41] ss:$8 sm:$0xf] }
 0x147   :  { %1199 = vmatpush1.msra.mxu0 %v8193_v14  ;;  %1270 = vmatpush1.msra.mxu1 %v8194_v15  ;;  %v4318_v11 = vld [vmem:[%s7995_s0 + $0x81] ss:$8 sm:$0xf] }
 0x148   :  { %1200 = vmatprep.subr.mxu0 %v8195_v16  ;;  %1271 = vmatprep.subr.mxu1 %v8196_v17  ;;  %v4317_v16 = vld [vmem:[%s7995_s0 + $0x61] ss:$8 sm:$0xf] }
 0x149   :  { %1201 = vmatpush1.msra.mxu0 %v8197_v18  ;;  %1272 = vmatpush1.msra.mxu1 %v8198_v19  ;;  %v4319_v17 = vld [vmem:[%s7995_s0 + $0xa1] ss:$8 sm:$0xf] }
 0x14a   :  { %1202 = vmatprep.subr.mxu0 %v8199_v20  ;;  %1273 = vmatprep.subr.mxu1 %v8200_v21  ;;  %v4320_v18 = vld [vmem:[%s7995_s0 + $0xc1] ss:$8 sm:$0xf] }
 0x14b   :  { %1203 = vmatpush1.msra.mxu0 %v8201_v22  ;;  %1274 = vmatpush1.msra.mxu1 %v8202_v23  ;;  %v4321_v23 = vld [vmem:[%s7995_s0 + $0xe1] ss:$8 sm:$0xf] }
 0x14c   :  { %1204 = vmatprep.subr.mxu0 %v8203_v43  ;;  %1275 = vmatprep.subr.mxu1 %v8204_v30 }
 0x14d   :  { %1205 = vmatpush1.msra.mxu0 %v8205_v39  ;;  %1276 = vmatpush1.msra.mxu1 %v8206_v38 }
 0x14e   :  { %1206 = vmatprep.subr.mxu0 %v8207_v29  ;;  %1277 = vmatprep.subr.mxu1 %v8208_v37 }
 0x14f   :  { %1207 = vmatpush1.msra.mxu0 %v8209_v57  ;;  %1278 = vmatpush1.msra.mxu1 %v8210_v48 }
 0x150   :  { %1208 = vmatprep.subr.mxu0 %v8211_v41  ;;  %1279 = vmatprep.subr.mxu1 %v8212_v0 }
 0x151   :  { %1209 = vmatpush1.msra.mxu0 %v8213_v54  ;;  %1280 = vmatpush1.msra.mxu1 %v8214_v52 }
 0x152   :  { %1210 = vmatprep.subr.mxu0 %v8215_v36  ;;  %1281 = vmatprep.subr.mxu1 %v8216_v47 }
 0x153   :  { %1211 = vmatpush1.msra.mxu0 %v8217_v58  ;;  %1282 = vmatpush1.msra.mxu1 %v8218_v56 }
 0x154   :  { %1212 = vmatprep.subr.mxu0 %v8219_v26  ;;  %1283 = vmatprep.subr.mxu1 %v8220_v42 }
 0x155   :  { %1213 = vmatpush1.msra.mxu0 %v8221_v28  ;;  %1246 = vmatprep.mubr.f32.mxu0 %v8222_v50 }
 0x156   :  { %1284 = vmatpush1.msra.mxu1 %v8223_v63  ;;  %1317 = vmatprep.mubr.f32.mxu1 %v8222_v50 }
 0x157   :  { %1694 = vmatprep.subr.mxu0 %v5926_v59  ;;  %1765 = vmatprep.subr.mxu1 %v5932_v25 }
 0x1f6   :  { %v736_v60 = vpop.f32.mrf.mxu0  ;;  %v807_v24 = vpop.f32.mrf.mxu1 }
 0x1f8   :  { %v738_v44 = vpop.f32.mrf.mxu0  ;;  %v809_v49 = vpop.f32.mrf.mxu1 }
 0x1f9   :  { %v816_v51 = vcombine.low %v736_v60, %v738_v44  ;;  %v817_v61 = vcombine.high %v736_v60, %v738_v44  ;;  %v818_v45 = vcombine.low %v807_v24, %v809_v49  ;;  %v819_v53 = vcombine.high %v807_v24, %v809_v49 }
 0x1fb   :  { %v826_v3 = vrot.slane %v816_v51, %v5682_v62  ;;  %v833_v1 = vrot.slane %v817_v61, %v5682_v62  ;;  %v840_v32 = vrot.slane %v818_v45, %v5682_v62  ;;  %v847_v2 = vrot.slane %v819_v53, %v5682_v62 }
 0x1fd   :  { %v848_v4 = vcombine.low %v826_v3, %v840_v32  ;;  %v849_v5 = vcombine.high %v826_v3, %v840_v32  ;;  %v850_v6 = vcombine.low %v833_v1, %v847_v2  ;;  %v851_v7 = vcombine.high %v833_v1, %v847_v2 }
 0x1ff   :  { %v858_v12 = vrot.slane %v848_v4, %v5682_v62  ;;  %v865_v13 = vrot.slane %v850_v6, %v5682_v62  ;;  %v872_v14 = vrot.slane %v849_v5, %v5682_v62  ;;  %v879_v15 = vrot.slane %v851_v7, %v5682_v62 }
 0x201   :  { %v880_v19 = vcombine.high %v858_v12, %v858_v12  ;;  %v881_v20 = vcombine.high %v865_v13, %v865_v13  ;;  %v882_v21 = vcombine.high %v872_v14, %v872_v14  ;;  %v883_v22 = vcombine.high %v879_v15, %v879_v15 }
 0x202   :  { %v5967_v43 = vadd.f32 %v4314_v8, %v858_v12  ;;  %v5969_v30 = vadd.f32 %v4315_v9, %v872_v14  ;;  %v5971_v39 = vadd.f32 %v4318_v11, %v865_v13  ;;  %v5977_v37 = vadd.f32 %v4319_v17, %v879_v15 }
 0x203   :  { %v5973_v38 = vadd.f32 %v4316_v10, %v880_v19  ;;  %v5975_v29 = vadd.f32 %v4317_v16, %v882_v21  ;;  %v5979_v57 = vadd.f32 %v4320_v18, %v881_v20  ;;  %v5983_v0 = vadd.f32 %v4321_v23, %v883_v22 }
 0x204   :  { %v900_v48 = vmul.f32 0.5, %v5967_v43  ;;  %v901_v41 = vmul.f32 0.5, %v5969_v30  ;;  %v904_v36 = vmul.f32 0.5, %v5971_v39  ;;  %v940_v47 = vrot.slane %v5967_v43, 1 }
 0x205   :  { %v902_v54 = vmul.f32 0.5, %v5973_v38  ;;  %v903_v52 = vmul.f32 0.5, %v5975_v29  ;;  %v905_v58 = vmul.f32 0.5, %v5977_v37  ;;  %v941_v56 = vrot.slane %v5969_v30, 1 }
 0x206   :  { %4452 = vtanh.f32 %v900_v48  ;;  %v906_v26 = vmul.f32 0.5, %v5979_v57  ;;  %v942_v42 = vrot.slane %v5973_v38, 1  ;;  %v907_v28 = vmul.f32 0.5, %v5983_v0 }
 0x207   :  { %4454 = vtanh.f32 %v901_v41  ;;  %v943_v63 = vrot.slane %v5975_v29, 1  ;;  %v944_v60 = vrot.slane %v5971_v39, 1  ;;  %v956_v24 = vmul.f32 0.5, %v940_v47 }
 0x208   :  { %4456 = vtanh.f32 %v902_v54  ;;  %v945_v44 = vrot.slane %v5977_v37, 1  ;;  %v957_v49 = vmul.f32 0.5, %v941_v56  ;;  %v946_v51 = vrot.slane %v5979_v57, 1 }
 0x209   :  { %4458 = vtanh.f32 %v903_v52  ;;  %v958_v61 = vmul.f32 0.5, %v942_v42  ;;  %v947_v45 = vrot.slane %v5983_v0, 1  ;;  %v959_v53 = vmul.f32 0.5, %v943_v63 }
 0x20a   :  { %4460 = vtanh.f32 %v904_v36  ;;  %v960_v3 = vmul.f32 0.5, %v944_v60  ;;  %v961_v1 = vmul.f32 0.5, %v945_v44  ;;  %v962_v32 = vmul.f32 0.5, %v946_v51 }
 0x20b   :  { %4462 = vtanh.f32 %v905_v58  ;;  %v963_v2 = vmul.f32 0.5, %v947_v45  ;;  %v988_v4 = vrot.slane %v5967_v43, 2  ;;  %v989_v5 = vrot.slane %v5969_v30, 2 }
 0x20c   :  { %4464 = vtanh.f32 %v906_v26  ;;  %v990_v6 = vrot.slane %v5973_v38, 2  ;;  %v991_v8 = vrot.slane %v5975_v29, 2  ;;  %v1012_v9 = vrot.slane %v5967_v43, 3 }
 0x20d   :  { %4466 = vtanh.f32 %v907_v28  ;;  %v1013_v10 = vrot.slane %v5969_v30, 3  ;;  %v992_v12 = vrot.slane %v5971_v39, 2  ;;  %v1014_v13 = vrot.slane %v5973_v38, 3 }
 0x20e   :  { %4468 = vtanh.f32 %v956_v24  ;;  %v1015_v14 = vrot.slane %v5975_v29, 3  ;;  %v993_v16 = vrot.slane %v5977_v37, 2  ;;  %v1016_v17 = vrot.slane %v5971_v39, 3 }
 0x20f   :  { %4470 = vtanh.f32 %v957_v49  ;;  %v1017_v18 = vrot.slane %v5977_v37, 3  ;;  %v994_v20 = vrot.slane %v5979_v57, 2  ;;  %v995_v21 = vrot.slane %v5983_v0, 2 }
 0x210   :  { %4472 = vtanh.f32 %v958_v61  ;;  %v1018_v22 = vrot.slane %v5979_v57, 3  ;;  %v1019_v43 = vrot.slane %v5983_v0, 3  ;;  %v1028_v30 = vmul.f32 0.5, %v1012_v9 }
 0x211   :  { %4474 = vtanh.f32 %v959_v53  ;;  %v1029_v38 = vmul.f32 0.5, %v1013_v10  ;;  %v1030_v39 = vmul.f32 0.5, %v1014_v13  ;;  %v1031_v41 = vmul.f32 0.5, %v1015_v14 }
 0x212   :  { %4476 = vtanh.f32 %v960_v3  ;;  %v1032_v52 = vmul.f32 0.5, %v1016_v17  ;;  %v1033_v36 = vmul.f32 0.5, %v1017_v18  ;;  %v1034_v57 = vmul.f32 0.5, %v1018_v22 }
 0x213   :  { %v4453_v7 = vpop.eup %4452  ;;  %4478 = vtanh.f32 %v961_v1  ;;  %v1035_v28 = vmul.f32 0.5, %v1019_v43 }
 0x214   :  { %v4455_v11 = vpop.eup %4454  ;;  %4480 = vtanh.f32 %v962_v32  ;;  %v916_v48 = vadd.f32 1.0, %v4453_v7 }
 0x215   :  { %v4457_v15 = vpop.eup %4456  ;;  %4482 = vtanh.f32 %v963_v2  ;;  %v917_v54 = vadd.f32 1.0, %v4455_v11 }
 0x216   :  { %v4459_v19 = vpop.eup %4458  ;;  %4484 = vtanh.f32 %v988_v4  ;;  %v918_v58 = vadd.f32 1.0, %v4457_v15  ;;  %v924_v24 = vmul.f32 0.5, %v916_v48 }
 0x217   :  { %v4461_v23 = vpop.eup %4460  ;;  %4486 = vtanh.f32 %v989_v5  ;;  %v919_v56 = vadd.f32 1.0, %v4459_v19  ;;  %v925_v61 = vmul.f32 0.5, %v917_v54 }
 0x218   :  { %v4463_v29 = vpop.eup %4462  ;;  %4488 = vtanh.f32 %v990_v6  ;;  %v920_v42 = vadd.f32 1.0, %v4461_v23  ;;  %v926_v3 = vmul.f32 0.5, %v918_v58 }
 0x219   :  { %v4465_v37 = vpop.eup %4464  ;;  %4490 = vtanh.f32 %v991_v8  ;;  %v921_v0 = vadd.f32 1.0, %v4463_v29  ;;  %v927_v1 = vmul.f32 0.5, %v919_v56 }
 0x21a   :  { %v4467_v47 = vpop.eup %4466  ;;  %4492 = vtanh.f32 %v992_v12  ;;  %v922_v60 = vadd.f32 1.0, %v4465_v37  ;;  %v928_v5 = vmul.f32 0.5, %v920_v42 }
 0x21b   :  { %v4469_v26 = vpop.eup %4468  ;;  %4494 = vtanh.f32 %v993_v16  ;;  %v923_v51 = vadd.f32 1.0, %v4467_v47  ;;  %v929_v6 = vmul.f32 0.5, %v921_v0 }
 0x21c   :  { %v4471_v63 = vpop.eup %4470  ;;  %v972_v44 = vadd.f32 1.0, %v4469_v26  ;;  %4496 = vtanh.f32 %v994_v20  ;;  %v930_v10 = vmul.f32 0.5, %v922_v60 }
 0x21d   :  { %v4473_v49 = vpop.eup %4472  ;;  %v973_v45 = vadd.f32 1.0, %v4471_v63  ;;  %4498 = vtanh.f32 %v995_v21  ;;  %v931_v14 = vmul.f32 0.5, %v923_v51 }
 0x21e   :  { %v4475_v53 = vpop.eup %4474  ;;  %v974_v32 = vadd.f32 1.0, %v4473_v49  ;;  %v980_v2 = vmul.f32 0.5, %v972_v44  ;;  %4500 = vtanh.f32 %v1028_v30 }
 0x21f   :  { %v4477_v4 = vpop.eup %4476  ;;  %v975_v7 = vadd.f32 1.0, %v4475_v53  ;;  %v981_v8 = vmul.f32 0.5, %v973_v45  ;;  %4502 = vtanh.f32 %v1029_v38 }
 0x220   :  { %v4479_v9 = vpop.eup %4478  ;;  %v976_v11 = vadd.f32 1.0, %v4477_v4  ;;  %v982_v12 = vmul.f32 0.5, %v974_v32  ;;  %4504 = vtanh.f32 %v1030_v39  ;;  %v1060_v20 = vmul.f32 %v980_v2, %v5798_v33 }
 0x221   :  { %v4481_v13 = vpop.eup %4480  ;;  %v977_v15 = vadd.f32 1.0, %v4479_v9  ;;  %v983_v16 = vmul.f32 0.5, %v975_v7  ;;  %4506 = vtanh.f32 %v1031_v41  ;;  %v1061_v43 = vmul.f32 %v981_v8, %v5801_v40 }
 0x222   :  { %v4483_v17 = vpop.eup %4482  ;;  %v978_v18 = vadd.f32 1.0, %v4481_v13  ;;  %v984_v19 = vmul.f32 0.5, %v976_v11  ;;  %4508 = vtanh.f32 %v1032_v52  ;;  %v1062_v30 = vmul.f32 %v982_v12, %v5806_v31 }
 0x223   :  { %v4485_v21 = vpop.eup %4484  ;;  %v979_v22 = vadd.f32 1.0, %v4483_v17  ;;  %v985_v23 = vmul.f32 0.5, %v977_v15  ;;  %4510 = vtanh.f32 %v1033_v36  ;;  %v1063_v47 = vmul.f32 %v983_v16, %v5812_v46 }
 0x224   :  { %v4487_v29 = vpop.eup %4486  ;;  %v986_v48 = vmul.f32 0.5, %v978_v18  ;;  %v1068_v37 = vmul.f32 %v4485_v21, %v924_v24  ;;  %4512 = vtanh.f32 %v1034_v57  ;;  %v1064_v33 = vmul.f32 %v984_v19, %v5815_v27 }
 0x225   :  { %v4489_v54 = vpop.eup %4488  ;;  %v987_v38 = vmul.f32 0.5, %v979_v22  ;;  %v1069_v39 = vmul.f32 %v4487_v29, %v925_v61  ;;  %4514 = vtanh.f32 %v1035_v28  ;;  %v1065_v52 = vmul.f32 %v985_v23, %v5818_v35 }
 0x226   :  { %v4491_v58 = vpop.eup %4490  ;;  %v1070_v56 = vmul.f32 %v4489_v54, %v926_v3  ;;  %v6020_v41 = vadd.f32 %v1068_v37, %v1060_v20  ;;  %v1066_v36 = vmul.f32 %v986_v48, %v5821_v55 }
 0x227   :  { %v4493_v40 = vpop.eup %4492  ;;  %v1071_v26 = vmul.f32 %v4491_v58, %v927_v1  ;;  %v6023_v31 = vadd.f32 %v1069_v39, %v1061_v43  ;;  %v1067_v27 = vmul.f32 %v987_v38, %v5824_v34 }
 0x228   :  { %v4495_v42 = vpop.eup %4494  ;;  %v1072_v0 = vmul.f32 %v4493_v40, %v928_v5  ;;  %v6026_v46 = vadd.f32 %v1070_v56, %v1062_v30  ;;  %4516 = vtanh.f32 %v6020_v41 }
 0x229   :  { %v4497_v57 = vpop.eup %4496  ;;  %v1073_v63 = vmul.f32 %v4495_v42, %v929_v6  ;;  %v6030_v60 = vadd.f32 %v1071_v26, %v1063_v47  ;;  %4518 = vtanh.f32 %v6023_v31 }
 0x22a   :  { %v4499_v35 = vpop.eup %4498  ;;  %v1074_v28 = vmul.f32 %v4497_v57, %v930_v10  ;;  %v6033_v24 = vadd.f32 %v1072_v0, %v1064_v33  ;;  %4520 = vtanh.f32 %v6026_v46 }
 0x22b   :  { %v1075_v55 = vmul.f32 %v4499_v35, %v931_v14  ;;  %v6036_v44 = vadd.f32 %v1073_v63, %v1065_v52  ;;  %4522 = vtanh.f32 %v6030_v60  ;;  %v4501_v34 = vpop.eup %4500 }
 0x22c   :  { %v6039_v49 = vadd.f32 %v1074_v28, %v1066_v36  ;;  %4524 = vtanh.f32 %v6033_v24  ;;  %v4503_v61 = vpop.eup %4502  ;;  %v1044_v3 = vadd.f32 1.0, %v4501_v34 }
 0x22d   :  { %v6042_v51 = vadd.f32 %v1075_v55, %v1067_v27  ;;  %4526 = vtanh.f32 %v6036_v44  ;;  %v4505_v45 = vpop.eup %4504  ;;  %v1045_v32 = vadd.f32 1.0, %v4503_v61  ;;  %v6080_v61 = vld [vmem:[%s7994_s1 + $0x1e0] sm:$0xff] }
 0x22e   :  { %4528 = vtanh.f32 %v6039_v49  ;;  %v4507_v53 = vpop.eup %4506  ;;  %v1046_v4 = vadd.f32 1.0, %v4505_v45  ;;  %v1052_v9 = vmul.f32 0.5, %v1044_v3  ;;  %v6086_v45 = vld [vmem:[%s7994_s1 + $0x1f0] sm:$0xff]  ;;  %v6098_v3 = vld [vmem:[%s7994_s1 + $0x1d8] sm:$0xff] }
 0x22f   :  { %4530 = vtanh.f32 %v6042_v51  ;;  %v4509_v1 = vpop.eup %4508  ;;  %v1047_v6 = vadd.f32 1.0, %v4507_v53  ;;  %v1053_v12 = vmul.f32 0.5, %v1045_v32  ;;  %v6092_v53 = vld [vmem:[%s7994_s1 + $0x1c8] sm:$0xff]  ;;  %v6110_v32 = vld [vmem:[%s7994_s1 + $0x1d0] sm:$0xff] }
 0x230   :  { %v4511_v2 = vpop.eup %4510  ;;  %v1048_v8 = vadd.f32 1.0, %v4509_v1  ;;  %v1054_v15 = vmul.f32 0.5, %v1046_v4  ;;  %v6104_v1 = vld [vmem:[%s7994_s1 + $0x1c0] sm:$0xff]  ;;  %v6122_v4 = vld [vmem:[%s7994_s1 + $0x1b8] sm:$0xff] }
 0x231   :  { %v4513_v5 = vpop.eup %4512  ;;  %v1049_v11 = vadd.f32 1.0, %v4511_v2  ;;  %v1055_v19 = vmul.f32 0.5, %v1047_v6  ;;  %v6116_v2 = vld [vmem:[%s7994_s1 + $0x1a8] sm:$0xff]  ;;  %v6134_v6 = vld [vmem:[%s7994_s1 + $0x1b0] sm:$0xff] }
 0x232   :  { %v4515_v7 = vpop.eup %4514  ;;  %v1050_v14 = vadd.f32 1.0, %v4513_v5  ;;  %v1056_v22 = vmul.f32 0.5, %v1048_v8  ;;  %v6128_v5 = vld [vmem:[%s7994_s1 + $0x1a0] sm:$0xff]  ;;  %v6146_v8 = vld [vmem:[%s7994_s1 + $0x198] sm:$0xff] }
 0x233   :  { %v1051_v18 = vadd.f32 1.0, %v4515_v7  ;;  %v1057_v29 = vmul.f32 0.5, %v1049_v11  ;;  %v6140_v7 = vld [vmem:[%s7994_s1 + $0x188] sm:$0xff] }
 0x234   :  { %v1058_v54 = vmul.f32 0.5, %v1050_v14  ;;  %v6164_v11 = vld [vmem:[%s7994_s1 + $0x168] sm:$0xff]  ;;  %v6182_v14 = vld [vmem:[%s7994_s1 + $0x170] sm:$0xff] }
 0x235   :  { %v4517_v10 = vpop.eup %4516  ;;  %v1059_v39 = vmul.f32 0.5, %v1051_v18  ;;  %8224 = vst [vmem:[#allocation4_spill] sm:$0xff] %v6182_v14  ;;  %v6206_v18 = vld [vmem:[%s7994_s1 + $0x150] sm:$0xff] }
 0x236   :  { %v4519_v13 = vpop.eup %4518  ;;  %v1092_v16 = vmul.f32 %v4517_v10, %v1052_v9  ;;  %v6152_v9 = vld [vmem:[%s7994_s1 + $0x180] sm:$0xff]  ;;  %v6158_v10 = vld [vmem:[%s7994_s1 + $0x190] sm:$0xff]  ;;  %8228 = vst [vmem:[#allocation8_spill] sm:$0xff] %v6206_v18 }
 0x237   :  { %v4521_v17 = vpop.eup %4520  ;;  %v1093_v20 = vmul.f32 %v4519_v13, %v1053_v12  ;;  %v6170_v12 = vld [vmem:[%s7994_s1 + $0x178] sm:$0xff]  ;;  %v6176_v13 = vld [vmem:[%s7994_s1 + $0x160] sm:$0xff] }
 0x238   :  { %v4523_v21 = vpop.eup %4522  ;;  %v1094_v23 = vmul.f32 %v4521_v17, %v1054_v15  ;;  %1100 = vst [vmem:[%s7996_s2 + $0x1] sm:$0x1] %v1092_v16  ;;  %v6188_v15 = vld [vmem:[%s7994_s1 + $0x148] sm:$0xff]  ;;  %v6200_v17 = vld [vmem:[%s7994_s1 + $0x140] sm:$0xff] }
 0x239   :  { %v4525_v43 = vpop.eup %4524  ;;  %v1095_v48 = vmul.f32 %v4523_v21, %v1055_v19  ;;  %1101 = vst [vmem:[%s7996_s2 + $0x9] sm:$0x1] %v1093_v20  ;;  %v1132_v30 = vcombine.low %v1092_v16, %v1093_v20  ;;  %8225 = vst [vmem:[#allocation5_spill] sm:$0xff] %v6188_v15  ;;  %v6194_v16 = vld [vmem:[%s7994_s1 + $0x158] sm:$0xff]  ;;  %v6212_v19 = vld [vmem:[%s7994_s1 + $0x128] sm:$0xff] }
 0x23a   :  { %v4527_v37 = vpop.eup %4526  ;;  %v1096_v38 = vmul.f32 %v4525_v43, %v1056_v22  ;;  %1102 = vst [vmem:[%s7996_s2 + $0x11] sm:$0x1] %v1094_v23  ;;  %8226 = vst [vmem:[#allocation6_spill] sm:$0xff] %v6194_v16  ;;  %v6218_v20 = vld [vmem:[%s7994_s1 + $0x138] sm:$0xff]  ;;  %v6224_v21 = vld [vmem:[%s7994_s1 + $0x120] sm:$0xff] }
 0x23b   :  { %v4529_v47 = vpop.eup %4528  ;;  %v1097_v58 = vmul.f32 %v4527_v37, %v1057_v29  ;;  %1103 = vst [vmem:[%s7996_s2 + $0x19] sm:$0x1] %v1095_v48  ;;  %v1133_v33 = vcombine.low %v1094_v23, %v1095_v48  ;;  %v1142_v42 = vrot.slane %v1132_v30, %v5682_v62  ;;  %8227 = vst [vmem:[#allocation7_spill] sm:$0xff] %v6200_v17  ;;  %v6230_v22 = vld [vmem:[%s7994_s1 + $0x130] sm:$0xff]  ;;  %v6236_v23 = vld [vmem:[%s7994_s1 + $0x108] sm:$0xff] }
 0x23c   :  { %v4531_v56 = vpop.eup %4530  ;;  %v1098_v40 = vmul.f32 %v4529_v47, %v1058_v54  ;;  %1104 = vst [vmem:[%s7996_s2 + $0x21] sm:$0x1] %v1096_v38  ;;  %8229 = vst [vmem:[#allocation9_spill] sm:$0xff] %v6212_v19  ;;  %v6242_v43 = vld [vmem:[%s7994_s1 + $0x118] sm:$0xff]  ;;  %v6248_v29 = vld [vmem:[%s7994_s1 + $0x100] sm:$0xff] }
 0x23d   :  { %v1099_v52 = vmul.f32 %v4531_v56, %v1059_v39  ;;  %1105 = vst [vmem:[%s7996_s2 + $0x29] sm:$0x1] %v1097_v58  ;;  %v1134_v26 = vcombine.low %v1096_v38, %v1097_v58  ;;  %v1149_v36 = vrot.slane %v1133_v33, %v5682_v62  ;;  %8230 = vst [vmem:[#allocation10_spill] sm:$0xff] %v6218_v20  ;;  %v6254_v48 = vld [vmem:[%s7994_s1 + $0x110] sm:$0xff]  ;;  %v6260_v30 = vld [vmem:[%s7994_s1 + $0xe8] sm:$0xff] }
 0x23e   :  { %1106 = vst [vmem:[%s7996_s2 + $0x31] sm:$0x1] %v1098_v40  ;;  %8231 = vst [vmem:[#allocation11_spill] sm:$0xff] %v6224_v21  ;;  %v6266_v37 = vld [vmem:[%s7994_s1 + $0xf8] sm:$0xff]  ;;  %v6272_v54 = vld [vmem:[%s7994_s1 + $0xe0] sm:$0xff] }
 0x23f   :  { %1107 = vst [vmem:[%s7996_s2 + $0x39] sm:$0x1] %v1099_v52  ;;  %v1135_v0 = vcombine.low %v1098_v40, %v1099_v52  ;;  %v1164_v57 = vcombine.low %v1142_v42, %v1149_v36  ;;  %v1156_v27 = vrot.slane %v1134_v26, %v5682_v62  ;;  %8232 = vst [vmem:[#allocation12_spill] sm:$0xff] %v6230_v22  ;;  %v6278_v38 = vld [vmem:[%s7994_s1 + $0xf0] sm:$0xff]  ;;  %v6284_v47 = vld [vmem:[%s7994_s1 + $0xc8] sm:$0xff] }
 0x240   :  { %8233 = vst [vmem:[#allocation13_spill] sm:$0xff] %v6236_v23  ;;  %8234 = vst [vmem:[#allocation14_spill] sm:$0xff] %v6242_v43  ;;  %v6290_v39 = vld [vmem:[%s7994_s1 + $0xd8] sm:$0xff]  ;;  %v6296_v58 = vld [vmem:[%s7994_s1 + $0xc0] sm:$0xff] }
 0x241   :  { %v1163_v63 = vrot.slane %v1135_v0, %v5682_v62  ;;  %v1172_v28 = vrot.slane %v1164_v57, %v5682_v62  ;;  %8235 = vst [vmem:[#allocation15_spill] sm:$0xff] %v6248_v29  ;;  %8236 = vst [vmem:[#allocation16_spill] sm:$0xff] %v6254_v48  ;;  %v6302_v33 = vld [vmem:[%s7994_s1 + $0xd0] sm:$0xff]  ;;  %v6308_v56 = vld [vmem:[%s7994_s1 + $0xa8] sm:$0xff] }
 0x242   :  { %8237 = vst [vmem:[#allocation17_spill] sm:$0xff] %v6260_v30  ;;  %8238 = vst [vmem:[#allocation18_spill] sm:$0xff] %v6266_v37  ;;  %v6314_v40 = vld [vmem:[%s7994_s1 + $0xb8] sm:$0xff]  ;;  %v6320_v52 = vld [vmem:[%s7994_s1 + $0xa0] sm:$0xff] }
 0x243   :  { %v1165_v35 = vcombine.low %v1156_v27, %v1163_v63  ;;  %8239 = vst [vmem:[#allocation19_spill] sm:$0xff] %v6272_v54  ;;  %8240 = vst [vmem:[#allocation20_spill] sm:$0xff] %v6278_v38  ;;  %v6326_v26 = vld [vmem:[%s7994_s1 + $0xb0] sm:$0xff]  ;;  %v6332_v42 = vld [vmem:[%s7994_s1 + $0x88] sm:$0xff] }
 0x244   :  { %8241 = vst [vmem:[#allocation21_spill] sm:$0xff] %v6284_v47  ;;  %8242 = vst [vmem:[#allocation22_spill] sm:$0xff] %v6290_v39  ;;  %v6338_v36 = vld [vmem:[%s7994_s1 + $0x98] sm:$0xff]  ;;  %v6344_v0 = vld [vmem:[%s7994_s1 + $0x80] sm:$0xff] }
 0x245   :  { %v1179_v55 = vrot.slane %v1165_v35, %v5682_v62  ;;  %8243 = vst [vmem:[#allocation23_spill] sm:$0xff] %v6296_v58  ;;  %8244 = vst [vmem:[#allocation24_spill] sm:$0xff] %v6302_v33  ;;  %v6350_v57 = vld [vmem:[%s7994_s1 + $0x90] sm:$0xff]  ;;  %v6356_v27 = vld [vmem:[%s7994_s1 + $0x68] sm:$0xff] }
 0x246   :  { %8245 = vst [vmem:[#allocation25_spill] sm:$0xff] %v6308_v56  ;;  %8246 = vst [vmem:[#allocation26_spill] sm:$0xff] %v6314_v40  ;;  %v6362_v63 = vld [vmem:[%s7994_s1 + $0x78] sm:$0xff]  ;;  %v6368_v35 = vld [vmem:[%s7994_s1 + $0x60] sm:$0xff] }
 0x247   :  { %v1180_v34 = vcombine.low %v1172_v28, %v1179_v55  ;;  %8247 = vst [vmem:[#allocation27_spill] sm:$0xff] %v6320_v52  ;;  %8248 = vst [vmem:[#allocation28_spill] sm:$0xff] %v6326_v26  ;;  %v6374_v28 = vld [vmem:[%s7994_s1 + $0x70] sm:$0xff]  ;;  %v6380_v55 = vld [vmem:[%s7994_s1 + $0x48] sm:$0xff] }
 0x248   :  { %8249 = vst [vmem:[#allocation29_spill] sm:$0xff] %v6332_v42  ;;  %8250 = vst [vmem:[#allocation30_spill] sm:$0xff] %v6338_v36 }
 0x249   :  { %1247 = vmatmul.mubr.f32.vlgmr.msra.gmra.mxu0 %v1180_v34  ;;  %1318 = vmatmul.mubr.f32.vlgmr.msra.gmra.mxu1 %v1180_v34  ;;  %8251 = vst [vmem:[#allocation31_spill] sm:$0xff] %v6344_v0  ;;  %8252 = vst [vmem:[#allocation32_spill] sm:$0xff] %v6350_v57  ;;  %v6386_v34 = vld [vmem:[%s7994_s1 + $0x58] sm:$0xff] }
 0x24a   :  { %1695 = vmatpush1.msra.mxu0 %v6080_v61  ;;  %1766 = vmatpush1.msra.mxu1 %v6086_v45  ;;  %8253 = vst [vmem:[#allocation33_spill] sm:$0xff] %v6356_v27  ;;  %8254 = vst [vmem:[#allocation34_spill] sm:$0xff] %v6362_v63 }
 0x24b   :  { %1696 = vmatprep.subr.mxu0 %v6092_v53  ;;  %1767 = vmatprep.subr.mxu1 %v6098_v3  ;;  %8255 = vst [vmem:[#allocation35_spill] sm:$0xff] %v6368_v35  ;;  %8256 = vst [vmem:[#allocation36_spill] sm:$0xff] %v6374_v28 }
 0x24c   :  { %1697 = vmatpush1.msra.mxu0 %v6104_v1  ;;  %1768 = vmatpush1.msra.mxu1 %v6110_v32  ;;  %8257 = vst [vmem:[#allocation37_spill] sm:$0xff] %v6380_v55  ;;  %8258 = vst [vmem:[#allocation38_spill] sm:$0xff] %v6386_v34 }
 0x24d   :  { %1698 = vmatprep.subr.mxu0 %v6116_v2  ;;  %1769 = vmatprep.subr.mxu1 %v6122_v4 }
 0x24e   :  { %1699 = vmatpush1.msra.mxu0 %v6128_v5  ;;  %1770 = vmatpush1.msra.mxu1 %v6134_v6 }
 0x24f   :  { %1700 = vmatprep.subr.mxu0 %v6140_v7  ;;  %1771 = vmatprep.subr.mxu1 %v6146_v8 }
 0x250   :  { %1701 = vmatpush1.msra.mxu0 %v6152_v9  ;;  %1772 = vmatpush1.msra.mxu1 %v6158_v10 }
 0x251   :  { %1702 = vmatprep.subr.mxu0 %v6164_v11  ;;  %1773 = vmatprep.subr.mxu1 %v6170_v12 }
 0x252   :  { %1703 = vmatpush1.msra.mxu0 %v6176_v13  ;;  %1774 = vmatpush1.msra.mxu1 %v6182_v14 }
 0x253   :  { %1704 = vmatprep.subr.mxu0 %v6188_v15  ;;  %1775 = vmatprep.subr.mxu1 %v6194_v16 }
 0x254   :  { %1705 = vmatpush1.msra.mxu0 %v6200_v17  ;;  %1776 = vmatpush1.msra.mxu1 %v6206_v18 }
 0x255   :  { %1706 = vmatprep.subr.mxu0 %v6212_v19  ;;  %1777 = vmatprep.subr.mxu1 %v6218_v20 }
 0x256   :  { %1707 = vmatpush1.msra.mxu0 %v6224_v21  ;;  %1778 = vmatpush1.msra.mxu1 %v6230_v22 }
 0x257   :  { %1708 = vmatprep.subr.mxu0 %v6236_v23  ;;  %1779 = vmatprep.subr.mxu1 %v6242_v43 }
 0x258   :  { %1709 = vmatpush1.msra.mxu0 %v6248_v29  ;;  %1780 = vmatpush1.msra.mxu1 %v6254_v48 }
 0x259   :  { %1710 = vmatprep.subr.mxu0 %v6260_v30  ;;  %1781 = vmatprep.subr.mxu1 %v6266_v37 }
 0x25a   :  { %1711 = vmatpush1.msra.mxu0 %v6272_v54  ;;  %1782 = vmatpush1.msra.mxu1 %v6278_v38 }
 0x25b   :  { %1712 = vmatprep.subr.mxu0 %v6284_v47  ;;  %1783 = vmatprep.subr.mxu1 %v6290_v39 }
 0x25c   :  { %1713 = vmatpush1.msra.mxu0 %v6296_v58  ;;  %1784 = vmatpush1.msra.mxu1 %v6302_v33 }
 0x25d   :  { %1714 = vmatprep.subr.mxu0 %v6308_v56  ;;  %1785 = vmatprep.subr.mxu1 %v6314_v40  ;;  %v4322_v56 = vld [vmem:[%s7995_s0 + $0x2] ss:$8 sm:$0xf] }
 0x25e   :  { %1715 = vmatpush1.msra.mxu0 %v6320_v52  ;;  %1786 = vmatpush1.msra.mxu1 %v6326_v26 }
 0x25f   :  { %1716 = vmatprep.subr.mxu0 %v6332_v42  ;;  %1787 = vmatprep.subr.mxu1 %v6338_v36 }
 0x260   :  { %1717 = vmatpush1.msra.mxu0 %v6344_v0  ;;  %1788 = vmatpush1.msra.mxu1 %v6350_v57 }
 0x261   :  { %1718 = vmatprep.subr.mxu0 %v6356_v27  ;;  %1789 = vmatprep.subr.mxu1 %v6362_v63 }
 0x262   :  { %1719 = vmatpush1.msra.mxu0 %v6368_v35  ;;  %1790 = vmatpush1.msra.mxu1 %v6374_v28  ;;  %v6392_v35 = vld [vmem:[%s7994_s1 + $0x40] sm:$0xff]  ;;  %v6398_v28 = vld [vmem:[%s7994_s1 + $0x50] sm:$0xff] }
 0x263   :  { %1720 = vmatprep.subr.mxu0 %v6380_v55  ;;  %1791 = vmatprep.subr.mxu1 %v6386_v34  ;;  %8259 = vst [vmem:[#allocation39_spill] sm:$0xff] %v6392_v35  ;;  %8260 = vst [vmem:[#allocation40_spill] sm:$0xff] %v6398_v28  ;;  %v6404_v55 = vld [vmem:[%s7994_s1 + $0x28] sm:$0xff]  ;;  %v6410_v34 = vld [vmem:[%s7994_s1 + $0x38] sm:$0xff] }
 0x264   :  { %1721 = vmatpush1.msra.mxu0 %v6392_v35  ;;  %1792 = vmatpush1.msra.mxu1 %v6398_v28  ;;  %8261 = vst [vmem:[#allocation41_spill] sm:$0xff] %v6404_v55  ;;  %8262 = vst [vmem:[#allocation42_spill] sm:$0xff] %v6410_v34  ;;  %v6416_v35 = vld [vmem:[%s7994_s1 + $0x20] sm:$0xff]  ;;  %v6422_v28 = vld [vmem:[%s7994_s1 + $0x30] sm:$0xff] }
 0x265   :  { %1722 = vmatprep.subr.mxu0 %v6404_v55  ;;  %1793 = vmatprep.subr.mxu1 %v6410_v34  ;;  %8263 = vst [vmem:[#allocation43_spill] sm:$0xff] %v6416_v35  ;;  %8264 = vst [vmem:[#allocation44_spill] sm:$0xff] %v6422_v28  ;;  %v6428_v55 = vld [vmem:[%s7994_s1 + $0x8] sm:$0xff]  ;;  %v6434_v34 = vld [vmem:[%s7994_s1 + $0x18] sm:$0xff] }
 0x266   :  { %1723 = vmatpush1.msra.mxu0 %v6416_v35  ;;  %1794 = vmatpush1.msra.mxu1 %v6422_v28  ;;  %8265 = vst [vmem:[#allocation45_spill] sm:$0xff] %v6428_v55  ;;  %8266 = vst [vmem:[#allocation46_spill] sm:$0xff] %v6434_v34  ;;  %v6440_v35 = vld [vmem:[%s7994_s1] sm:$0xff] }
 0x267   :  { %1724 = vmatprep.subr.mxu0 %v6428_v55  ;;  %1795 = vmatprep.subr.mxu1 %v6434_v34  ;;  %8267 = vst [vmem:[#allocation47_spill] sm:$0xff] %v6440_v35  ;;  %v6447_v55 = vld [vmem:[%s7994_s1 + $0x10] sm:$0xff] }
 0x268   :  { %1725 = vmatpush1.msra.mxu0 %v6440_v35  ;;  %1758 = vmatprep.mubr.f32.mxu0 %v8222_v50  ;;  %8268 = vst [vmem:[#allocation48_spill] sm:$0xff] %v6447_v55 }
 0x269   :  { %1796 = vmatpush1.msra.mxu1 %v6447_v55  ;;  %1829 = vmatprep.mubr.f32.mxu1 %v8222_v50 }
 0x26a   :  { %2206 = vmatprep.subr.mxu0 %v5926_v59  ;;  %2277 = vmatprep.subr.mxu1 %v5932_v25 }
 0x309   :  { %v1248_v34 = vpop.f32.mrf.mxu0  ;;  %v1319_v28 = vpop.f32.mrf.mxu1 }
 0x30b   :  { %v1250_v63 = vpop.f32.mrf.mxu0  ;;  %v1321_v27 = vpop.f32.mrf.mxu1 }
 0x30c   :  { %v1328_v35 = vcombine.low %v1248_v34, %v1250_v63  ;;  %v1329_v57 = vcombine.high %v1248_v34, %v1250_v63  ;;  %v1330_v0 = vcombine.low %v1319_v28, %v1321_v27  ;;  %v1331_v36 = vcombine.high %v1319_v28, %v1321_v27  ;;  %v4323_v27 = vld [vmem:[%s7995_s0 + $0x22] ss:$8 sm:$0xf] }
 0x30d   :  { %v4325_v63 = vld [vmem:[%s7995_s0 + $0x62] ss:$8 sm:$0xf] }
 0x30e   :  { %v1338_v42 = vrot.slane %v1328_v35, %v5682_v62  ;;  %v1345_v26 = vrot.slane %v1329_v57, %v5682_v62  ;;  %v1352_v55 = vrot.slane %v1330_v0, %v5682_v62  ;;  %v1359_v50 = vrot.slane %v1331_v36, %v5682_v62  ;;  %v4324_v57 = vld [vmem:[%s7995_s0 + $0x42] ss:$8 sm:$0xf] }
 0x30f   :  { %v4326_v36 = vld [vmem:[%s7995_s0 + $0x82] ss:$8 sm:$0xf] }
 0x310   :  { %v1360_v52 = vcombine.low %v1338_v42, %v1352_v55  ;;  %v1361_v59 = vcombine.high %v1338_v42, %v1352_v55  ;;  %v1362_v40 = vcombine.low %v1345_v26, %v1359_v50  ;;  %v1363_v25 = vcombine.high %v1345_v26, %v1359_v50  ;;  %v4327_v35 = vld [vmem:[%s7995_s0 + $0xa2] ss:$8 sm:$0xf] }
 0x311   :  { %v4328_v28 = vld [vmem:[%s7995_s0 + $0xc2] ss:$8 sm:$0xf] }
 0x312   :  { %v1370_v42 = vrot.slane %v1360_v52, %v5682_v62  ;;  %v1377_v50 = vrot.slane %v1362_v40, %v5682_v62  ;;  %v1384_v26 = vrot.slane %v1361_v59, %v5682_v62  ;;  %v1391_v0 = vrot.slane %v1363_v25, %v5682_v62  ;;  %v4329_v59 = vld [vmem:[%s7995_s0 + $0xe2] ss:$8 sm:$0xf] }
 0x314   :  { %v1392_v55 = vcombine.high %v1370_v42, %v1370_v42  ;;  %v1393_v52 = vcombine.high %v1377_v50, %v1377_v50  ;;  %v1394_v34 = vcombine.high %v1384_v26, %v1384_v26  ;;  %v1395_v40 = vcombine.high %v1391_v0, %v1391_v0 }
 0x315   :  { %v6485_v25 = vadd.f32 %v4322_v56, %v1370_v42  ;;  %v6487_v33 = vadd.f32 %v4323_v27, %v1384_v26  ;;  %v6489_v58 = vadd.f32 %v4326_v36, %v1377_v50  ;;  %v6495_v38 = vadd.f32 %v4327_v35, %v1391_v0 }
 0x316   :  { %v6491_v39 = vadd.f32 %v4324_v57, %v1392_v55  ;;  %v6493_v47 = vadd.f32 %v4325_v63, %v1394_v34  ;;  %v6497_v54 = vadd.f32 %v4328_v28, %v1393_v52  ;;  %v6501_v48 = vadd.f32 %v4329_v59, %v1395_v40 }
 0x317   :  { %v1412_v37 = vmul.f32 0.5, %v6485_v25  ;;  %v1413_v30 = vmul.f32 0.5, %v6487_v33  ;;  %v1416_v36 = vmul.f32 0.5, %v6489_v58  ;;  %v1452_v57 = vrot.slane %v6485_v25, 1 }
 0x318   :  { %v1414_v56 = vmul.f32 0.5, %v6491_v39  ;;  %v1415_v27 = vmul.f32 0.5, %v6493_v47  ;;  %v1417_v42 = vmul.f32 0.5, %v6495_v38  ;;  %v1453_v50 = vrot.slane %v6487_v33, 1 }
 0x319   :  { %4532 = vtanh.f32 %v1412_v37  ;;  %v1418_v26 = vmul.f32 0.5, %v6497_v54  ;;  %v1454_v0 = vrot.slane %v6491_v39, 1  ;;  %v1419_v63 = vmul.f32 0.5, %v6501_v48 }
 0x31a   :  { %4534 = vtanh.f32 %v1413_v30  ;;  %v1455_v35 = vrot.slane %v6493_v47, 1  ;;  %v1456_v37 = vrot.slane %v6489_v58, 1  ;;  %v1468_v28 = vmul.f32 0.5, %v1452_v57 }
 0x31b   :  { %4536 = vtanh.f32 %v1414_v56  ;;  %v1457_v55 = vrot.slane %v6495_v38, 1  ;;  %v1469_v30 = vmul.f32 0.5, %v1453_v50  ;;  %v1458_v52 = vrot.slane %v6497_v54, 1 }
 0x31c   :  { %4538 = vtanh.f32 %v1415_v27  ;;  %v1470_v34 = vmul.f32 0.5, %v1454_v0  ;;  %v1459_v40 = vrot.slane %v6501_v48, 1  ;;  %v1471_v59 = vmul.f32 0.5, %v1455_v35 }
 0x31d   :  { %4540 = vtanh.f32 %v1416_v36  ;;  %v1472_v56 = vmul.f32 0.5, %v1456_v37  ;;  %v1473_v27 = vmul.f32 0.5, %v1457_v55  ;;  %v1474_v36 = vmul.f32 0.5, %v1458_v52 }
 0x31e   :  { %4542 = vtanh.f32 %v1417_v42  ;;  %v1475_v29 = vmul.f32 0.5, %v1459_v40  ;;  %v1500_v57 = vrot.slane %v6485_v25, 2  ;;  %v1501_v42 = vrot.slane %v6487_v33, 2 }
 0x31f   :  { %4544 = vtanh.f32 %v1418_v26  ;;  %v1502_v50 = vrot.slane %v6491_v39, 2  ;;  %v1503_v0 = vrot.slane %v6493_v47, 2  ;;  %v1525_v35 = vrot.slane %v6487_v33, 3 }
 0x320   :  { %4546 = vtanh.f32 %v1419_v63  ;;  %v1524_v63 = vrot.slane %v6485_v25, 3  ;;  %v1526_v55 = vrot.slane %v6491_v39, 3  ;;  %v1528_v40 = vrot.slane %v6489_v58, 3 }
 0x321   :  { %4548 = vtanh.f32 %v1468_v28  ;;  %v1504_v28 = vrot.slane %v6489_v58, 2  ;;  %v1506_v25 = vrot.slane %v6497_v54, 2  ;;  %v1507_v33 = vrot.slane %v6501_v48, 2 }
 0x322   :  { %4550 = vtanh.f32 %v1469_v30  ;;  %v1527_v30 = vrot.slane %v6493_v47, 3  ;;  %v1531_v47 = vrot.slane %v6501_v48, 3  ;;  %v1540_v39 = vmul.f32 0.5, %v1524_v63 }
 0x323   :  { %4552 = vtanh.f32 %v1470_v34  ;;  %v1505_v34 = vrot.slane %v6495_v38, 2  ;;  %v1542_v58 = vmul.f32 0.5, %v1526_v55  ;;  %v1544_v20 = vmul.f32 0.5, %v1528_v40 }
 0x324   :  { %4554 = vtanh.f32 %v1471_v59  ;;  %v1529_v59 = vrot.slane %v6495_v38, 3  ;;  %v1543_v22 = vmul.f32 0.5, %v1527_v30  ;;  %v1547_v63 = vmul.f32 0.5, %v1531_v47 }
 0x325   :  { %4556 = vtanh.f32 %v1472_v56 }
 0x326   :  { %v4533_v26 = vpop.eup %4532  ;;  %4558 = vtanh.f32 %v1473_v27  ;;  %v1530_v27 = vrot.slane %v6497_v54, 3  ;;  %v1545_v19 = vmul.f32 0.5, %v1529_v59 }
 0x327   :  { %v4535_v37 = vpop.eup %4534  ;;  %4560 = vtanh.f32 %v1474_v36  ;;  %v1428_v23 = vadd.f32 1.0, %v4533_v26 }
 0x328   :  { %v4537_v52 = vpop.eup %4536  ;;  %4562 = vtanh.f32 %v1475_v29  ;;  %v1541_v29 = vmul.f32 0.5, %v1525_v35  ;;  %v1429_v21 = vadd.f32 1.0, %v4535_v37  ;;  %v1546_v54 = vmul.f32 0.5, %v1530_v27 }
 0x329   :  { %v4539_v56 = vpop.eup %4538  ;;  %4564 = vtanh.f32 %v1500_v57  ;;  %v1430_v57 = vadd.f32 1.0, %v4537_v52 }
 0x32a   :  { %v4541_v36 = vpop.eup %4540  ;;  %4566 = vtanh.f32 %v1501_v42  ;;  %v1431_v17 = vadd.f32 1.0, %v4539_v56 }
 0x32b   :  { %v4543_v43 = vpop.eup %4542  ;;  %4568 = vtanh.f32 %v1502_v50  ;;  %v1432_v16 = vadd.f32 1.0, %v4541_v36  ;;  %v1436_v50 = vmul.f32 0.5, %v1428_v23  ;;  %v1438_v52 = vmul.f32 0.5, %v1430_v57 }
 0x32c   :  { %v4545_v38 = vpop.eup %4544  ;;  %4570 = vtanh.f32 %v1503_v0  ;;  %v1433_v48 = vadd.f32 1.0, %v4543_v43  ;;  %v1437_v0 = vmul.f32 0.5, %v1429_v21  ;;  %v1439_v56 = vmul.f32 0.5, %v1431_v17 }
 0x32d   :  { %v4547_v18 = vpop.eup %4546  ;;  %4572 = vtanh.f32 %v1504_v28  ;;  %v1434_v26 = vadd.f32 1.0, %v4545_v38  ;;  %v1440_v36 = vmul.f32 0.5, %v1432_v16 }
 0x32e   :  { %v4549_v42 = vpop.eup %4548  ;;  %4574 = vtanh.f32 %v1505_v34  ;;  %v1435_v37 = vadd.f32 1.0, %v4547_v18  ;;  %v1441_v43 = vmul.f32 0.5, %v1433_v48 }
 0x32f   :  { %v4551_v35 = vpop.eup %4550  ;;  %v1484_v55 = vadd.f32 1.0, %v4549_v42  ;;  %4576 = vtanh.f32 %v1506_v25  ;;  %v1442_v38 = vmul.f32 0.5, %v1434_v26 }
 0x330   :  { %v4553_v30 = vpop.eup %4552  ;;  %v1485_v40 = vadd.f32 1.0, %v4551_v35  ;;  %4578 = vtanh.f32 %v1507_v33  ;;  %v1443_v18 = vmul.f32 0.5, %v1435_v37 }
 0x331   :  { %v4555_v59 = vpop.eup %4554  ;;  %v1486_v28 = vadd.f32 1.0, %v4553_v30  ;;  %v1492_v27 = vmul.f32 0.5, %v1484_v55  ;;  %4580 = vtanh.f32 %v1540_v39 }
 0x332   :  { %v4557_v15 = vpop.eup %4556  ;;  %v1487_v34 = vadd.f32 1.0, %v4555_v59  ;;  %v1493_v47 = vmul.f32 0.5, %v1485_v40  ;;  %4582 = vtanh.f32 %v1541_v29 }
 0x333   :  { %v4559_v14 = vpop.eup %4558  ;;  %v1488_v23 = vadd.f32 1.0, %v4557_v15  ;;  %v1494_v42 = vmul.f32 0.5, %v1486_v28  ;;  %4584 = vtanh.f32 %v1542_v58  ;;  %v1572_v55 = vmul.f32 %v1492_v27, %v6020_v41 }
 0x334   :  { %v4561_v25 = vpop.eup %4560  ;;  %v1489_v21 = vadd.f32 1.0, %v4559_v14  ;;  %v1495_v35 = vmul.f32 0.5, %v1487_v34  ;;  %4586 = vtanh.f32 %v1543_v22  ;;  %v1573_v26 = vmul.f32 %v1493_v47, %v6023_v31 }
 0x335   :  { %v4563_v33 = vpop.eup %4562  ;;  %v1490_v57 = vadd.f32 1.0, %v4561_v25  ;;  %v1496_v17 = vmul.f32 0.5, %v1488_v23  ;;  %4588 = vtanh.f32 %v1544_v20  ;;  %v1574_v39 = vmul.f32 %v1494_v42, %v6026_v46 }
 0x336   :  { %v4565_v16 = vpop.eup %4564  ;;  %v1491_v48 = vadd.f32 1.0, %v4563_v33  ;;  %v1497_v30 = vmul.f32 0.5, %v1489_v21  ;;  %4590 = vtanh.f32 %v1545_v19  ;;  %v1575_v59 = vmul.f32 %v1495_v35, %v6030_v60 }
 0x337   :  { %v4567_v15 = vpop.eup %4566  ;;  %v1498_v40 = vmul.f32 0.5, %v1490_v57  ;;  %v1580_v14 = vmul.f32 %v4565_v16, %v1436_v50  ;;  %4592 = vtanh.f32 %v1546_v54  ;;  %v1576_v41 = vmul.f32 %v1496_v17, %v6033_v24 }
 0x338   :  { %v4569_v37 = vpop.eup %4568  ;;  %v1499_v29 = vmul.f32 0.5, %v1491_v48  ;;  %v1581_v58 = vmul.f32 %v4567_v15, %v1437_v0  ;;  %4594 = vtanh.f32 %v1547_v63  ;;  %v1577_v20 = vmul.f32 %v1497_v30, %v6036_v44 }
 0x339   :  { %v4571_v28 = vpop.eup %4570  ;;  %v1582_v27 = vmul.f32 %v4569_v37, %v1438_v52  ;;  %v6538_v22 = vadd.f32 %v1580_v14, %v1572_v55  ;;  %v1578_v19 = vmul.f32 %v1498_v40, %v6039_v49 }
 0x33a   :  { %v4573_v31 = vpop.eup %4572  ;;  %v1583_v34 = vmul.f32 %v4571_v28, %v1439_v56  ;;  %v6541_v46 = vadd.f32 %v1581_v58, %v1573_v26  ;;  %v1579_v24 = vmul.f32 %v1499_v29, %v6042_v51 }
 0x33b   :  { %v4575_v50 = vpop.eup %4574  ;;  %v1584_v47 = vmul.f32 %v4573_v31, %v1440_v36  ;;  %v6544_v60 = vadd.f32 %v1582_v27, %v1574_v39  ;;  %4596 = vtanh.f32 %v6538_v22 }
 0x33c   :  { %v4577_v54 = vpop.eup %4576  ;;  %v1585_v0 = vmul.f32 %v4575_v50, %v1441_v43  ;;  %v6548_v52 = vadd.f32 %v1583_v34, %v1575_v59  ;;  %4598 = vtanh.f32 %v6541_v46 }
 0x33d   :  { %v4579_v44 = vpop.eup %4578  ;;  %v1586_v63 = vmul.f32 %v4577_v54, %v1442_v38  ;;  %v6551_v56 = vadd.f32 %v1584_v47, %v1576_v41  ;;  %4600 = vtanh.f32 %v6544_v60 }
 0x33e   :  { %v1587_v49 = vmul.f32 %v4579_v44, %v1443_v18  ;;  %v6554_v36 = vadd.f32 %v1585_v0, %v1577_v20  ;;  %4602 = vtanh.f32 %v6548_v52  ;;  %v4581_v51 = vpop.eup %4580 }
 0x33f   :  { %v6557_v23 = vadd.f32 %v1586_v63, %v1578_v19  ;;  %4604 = vtanh.f32 %v6551_v56  ;;  %v4583_v42 = vpop.eup %4582  ;;  %v1556_v18 = vadd.f32 1.0, %v4581_v51 }
 0x340   :  { %v6560_v43 = vadd.f32 %v1587_v49, %v1579_v24  ;;  %4606 = vtanh.f32 %v6554_v36  ;;  %v4585_v38 = vpop.eup %4584  ;;  %v1557_v35 = vadd.f32 1.0, %v4583_v42 }
 0x341   :  { %4608 = vtanh.f32 %v6557_v23  ;;  %v4587_v25 = vpop.eup %4586  ;;  %v1558_v57 = vadd.f32 1.0, %v4585_v38  ;;  %v1564_v30 = vmul.f32 0.5, %v1556_v18 }
 0x342   :  { %4610 = vtanh.f32 %v6560_v43  ;;  %v4589_v21 = vpop.eup %4588  ;;  %v1559_v55 = vadd.f32 1.0, %v4587_v25  ;;  %v1565_v40 = vmul.f32 0.5, %v1557_v35 }
 0x343   :  { %v4591_v33 = vpop.eup %4590  ;;  %v1560_v48 = vadd.f32 1.0, %v4589_v21  ;;  %v1566_v37 = vmul.f32 0.5, %v1558_v57 }
 0x344   :  { %v4593_v17 = vpop.eup %4592  ;;  %v1561_v15 = vadd.f32 1.0, %v4591_v33  ;;  %v1567_v28 = vmul.f32 0.5, %v1559_v55 }
 0x345   :  { %v4595_v16 = vpop.eup %4594  ;;  %v1562_v14 = vadd.f32 1.0, %v4593_v17  ;;  %v1568_v31 = vmul.f32 0.5, %v1560_v48 }
 0x346   :  { %v1563_v58 = vadd.f32 1.0, %v4595_v16  ;;  %v1569_v50 = vmul.f32 0.5, %v1561_v15  ;;  %v8286_v15 = vld [vmem:[#allocation21_spill] sm:$0xff] }
 0x347   :  { %v1570_v24 = vmul.f32 0.5, %v1562_v14  ;;  %v8289_v14 = vld [vmem:[#allocation24_spill] sm:$0xff] }
 0x348   :  { %v4597_v26 = vpop.eup %4596  ;;  %v1571_v63 = vmul.f32 0.5, %v1563_v58  ;;  %v8293_v58 = vld [vmem:[#allocation28_spill] sm:$0xff] }
 0x349   :  { %v4599_v39 = vpop.eup %4598  ;;  %v1604_v29 = vmul.f32 %v4597_v26, %v1564_v30 }
 0x34a   :  { %v4601_v59 = vpop.eup %4600  ;;  %v1605_v41 = vmul.f32 %v4599_v39, %v1565_v40  ;;  %v8287_v40 = vld [vmem:[#allocation22_spill] sm:$0xff]  ;;  %v8288_v39 = vld [vmem:[#allocation23_spill] sm:$0xff] }
 0x34b   :  { %v4603_v27 = vpop.eup %4602  ;;  %v1606_v20 = vmul.f32 %v4601_v59, %v1566_v37  ;;  %1612 = vst [vmem:[%s7996_s2 + $0x2] sm:$0x1] %v1604_v29  ;;  %v8290_v37 = vld [vmem:[#allocation25_spill] sm:$0xff]  ;;  %v8292_v59 = vld [vmem:[#allocation27_spill] sm:$0xff] }
 0x34c   :  { %v4605_v34 = vpop.eup %4604  ;;  %v1607_v19 = vmul.f32 %v4603_v27, %v1567_v28  ;;  %1613 = vst [vmem:[%s7996_s2 + $0xa] sm:$0x1] %v1605_v41  ;;  %v1644_v47 = vcombine.low %v1604_v29, %v1605_v41  ;;  %v8291_v29 = vld [vmem:[#allocation26_spill] sm:$0xff]  ;;  %v8294_v28 = vld [vmem:[#allocation29_spill] sm:$0xff]  ;;  %v8296_v27 = vld [vmem:[#allocation31_spill] sm:$0xff] }
 0x34d   :  { %v4607_v54 = vpop.eup %4606  ;;  %v1608_v0 = vmul.f32 %v4605_v34, %v1568_v31  ;;  %1614 = vst [vmem:[%s7996_s2 + $0x12] sm:$0x1] %v1606_v20  ;;  %v8295_v41 = vld [vmem:[#allocation30_spill] sm:$0xff]  ;;  %v8297_v31 = vld [vmem:[#allocation32_spill] sm:$0xff] }
 0x34e   :  { %v4609_v44 = vpop.eup %4608  ;;  %v1609_v49 = vmul.f32 %v4607_v54, %v1569_v50  ;;  %1615 = vst [vmem:[%s7996_s2 + $0x1a] sm:$0x1] %v1607_v19  ;;  %v1645_v51 = vcombine.low %v1606_v20, %v1607_v19  ;;  %v1654_v21 = vrot.slane %v1644_v47, %v5682_v62  ;;  %v8298_v20 = vld [vmem:[#allocation33_spill] sm:$0xff]  ;;  %v8299_v34 = vld [vmem:[#allocation34_spill] sm:$0xff]  ;;  %v8300_v50 = vld [vmem:[#allocation35_spill] sm:$0xff] }
 0x34f   :  { %v4611_v42 = vpop.eup %4610  ;;  %v1610_v38 = vmul.f32 %v4609_v44, %v1570_v24  ;;  %1616 = vst [vmem:[%s7996_s2 + $0x22] sm:$0x1] %v1608_v0  ;;  %v8301_v19 = vld [vmem:[#allocation36_spill] sm:$0xff]  ;;  %v8302_v47 = vld [vmem:[#allocation37_spill] sm:$0xff]  ;;  %v8303_v54 = vld [vmem:[#allocation38_spill] sm:$0xff] }
 0x350   :  { %v1611_v25 = vmul.f32 %v4611_v42, %v1571_v63  ;;  %1617 = vst [vmem:[%s7996_s2 + $0x2a] sm:$0x1] %v1609_v49  ;;  %v1646_v18 = vcombine.low %v1608_v0, %v1609_v49  ;;  %v1661_v35 = vrot.slane %v1645_v51, %v5682_v62  ;;  %v8304_v24 = vld [vmem:[#allocation39_spill] sm:$0xff]  ;;  %v8305_v0 = vld [vmem:[#allocation40_spill] sm:$0xff]  ;;  %v8306_v44 = vld [vmem:[#allocation41_spill] sm:$0xff] }
 0x351   :  { %1618 = vst [vmem:[%s7996_s2 + $0x32] sm:$0x1] %v1610_v38  ;;  %v8307_v63 = vld [vmem:[#allocation42_spill] sm:$0xff]  ;;  %v8308_v49 = vld [vmem:[#allocation43_spill] sm:$0xff]  ;;  %v8309_v51 = vld [vmem:[#allocation44_spill] sm:$0xff] }
 0x352   :  { %1619 = vst [vmem:[%s7996_s2 + $0x3a] sm:$0x1] %v1611_v25  ;;  %v1647_v33 = vcombine.low %v1610_v38, %v1611_v25  ;;  %v1676_v57 = vcombine.low %v1654_v21, %v1661_v35  ;;  %v1668_v17 = vrot.slane %v1646_v18, %v5682_v62  ;;  %v8310_v42 = vld [vmem:[#allocation45_spill] sm:$0xff]  ;;  %v8311_v38 = vld [vmem:[#allocation46_spill] sm:$0xff]  ;;  %v8312_v25 = vld [vmem:[#allocation47_spill] sm:$0xff]  ;;  %v8313_v18 = vmov 0.0  }
 0x353   :  { %v8314_v21 = vld [vmem:[#allocation48_spill] sm:$0xff]  ;;  %v6662_v35 = vld [vmem:[%s7994_s1 + $0x1e8] sm:$0xff] }
 0x354   :  { %v1675_v55 = vrot.slane %v1647_v33, %v5682_v62  ;;  %v1684_v48 = vrot.slane %v1676_v57, %v5682_v62  ;;  %v6668_v33 = vld [vmem:[%s7994_s1 + $0x1f8] sm:$0xff] }
 0x356   :  { %v1677_v16 = vcombine.low %v1668_v17, %v1675_v55 }
 0x358   :  { %v1691_v30 = vrot.slane %v1677_v16, %v5682_v62 }
 0x35a   :  { %v1692_v26 = vcombine.low %v1684_v48, %v1691_v30 }
 0x35c   :  { %1759 = vmatmul.mubr.f32.vlgmr.msra.gmra.mxu0 %v1692_v26  ;;  %1830 = vmatmul.mubr.f32.vlgmr.msra.gmra.mxu1 %v1692_v26 }
 0x35d   :  { %2207 = vmatpush1.msra.mxu0 %v6080_v61  ;;  %2278 = vmatpush1.msra.mxu1 %v6086_v45  ;;  %v8269_v61 = vld [vmem:[#allocation4_spill] sm:$0xff]  ;;  %v8270_v45 = vld [vmem:[#allocation5_spill] sm:$0xff] }
 0x35e   :  { %2208 = vmatprep.subr.mxu0 %v6092_v53  ;;  %2279 = vmatprep.subr.mxu1 %v6098_v3  ;;  %v8271_v53 = vld [vmem:[#allocation6_spill] sm:$0xff]  ;;  %v8272_v3 = vld [vmem:[#allocation7_spill] sm:$0xff] }
 0x35f   :  { %2209 = vmatpush1.msra.mxu0 %v6104_v1  ;;  %2280 = vmatpush1.msra.mxu1 %v6110_v32  ;;  %v8273_v1 = vld [vmem:[#allocation8_spill] sm:$0xff]  ;;  %v8274_v32 = vld [vmem:[#allocation9_spill] sm:$0xff] }
 0x360   :  { %2210 = vmatprep.subr.mxu0 %v6116_v2  ;;  %2281 = vmatprep.subr.mxu1 %v6122_v4  ;;  %v8275_v2 = vld [vmem:[#allocation10_spill] sm:$0xff]  ;;  %v8276_v4 = vld [vmem:[#allocation11_spill] sm:$0xff] }
 0x361   :  { %2211 = vmatpush1.msra.mxu0 %v6128_v5  ;;  %2282 = vmatpush1.msra.mxu1 %v6134_v6  ;;  %v8277_v5 = vld [vmem:[#allocation12_spill] sm:$0xff]  ;;  %v8278_v6 = vld [vmem:[#allocation13_spill] sm:$0xff] }
 0x362   :  { %2212 = vmatprep.subr.mxu0 %v6140_v7  ;;  %2283 = vmatprep.subr.mxu1 %v6146_v8  ;;  %v8279_v7 = vld [vmem:[#allocation14_spill] sm:$0xff]  ;;  %v8280_v8 = vld [vmem:[#allocation15_spill] sm:$0xff] }
 0x363   :  { %2213 = vmatpush1.msra.mxu0 %v6152_v9  ;;  %2284 = vmatpush1.msra.mxu1 %v6158_v10  ;;  %v8281_v9 = vld [vmem:[#allocation16_spill] sm:$0xff]  ;;  %v8282_v10 = vld [vmem:[#allocation17_spill] sm:$0xff] }
 0x364   :  { %2214 = vmatprep.subr.mxu0 %v6164_v11  ;;  %2285 = vmatprep.subr.mxu1 %v6170_v12  ;;  %v8283_v11 = vld [vmem:[#allocation18_spill] sm:$0xff]  ;;  %v8284_v12 = vld [vmem:[#allocation19_spill] sm:$0xff] }
 0x365   :  { %2215 = vmatpush1.msra.mxu0 %v6176_v13  ;;  %2286 = vmatpush1.msra.mxu1 %v8269_v61  ;;  %v8285_v13 = vld [vmem:[#allocation20_spill] sm:$0xff] }
 0x366   :  { %2216 = vmatprep.subr.mxu0 %v8270_v45  ;;  %2287 = vmatprep.subr.mxu1 %v8271_v53 }
 0x367   :  { %2217 = vmatpush1.msra.mxu0 %v8272_v3  ;;  %2288 = vmatpush1.msra.mxu1 %v8273_v1 }
 0x368   :  { %2218 = vmatprep.subr.mxu0 %v8274_v32  ;;  %2289 = vmatprep.subr.mxu1 %v8275_v2 }
 0x369   :  { %2219 = vmatpush1.msra.mxu0 %v8276_v4  ;;  %2290 = vmatpush1.msra.mxu1 %v8277_v5 }
 0x36a   :  { %2220 = vmatprep.subr.mxu0 %v8278_v6  ;;  %2291 = vmatprep.subr.mxu1 %v8279_v7  ;;  %v4330_v6 = vld [vmem:[%s7995_s0 + $0x3] ss:$8 sm:$0xf] }
 0x36b   :  { %2221 = vmatpush1.msra.mxu0 %v8280_v8  ;;  %2292 = vmatpush1.msra.mxu1 %v8281_v9  ;;  %v4331_v7 = vld [vmem:[%s7995_s0 + $0x23] ss:$8 sm:$0xf] }
 0x36c   :  { %2222 = vmatprep.subr.mxu0 %v8282_v10  ;;  %2293 = vmatprep.subr.mxu1 %v8283_v11  ;;  %v4332_v8 = vld [vmem:[%s7995_s0 + $0x43] ss:$8 sm:$0xf] }
 0x36d   :  { %2223 = vmatpush1.msra.mxu0 %v8284_v12  ;;  %2294 = vmatpush1.msra.mxu1 %v8285_v13  ;;  %v4334_v9 = vld [vmem:[%s7995_s0 + $0x83] ss:$8 sm:$0xf] }
 0x36e   :  { %2224 = vmatprep.subr.mxu0 %v8286_v15  ;;  %2295 = vmatprep.subr.mxu1 %v8287_v40  ;;  %v4333_v15 = vld [vmem:[%s7995_s0 + $0x63] ss:$8 sm:$0xf] }
 0x36f   :  { %2225 = vmatpush1.msra.mxu0 %v8288_v39  ;;  %2296 = vmatpush1.msra.mxu1 %v8289_v14  ;;  %v4335_v40 = vld [vmem:[%s7995_s0 + $0xa3] ss:$8 sm:$0xf] }
 0x370   :  { %2226 = vmatprep.subr.mxu0 %v8290_v37  ;;  %2297 = vmatprep.subr.mxu1 %v8291_v29  ;;  %v4336_v39 = vld [vmem:[%s7995_s0 + $0xc3] ss:$8 sm:$0xf] }
 0x371   :  { %2227 = vmatpush1.msra.mxu0 %v8292_v59  ;;  %2298 = vmatpush1.msra.mxu1 %v8293_v58  ;;  %v4337_v58 = vld [vmem:[%s7995_s0 + $0xe3] ss:$8 sm:$0xf] }
 0x372   :  { %2228 = vmatprep.subr.mxu0 %v8294_v28  ;;  %2299 = vmatprep.subr.mxu1 %v8295_v41 }
 0x373   :  { %2229 = vmatpush1.msra.mxu0 %v8296_v27  ;;  %2300 = vmatpush1.msra.mxu1 %v8297_v31 }
 0x374   :  { %2230 = vmatprep.subr.mxu0 %v8298_v20  ;;  %2301 = vmatprep.subr.mxu1 %v8299_v34 }
 0x375   :  { %2231 = vmatpush1.msra.mxu0 %v8300_v50  ;;  %2302 = vmatpush1.msra.mxu1 %v8301_v19 }
 0x376   :  { %2232 = vmatprep.subr.mxu0 %v8302_v47  ;;  %2303 = vmatprep.subr.mxu1 %v8303_v54 }
 0x377   :  { %2233 = vmatpush1.msra.mxu0 %v8304_v24  ;;  %2304 = vmatpush1.msra.mxu1 %v8305_v0 }
 0x378   :  { %2234 = vmatprep.subr.mxu0 %v8306_v44  ;;  %2305 = vmatprep.subr.mxu1 %v8307_v63 }
 0x379   :  { %2235 = vmatpush1.msra.mxu0 %v8308_v49  ;;  %2306 = vmatpush1.msra.mxu1 %v8309_v51 }
 0x37a   :  { %2236 = vmatprep.subr.mxu0 %v8310_v42  ;;  %2307 = vmatprep.subr.mxu1 %v8311_v38 }
 0x37b   :  { %2237 = vmatpush1.msra.mxu0 %v8312_v25  ;;  %2270 = vmatprep.mubr.f32.mxu0 %v8313_v18 }
 0x37c   :  { %2308 = vmatpush1.msra.mxu1 %v8314_v21  ;;  %2341 = vmatprep.mubr.f32.mxu1 %v8313_v18 }
 0x37d   :  { %2718 = vmatprep.subr.mxu0 %v6662_v35  ;;  %2789 = vmatprep.subr.mxu1 %v6668_v33 }
 0x41c   :  { %v1760_v57 = vpop.f32.mrf.mxu0  ;;  %v1831_v17 = vpop.f32.mrf.mxu1 }
 0x41e   :  { %v1762_v55 = vpop.f32.mrf.mxu0  ;;  %v1833_v16 = vpop.f32.mrf.mxu1 }
 0x41f   :  { %v1840_v48 = vcombine.low %v1760_v57, %v1762_v55  ;;  %v1841_v30 = vcombine.high %v1760_v57, %v1762_v55  ;;  %v1842_v26 = vcombine.low %v1831_v17, %v1833_v16  ;;  %v1843_v61 = vcombine.high %v1831_v17, %v1833_v16 }
 0x421   :  { %v1850_v45 = vrot.slane %v1840_v48, %v5682_v62  ;;  %v1857_v53 = vrot.slane %v1841_v30, %v5682_v62  ;;  %v1864_v3 = vrot.slane %v1842_v26, %v5682_v62  ;;  %v1871_v1 = vrot.slane %v1843_v61, %v5682_v62 }
 0x423   :  { %v1872_v32 = vcombine.low %v1850_v45, %v1864_v3  ;;  %v1873_v2 = vcombine.high %v1850_v45, %v1864_v3  ;;  %v1874_v4 = vcombine.low %v1857_v53, %v1871_v1  ;;  %v1875_v5 = vcombine.high %v1857_v53, %v1871_v1 }
 0x425   :  { %v1882_v10 = vrot.slane %v1872_v32, %v5682_v62  ;;  %v1889_v11 = vrot.slane %v1874_v4, %v5682_v62  ;;  %v1896_v12 = vrot.slane %v1873_v2, %v5682_v62  ;;  %v1903_v13 = vrot.slane %v1875_v5, %v5682_v62 }
 0x427   :  { %v1904_v14 = vcombine.high %v1882_v10, %v1882_v10  ;;  %v1905_v37 = vcombine.high %v1889_v11, %v1889_v11  ;;  %v1906_v29 = vcombine.high %v1896_v12, %v1896_v12  ;;  %v1907_v59 = vcombine.high %v1903_v13, %v1903_v13 }
 0x428   :  { %v6703_v28 = vadd.f32 %v4330_v6, %v1882_v10  ;;  %v6705_v41 = vadd.f32 %v4331_v7, %v1896_v12  ;;  %v6707_v27 = vadd.f32 %v4334_v9, %v1889_v11  ;;  %v6713_v34 = vadd.f32 %v4335_v40, %v1903_v13 }
 0x429   :  { %v6709_v31 = vadd.f32 %v4332_v8, %v1904_v14  ;;  %v6711_v20 = vadd.f32 %v4333_v15, %v1906_v29  ;;  %v6715_v50 = vadd.f32 %v4336_v39, %v1905_v37  ;;  %v6719_v54 = vadd.f32 %v4337_v58, %v1907_v59 }
 0x42a   :  { %v1924_v19 = vmul.f32 0.5, %v6703_v28  ;;  %v1925_v47 = vmul.f32 0.5, %v6705_v41  ;;  %v1928_v44 = vmul.f32 0.5, %v6707_v27  ;;  %v1964_v63 = vrot.slane %v6703_v28, 1 }
 0x42b   :  { %v1926_v24 = vmul.f32 0.5, %v6709_v31  ;;  %v1927_v0 = vmul.f32 0.5, %v6711_v20  ;;  %v1929_v49 = vmul.f32 0.5, %v6713_v34  ;;  %v1965_v51 = vrot.slane %v6705_v41, 1 }
 0x42c   :  { %4612 = vtanh.f32 %v1924_v19  ;;  %v1930_v42 = vmul.f32 0.5, %v6715_v50  ;;  %v1966_v38 = vrot.slane %v6709_v31, 1  ;;  %v1931_v25 = vmul.f32 0.5, %v6719_v54 }
 0x42d   :  { %4614 = vtanh.f32 %v1925_v47  ;;  %v1967_v21 = vrot.slane %v6711_v20, 1  ;;  %v1968_v57 = vrot.slane %v6707_v27, 1  ;;  %v1980_v17 = vmul.f32 0.5, %v1964_v63 }
 0x42e   :  { %4616 = vtanh.f32 %v1926_v24  ;;  %v1969_v55 = vrot.slane %v6713_v34, 1  ;;  %v1981_v16 = vmul.f32 0.5, %v1965_v51  ;;  %v1970_v48 = vrot.slane %v6715_v50, 1 }
 0x42f   :  { %4618 = vtanh.f32 %v1927_v0  ;;  %v1982_v30 = vmul.f32 0.5, %v1966_v38  ;;  %v1971_v26 = vrot.slane %v6719_v54, 1  ;;  %v1983_v61 = vmul.f32 0.5, %v1967_v21 }
 0x430   :  { %4620 = vtanh.f32 %v1928_v44  ;;  %v1984_v45 = vmul.f32 0.5, %v1968_v57  ;;  %v1985_v53 = vmul.f32 0.5, %v1969_v55  ;;  %v1986_v3 = vmul.f32 0.5, %v1970_v48 }
 0x431   :  { %4622 = vtanh.f32 %v1929_v49  ;;  %v1987_v1 = vmul.f32 0.5, %v1971_v26  ;;  %v2012_v32 = vrot.slane %v6703_v28, 2  ;;  %v2013_v2 = vrot.slane %v6705_v41, 2 }
 0x432   :  { %4624 = vtanh.f32 %v1930_v42  ;;  %v2014_v4 = vrot.slane %v6709_v31, 2  ;;  %v2015_v6 = vrot.slane %v6711_v20, 2  ;;  %v2036_v7 = vrot.slane %v6703_v28, 3 }
 0x433   :  { %4626 = vtanh.f32 %v1931_v25  ;;  %v2037_v8 = vrot.slane %v6705_v41, 3  ;;  %v2016_v10 = vrot.slane %v6707_v27, 2  ;;  %v2038_v11 = vrot.slane %v6709_v31, 3 }
 0x434   :  { %4628 = vtanh.f32 %v1980_v17  ;;  %v2039_v12 = vrot.slane %v6711_v20, 3  ;;  %v2017_v15 = vrot.slane %v6713_v34, 2  ;;  %v2040_v40 = vrot.slane %v6707_v27, 3 }
 0x435   :  { %4630 = vtanh.f32 %v1981_v16  ;;  %v2041_v39 = vrot.slane %v6713_v34, 3  ;;  %v2018_v37 = vrot.slane %v6715_v50, 2  ;;  %v2019_v29 = vrot.slane %v6719_v54, 2 }
 0x436   :  { %4632 = vtanh.f32 %v1982_v30  ;;  %v2042_v59 = vrot.slane %v6715_v50, 3  ;;  %v2043_v28 = vrot.slane %v6719_v54, 3  ;;  %v2052_v41 = vmul.f32 0.5, %v2036_v7 }
 0x437   :  { %4634 = vtanh.f32 %v1983_v61  ;;  %v2053_v31 = vmul.f32 0.5, %v2037_v8  ;;  %v2054_v27 = vmul.f32 0.5, %v2038_v11  ;;  %v2055_v47 = vmul.f32 0.5, %v2039_v12 }
 0x438   :  { %4636 = vtanh.f32 %v1984_v45  ;;  %v2056_v0 = vmul.f32 0.5, %v2040_v40  ;;  %v2057_v44 = vmul.f32 0.5, %v2041_v39  ;;  %v2058_v50 = vmul.f32 0.5, %v2042_v59 }
 0x439   :  { %v4613_v5 = vpop.eup %4612  ;;  %4638 = vtanh.f32 %v1985_v53  ;;  %v2059_v25 = vmul.f32 0.5, %v2043_v28 }
 0x43a   :  { %v4615_v9 = vpop.eup %4614  ;;  %4640 = vtanh.f32 %v1986_v3  ;;  %v1940_v19 = vadd.f32 1.0, %v4613_v5 }
 0x43b   :  { %v4617_v13 = vpop.eup %4616  ;;  %4642 = vtanh.f32 %v1987_v1  ;;  %v1941_v24 = vadd.f32 1.0, %v4615_v9 }
 0x43c   :  { %v4619_v14 = vpop.eup %4618  ;;  %4644 = vtanh.f32 %v2012_v32  ;;  %v1942_v49 = vadd.f32 1.0, %v4617_v13  ;;  %v1948_v17 = vmul.f32 0.5, %v1940_v19 }
 0x43d   :  { %v4621_v58 = vpop.eup %4620  ;;  %4646 = vtanh.f32 %v2013_v2  ;;  %v1943_v51 = vadd.f32 1.0, %v4619_v14  ;;  %v1949_v30 = vmul.f32 0.5, %v1941_v24 }
 0x43e   :  { %v4623_v20 = vpop.eup %4622  ;;  %4648 = vtanh.f32 %v2014_v4  ;;  %v1944_v38 = vadd.f32 1.0, %v4621_v58  ;;  %v1950_v45 = vmul.f32 0.5, %v1942_v49 }
 0x43f   :  { %v4625_v34 = vpop.eup %4624  ;;  %4650 = vtanh.f32 %v2015_v6  ;;  %v1945_v54 = vadd.f32 1.0, %v4623_v20  ;;  %v1951_v53 = vmul.f32 0.5, %v1943_v51 }
 0x440   :  { %v4627_v63 = vpop.eup %4626  ;;  %4652 = vtanh.f32 %v2016_v10  ;;  %v1946_v57 = vadd.f32 1.0, %v4625_v34  ;;  %v1952_v2 = vmul.f32 0.5, %v1944_v38 }
 0x441   :  { %v4629_v42 = vpop.eup %4628  ;;  %4654 = vtanh.f32 %v2017_v15  ;;  %v1947_v48 = vadd.f32 1.0, %v4627_v63  ;;  %v1953_v4 = vmul.f32 0.5, %v1945_v54 }
 0x442   :  { %v4631_v21 = vpop.eup %4630  ;;  %v1996_v55 = vadd.f32 1.0, %v4629_v42  ;;  %4656 = vtanh.f32 %v2018_v37  ;;  %v1954_v8 = vmul.f32 0.5, %v1946_v57 }
 0x443   :  { %v4633_v16 = vpop.eup %4632  ;;  %v1997_v26 = vadd.f32 1.0, %v4631_v21  ;;  %4658 = vtanh.f32 %v2019_v29  ;;  %v1955_v12 = vmul.f32 0.5, %v1947_v48 }
 0x444   :  { %v4635_v61 = vpop.eup %4634  ;;  %v1998_v3 = vadd.f32 1.0, %v4633_v16  ;;  %v2004_v1 = vmul.f32 0.5, %v1996_v55  ;;  %4660 = vtanh.f32 %v2052_v41 }
 0x445   :  { %v4637_v32 = vpop.eup %4636  ;;  %v1999_v5 = vadd.f32 1.0, %v4635_v61  ;;  %v2005_v6 = vmul.f32 0.5, %v1997_v26  ;;  %4662 = vtanh.f32 %v2053_v31 }
 0x446   :  { %v4639_v7 = vpop.eup %4638  ;;  %v2000_v9 = vadd.f32 1.0, %v4637_v32  ;;  %v2006_v10 = vmul.f32 0.5, %v1998_v3  ;;  %4664 = vtanh.f32 %v2054_v27  ;;  %v2084_v37 = vmul.f32 %v2004_v1, %v6538_v22 }
 0x447   :  { %v4641_v11 = vpop.eup %4640  ;;  %v2001_v13 = vadd.f32 1.0, %v4639_v7  ;;  %v2007_v15 = vmul.f32 0.5, %v1999_v5  ;;  %4666 = vtanh.f32 %v2055_v47  ;;  %v2085_v28 = vmul.f32 %v2005_v6, %v6541_v46 }
 0x448   :  { %v4643_v40 = vpop.eup %4642  ;;  %v2002_v39 = vadd.f32 1.0, %v4641_v11  ;;  %v2008_v14 = vmul.f32 0.5, %v2000_v9  ;;  %4668 = vtanh.f32 %v2056_v0  ;;  %v2086_v41 = vmul.f32 %v2006_v10, %v6544_v60 }
 0x449   :  { %v4645_v29 = vpop.eup %4644  ;;  %v2003_v59 = vadd.f32 1.0, %v4643_v40  ;;  %v2009_v58 = vmul.f32 0.5, %v2001_v13  ;;  %4670 = vtanh.f32 %v2057_v44  ;;  %v2087_v63 = vmul.f32 %v2007_v15, %v6548_v52 }
 0x44a   :  { %v4647_v20 = vpop.eup %4646  ;;  %v2010_v19 = vmul.f32 0.5, %v2002_v39  ;;  %v2092_v34 = vmul.f32 %v4645_v29, %v1948_v17  ;;  %4672 = vtanh.f32 %v2058_v50  ;;  %v2088_v22 = vmul.f32 %v2008_v14, %v6551_v56 }
 0x44b   :  { %v4649_v24 = vpop.eup %4648  ;;  %v2011_v31 = vmul.f32 0.5, %v2003_v59  ;;  %v2093_v27 = vmul.f32 %v4647_v20, %v1949_v30  ;;  %4674 = vtanh.f32 %v2059_v25  ;;  %v2089_v0 = vmul.f32 %v2009_v58, %v6554_v36 }
 0x44c   :  { %v4651_v49 = vpop.eup %4650  ;;  %v2094_v51 = vmul.f32 %v4649_v24, %v1950_v45  ;;  %v6756_v47 = vadd.f32 %v2092_v34, %v2084_v37  ;;  %v2090_v44 = vmul.f32 %v2010_v19, %v6557_v23 }
 0x44d   :  { %v4653_v46 = vpop.eup %4652  ;;  %v2095_v42 = vmul.f32 %v4651_v49, %v1951_v53  ;;  %v6759_v60 = vadd.f32 %v2093_v27, %v2085_v28  ;;  %v2091_v56 = vmul.f32 %v2011_v31, %v6560_v43 }
 0x44e   :  { %v4655_v38 = vpop.eup %4654  ;;  %v2096_v54 = vmul.f32 %v4653_v46, %v1952_v2  ;;  %v6762_v52 = vadd.f32 %v2094_v51, %v2086_v41  ;;  %4676 = vtanh.f32 %v6756_v47 }
 0x44f   :  { %v4657_v50 = vpop.eup %4656  ;;  %v2097_v21 = vmul.f32 %v4655_v38, %v1953_v4  ;;  %v6766_v57 = vadd.f32 %v2095_v42, %v2087_v63  ;;  %4678 = vtanh.f32 %v6759_v60 }
 0x450   :  { %v4659_v36 = vpop.eup %4658  ;;  %v2098_v25 = vmul.f32 %v4657_v50, %v1954_v8  ;;  %v6769_v17 = vadd.f32 %v2096_v54, %v2088_v22  ;;  %4680 = vtanh.f32 %v6762_v52 }
 0x451   :  { %v2099_v23 = vmul.f32 %v4659_v36, %v1955_v12  ;;  %v6772_v55 = vadd.f32 %v2097_v21, %v2089_v0  ;;  %4682 = vtanh.f32 %v6766_v57  ;;  %v4661_v43 = vpop.eup %4660 }
 0x452   :  { %v6775_v16 = vadd.f32 %v2098_v25, %v2090_v44  ;;  %4684 = vtanh.f32 %v6769_v17  ;;  %v4663_v30 = vpop.eup %4662  ;;  %v2068_v45 = vadd.f32 1.0, %v4661_v43 }
 0x453   :  { %v6778_v48 = vadd.f32 %v2099_v23, %v2091_v56  ;;  %4686 = vtanh.f32 %v6772_v55  ;;  %v4665_v26 = vpop.eup %4664  ;;  %v2069_v3 = vadd.f32 1.0, %v4663_v30  ;;  %v6816_v30 = vld [vmem:[%s7994_s1 + $0x1e0] sm:$0xff] }
 0x454   :  { %4688 = vtanh.f32 %v6775_v16  ;;  %v4667_v61 = vpop.eup %4666  ;;  %v2070_v32 = vadd.f32 1.0, %v4665_v26  ;;  %v2076_v7 = vmul.f32 0.5, %v2068_v45  ;;  %v6822_v26 = vld [vmem:[%s7994_s1 + $0x1f0] sm:$0xff]  ;;  %v6834_v45 = vld [vmem:[%s7994_s1 + $0x1d8] sm:$0xff] }
 0x455   :  { %4690 = vtanh.f32 %v6778_v48  ;;  %v4669_v53 = vpop.eup %4668  ;;  %v2071_v4 = vadd.f32 1.0, %v4667_v61  ;;  %v2077_v10 = vmul.f32 0.5, %v2069_v3  ;;  %v6828_v61 = vld [vmem:[%s7994_s1 + $0x1c8] sm:$0xff]  ;;  %v6846_v3 = vld [vmem:[%s7994_s1 + $0x1d0] sm:$0xff] }
 0x456   :  { %v4671_v1 = vpop.eup %4670  ;;  %v2072_v6 = vadd.f32 1.0, %v4669_v53  ;;  %v2078_v13 = vmul.f32 0.5, %v2070_v32  ;;  %v6840_v53 = vld [vmem:[%s7994_s1 + $0x1c0] sm:$0xff]  ;;  %v6858_v32 = vld [vmem:[%s7994_s1 + $0x1b8] sm:$0xff] }
 0x457   :  { %v4673_v2 = vpop.eup %4672  ;;  %v2073_v9 = vadd.f32 1.0, %v4671_v1  ;;  %v2079_v14 = vmul.f32 0.5, %v2071_v4  ;;  %v6852_v1 = vld [vmem:[%s7994_s1 + $0x1a8] sm:$0xff]  ;;  %v6870_v4 = vld [vmem:[%s7994_s1 + $0x1b0] sm:$0xff] }
 0x458   :  { %v4675_v5 = vpop.eup %4674  ;;  %v2074_v12 = vadd.f32 1.0, %v4673_v2  ;;  %v2080_v59 = vmul.f32 0.5, %v2072_v6  ;;  %v6864_v2 = vld [vmem:[%s7994_s1 + $0x1a0] sm:$0xff]  ;;  %v6882_v6 = vld [vmem:[%s7994_s1 + $0x198] sm:$0xff] }
 0x459   :  { %v2075_v39 = vadd.f32 1.0, %v4675_v5  ;;  %v2081_v20 = vmul.f32 0.5, %v2073_v9  ;;  %v6876_v5 = vld [vmem:[%s7994_s1 + $0x188] sm:$0xff] }
 0x45a   :  { %v2082_v24 = vmul.f32 0.5, %v2074_v12  ;;  %v6900_v9 = vld [vmem:[%s7994_s1 + $0x168] sm:$0xff]  ;;  %v6918_v12 = vld [vmem:[%s7994_s1 + $0x170] sm:$0xff] }
 0x45b   :  { %v4677_v8 = vpop.eup %4676  ;;  %v2083_v27 = vmul.f32 0.5, %v2075_v39  ;;  %8315 = vst [vmem:[#allocation4_spill] sm:$0xff] %v6918_v12  ;;  %v6942_v39 = vld [vmem:[%s7994_s1 + $0x150] sm:$0xff] }
 0x45c   :  { %v4679_v11 = vpop.eup %4678  ;;  %v2116_v15 = vmul.f32 %v4677_v8, %v2076_v7  ;;  %v6888_v7 = vld [vmem:[%s7994_s1 + $0x180] sm:$0xff]  ;;  %v6894_v8 = vld [vmem:[%s7994_s1 + $0x190] sm:$0xff]  ;;  %8319 = vst [vmem:[#allocation8_spill] sm:$0xff] %v6942_v39 }
 0x45d   :  { %v4681_v40 = vpop.eup %4680  ;;  %v2117_v37 = vmul.f32 %v4679_v11, %v2077_v10  ;;  %v6906_v10 = vld [vmem:[%s7994_s1 + $0x178] sm:$0xff]  ;;  %v6912_v11 = vld [vmem:[%s7994_s1 + $0x160] sm:$0xff] }
 0x45e   :  { %v4683_v29 = vpop.eup %4682  ;;  %v2118_v58 = vmul.f32 %v4681_v40, %v2078_v13  ;;  %2124 = vst [vmem:[%s7996_s2 + $0x3] sm:$0x1] %v2116_v15  ;;  %v6924_v13 = vld [vmem:[%s7994_s1 + $0x148] sm:$0xff]  ;;  %v6936_v40 = vld [vmem:[%s7994_s1 + $0x140] sm:$0xff] }
 0x45f   :  { %v4685_v28 = vpop.eup %4684  ;;  %v2119_v19 = vmul.f32 %v4683_v29, %v2079_v14  ;;  %2125 = vst [vmem:[%s7996_s2 + $0xb] sm:$0x1] %v2117_v37  ;;  %v2156_v41 = vcombine.low %v2116_v15, %v2117_v37  ;;  %8316 = vst [vmem:[#allocation5_spill] sm:$0xff] %v6924_v13  ;;  %v6930_v15 = vld [vmem:[%s7994_s1 + $0x158] sm:$0xff]  ;;  %v6948_v14 = vld [vmem:[%s7994_s1 + $0x128] sm:$0xff] }
 0x460   :  { %v4687_v34 = vpop.eup %4686  ;;  %v2120_v31 = vmul.f32 %v4685_v28, %v2080_v59  ;;  %2126 = vst [vmem:[%s7996_s2 + $0x13] sm:$0x1] %v2118_v58  ;;  %8317 = vst [vmem:[#allocation6_spill] sm:$0xff] %v6930_v15  ;;  %v6954_v37 = vld [vmem:[%s7994_s1 + $0x138] sm:$0xff]  ;;  %v6960_v29 = vld [vmem:[%s7994_s1 + $0x120] sm:$0xff] }
 0x461   :  { %v4689_v63 = vpop.eup %4688  ;;  %v2121_v49 = vmul.f32 %v4687_v34, %v2081_v20  ;;  %2127 = vst [vmem:[%s7996_s2 + $0x1b] sm:$0x1] %v2119_v19  ;;  %v2157_v22 = vcombine.low %v2118_v58, %v2119_v19  ;;  %v2166_v38 = vrot.slane %v2156_v41, %v5682_v62  ;;  %8318 = vst [vmem:[#allocation7_spill] sm:$0xff] %v6936_v40  ;;  %v6966_v59 = vld [vmem:[%s7994_s1 + $0x130] sm:$0xff]  ;;  %v6972_v58 = vld [vmem:[%s7994_s1 + $0x108] sm:$0xff] }
 0x462   :  { %v4691_v51 = vpop.eup %4690  ;;  %v2122_v46 = vmul.f32 %v4689_v63, %v2082_v24  ;;  %2128 = vst [vmem:[%s7996_s2 + $0x23] sm:$0x1] %v2120_v31  ;;  %8320 = vst [vmem:[#allocation9_spill] sm:$0xff] %v6948_v14  ;;  %v6978_v28 = vld [vmem:[%s7994_s1 + $0x118] sm:$0xff]  ;;  %v6984_v20 = vld [vmem:[%s7994_s1 + $0x100] sm:$0xff] }
 0x463   :  { %v2123_v0 = vmul.f32 %v4691_v51, %v2083_v27  ;;  %2129 = vst [vmem:[%s7996_s2 + $0x2b] sm:$0x1] %v2121_v49  ;;  %v2158_v42 = vcombine.low %v2120_v31, %v2121_v49  ;;  %v2173_v44 = vrot.slane %v2157_v22, %v5682_v62  ;;  %8321 = vst [vmem:[#allocation10_spill] sm:$0xff] %v6954_v37  ;;  %v6990_v19 = vld [vmem:[%s7994_s1 + $0x110] sm:$0xff]  ;;  %v6996_v41 = vld [vmem:[%s7994_s1 + $0xe8] sm:$0xff] }
 0x464   :  { %2130 = vst [vmem:[%s7996_s2 + $0x33] sm:$0x1] %v2122_v46  ;;  %8322 = vst [vmem:[#allocation11_spill] sm:$0xff] %v6960_v29  ;;  %v7002_v34 = vld [vmem:[%s7994_s1 + $0xf8] sm:$0xff]  ;;  %v7008_v24 = vld [vmem:[%s7994_s1 + $0xe0] sm:$0xff] }
 0x465   :  { %2131 = vst [vmem:[%s7996_s2 + $0x3b] sm:$0x1] %v2123_v0  ;;  %v2159_v54 = vcombine.low %v2122_v46, %v2123_v0  ;;  %v2188_v50 = vcombine.low %v2166_v38, %v2173_v44  ;;  %v2180_v56 = vrot.slane %v2158_v42, %v5682_v62  ;;  %8323 = vst [vmem:[#allocation12_spill] sm:$0xff] %v6966_v59  ;;  %v7014_v31 = vld [vmem:[%s7994_s1 + $0xf0] sm:$0xff]  ;;  %v7020_v63 = vld [vmem:[%s7994_s1 + $0xc8] sm:$0xff] }
 0x466   :  { %8324 = vst [vmem:[#allocation13_spill] sm:$0xff] %v6972_v58  ;;  %8325 = vst [vmem:[#allocation14_spill] sm:$0xff] %v6978_v28  ;;  %v7026_v27 = vld [vmem:[%s7994_s1 + $0xd8] sm:$0xff]  ;;  %v7032_v49 = vld [vmem:[%s7994_s1 + $0xc0] sm:$0xff] }
 0x467   :  { %v2187_v21 = vrot.slane %v2159_v54, %v5682_v62  ;;  %v2196_v25 = vrot.slane %v2188_v50, %v5682_v62  ;;  %8326 = vst [vmem:[#allocation15_spill] sm:$0xff] %v6984_v20  ;;  %8327 = vst [vmem:[#allocation16_spill] sm:$0xff] %v6990_v19  ;;  %v7038_v22 = vld [vmem:[%s7994_s1 + $0xd0] sm:$0xff]  ;;  %v7044_v51 = vld [vmem:[%s7994_s1 + $0xa8] sm:$0xff] }
 0x468   :  { %8328 = vst [vmem:[#allocation17_spill] sm:$0xff] %v6996_v41  ;;  %8329 = vst [vmem:[#allocation18_spill] sm:$0xff] %v7002_v34  ;;  %v7050_v46 = vld [vmem:[%s7994_s1 + $0xb8] sm:$0xff]  ;;  %v7056_v0 = vld [vmem:[%s7994_s1 + $0xa0] sm:$0xff] }
 0x469   :  { %v2189_v36 = vcombine.low %v2180_v56, %v2187_v21  ;;  %8330 = vst [vmem:[#allocation19_spill] sm:$0xff] %v7008_v24  ;;  %8331 = vst [vmem:[#allocation20_spill] sm:$0xff] %v7014_v31  ;;  %v7062_v42 = vld [vmem:[%s7994_s1 + $0xb0] sm:$0xff]  ;;  %v7068_v38 = vld [vmem:[%s7994_s1 + $0x88] sm:$0xff] }
 0x46a   :  { %8332 = vst [vmem:[#allocation21_spill] sm:$0xff] %v7020_v63  ;;  %8333 = vst [vmem:[#allocation22_spill] sm:$0xff] %v7026_v27  ;;  %v7074_v44 = vld [vmem:[%s7994_s1 + $0x98] sm:$0xff]  ;;  %v7080_v54 = vld [vmem:[%s7994_s1 + $0x80] sm:$0xff] }
 0x46b   :  { %v2203_v23 = vrot.slane %v2189_v36, %v5682_v62  ;;  %8334 = vst [vmem:[#allocation23_spill] sm:$0xff] %v7032_v49  ;;  %8335 = vst [vmem:[#allocation24_spill] sm:$0xff] %v7038_v22  ;;  %v7086_v50 = vld [vmem:[%s7994_s1 + $0x90] sm:$0xff]  ;;  %v7092_v56 = vld [vmem:[%s7994_s1 + $0x68] sm:$0xff] }
 0x46c   :  { %8336 = vst [vmem:[#allocation25_spill] sm:$0xff] %v7044_v51  ;;  %8337 = vst [vmem:[#allocation26_spill] sm:$0xff] %v7050_v46  ;;  %v7098_v21 = vld [vmem:[%s7994_s1 + $0x78] sm:$0xff]  ;;  %v7104_v36 = vld [vmem:[%s7994_s1 + $0x60] sm:$0xff] }
 0x46d   :  { %v2204_v43 = vcombine.low %v2196_v25, %v2203_v23  ;;  %8338 = vst [vmem:[#allocation27_spill] sm:$0xff] %v7056_v0  ;;  %8339 = vst [vmem:[#allocation28_spill] sm:$0xff] %v7062_v42  ;;  %v7110_v25 = vld [vmem:[%s7994_s1 + $0x70] sm:$0xff]  ;;  %v7116_v23 = vld [vmem:[%s7994_s1 + $0x48] sm:$0xff] }
 0x46e   :  { %8340 = vst [vmem:[#allocation29_spill] sm:$0xff] %v7068_v38  ;;  %8341 = vst [vmem:[#allocation30_spill] sm:$0xff] %v7074_v44 }
 0x46f   :  { %2271 = vmatmul.mubr.f32.vlgmr.msra.gmra.mxu0 %v2204_v43  ;;  %2342 = vmatmul.mubr.f32.vlgmr.msra.gmra.mxu1 %v2204_v43  ;;  %8342 = vst [vmem:[#allocation31_spill] sm:$0xff] %v7080_v54  ;;  %8343 = vst [vmem:[#allocation32_spill] sm:$0xff] %v7086_v50  ;;  %v7122_v43 = vld [vmem:[%s7994_s1 + $0x58] sm:$0xff] }
 0x470   :  { %2719 = vmatpush1.msra.mxu0 %v6816_v30  ;;  %2790 = vmatpush1.msra.mxu1 %v6822_v26  ;;  %8344 = vst [vmem:[#allocation33_spill] sm:$0xff] %v7092_v56  ;;  %8345 = vst [vmem:[#allocation34_spill] sm:$0xff] %v7098_v21 }
 0x471   :  { %2720 = vmatprep.subr.mxu0 %v6828_v61  ;;  %2791 = vmatprep.subr.mxu1 %v6834_v45  ;;  %8346 = vst [vmem:[#allocation35_spill] sm:$0xff] %v7104_v36  ;;  %8347 = vst [vmem:[#allocation36_spill] sm:$0xff] %v7110_v25 }
 0x472   :  { %2721 = vmatpush1.msra.mxu0 %v6840_v53  ;;  %2792 = vmatpush1.msra.mxu1 %v6846_v3  ;;  %8348 = vst [vmem:[#allocation37_spill] sm:$0xff] %v7116_v23  ;;  %8349 = vst [vmem:[#allocation38_spill] sm:$0xff] %v7122_v43 }
 0x473   :  { %2722 = vmatprep.subr.mxu0 %v6852_v1  ;;  %2793 = vmatprep.subr.mxu1 %v6858_v32 }
 0x474   :  { %2723 = vmatpush1.msra.mxu0 %v6864_v2  ;;  %2794 = vmatpush1.msra.mxu1 %v6870_v4 }
 0x475   :  { %2724 = vmatprep.subr.mxu0 %v6876_v5  ;;  %2795 = vmatprep.subr.mxu1 %v6882_v6 }
 0x476   :  { %2725 = vmatpush1.msra.mxu0 %v6888_v7  ;;  %2796 = vmatpush1.msra.mxu1 %v6894_v8 }
 0x477   :  { %2726 = vmatprep.subr.mxu0 %v6900_v9  ;;  %2797 = vmatprep.subr.mxu1 %v6906_v10 }
 0x478   :  { %2727 = vmatpush1.msra.mxu0 %v6912_v11  ;;  %2798 = vmatpush1.msra.mxu1 %v6918_v12 }
 0x479   :  { %2728 = vmatprep.subr.mxu0 %v6924_v13  ;;  %2799 = vmatprep.subr.mxu1 %v6930_v15 }
 0x47a   :  { %2729 = vmatpush1.msra.mxu0 %v6936_v40  ;;  %2800 = vmatpush1.msra.mxu1 %v6942_v39 }
 0x47b   :  { %2730 = vmatprep.subr.mxu0 %v6948_v14  ;;  %2801 = vmatprep.subr.mxu1 %v6954_v37 }
 0x47c   :  { %2731 = vmatpush1.msra.mxu0 %v6960_v29  ;;  %2802 = vmatpush1.msra.mxu1 %v6966_v59 }
 0x47d   :  { %2732 = vmatprep.subr.mxu0 %v6972_v58  ;;  %2803 = vmatprep.subr.mxu1 %v6978_v28 }
 0x47e   :  { %2733 = vmatpush1.msra.mxu0 %v6984_v20  ;;  %2804 = vmatpush1.msra.mxu1 %v6990_v19 }
 0x47f   :  { %2734 = vmatprep.subr.mxu0 %v6996_v41  ;;  %2805 = vmatprep.subr.mxu1 %v7002_v34 }
 0x480   :  { %2735 = vmatpush1.msra.mxu0 %v7008_v24  ;;  %2806 = vmatpush1.msra.mxu1 %v7014_v31 }
 0x481   :  { %2736 = vmatprep.subr.mxu0 %v7020_v63  ;;  %2807 = vmatprep.subr.mxu1 %v7026_v27 }
 0x482   :  { %2737 = vmatpush1.msra.mxu0 %v7032_v49  ;;  %2808 = vmatpush1.msra.mxu1 %v7038_v22 }
 0x483   :  { %2738 = vmatprep.subr.mxu0 %v7044_v51  ;;  %2809 = vmatprep.subr.mxu1 %v7050_v46  ;;  %v4338_v51 = vld [vmem:[%s7995_s0 + $0x4] ss:$8 sm:$0xf] }
 0x484   :  { %2739 = vmatpush1.msra.mxu0 %v7056_v0  ;;  %2810 = vmatpush1.msra.mxu1 %v7062_v42 }
 0x485   :  { %2740 = vmatprep.subr.mxu0 %v7068_v38  ;;  %2811 = vmatprep.subr.mxu1 %v7074_v44 }
 0x486   :  { %2741 = vmatpush1.msra.mxu0 %v7080_v54  ;;  %2812 = vmatpush1.msra.mxu1 %v7086_v50 }
 0x487   :  { %2742 = vmatprep.subr.mxu0 %v7092_v56  ;;  %2813 = vmatprep.subr.mxu1 %v7098_v21 }
 0x488   :  { %2743 = vmatpush1.msra.mxu0 %v7104_v36  ;;  %2814 = vmatpush1.msra.mxu1 %v7110_v25  ;;  %v7128_v36 = vld [vmem:[%s7994_s1 + $0x40] sm:$0xff]  ;;  %v7134_v25 = vld [vmem:[%s7994_s1 + $0x50] sm:$0xff] }
 0x489   :  { %2744 = vmatprep.subr.mxu0 %v7116_v23  ;;  %2815 = vmatprep.subr.mxu1 %v7122_v43  ;;  %8350 = vst [vmem:[#allocation39_spill] sm:$0xff] %v7128_v36  ;;  %8351 = vst [vmem:[#allocation40_spill] sm:$0xff] %v7134_v25  ;;  %v7140_v23 = vld [vmem:[%s7994_s1 + $0x28] sm:$0xff]  ;;  %v7146_v43 = vld [vmem:[%s7994_s1 + $0x38] sm:$0xff] }
 0x48a   :  { %2745 = vmatpush1.msra.mxu0 %v7128_v36  ;;  %2816 = vmatpush1.msra.mxu1 %v7134_v25  ;;  %8352 = vst [vmem:[#allocation41_spill] sm:$0xff] %v7140_v23  ;;  %8353 = vst [vmem:[#allocation42_spill] sm:$0xff] %v7146_v43  ;;  %v7152_v36 = vld [vmem:[%s7994_s1 + $0x20] sm:$0xff]  ;;  %v7158_v25 = vld [vmem:[%s7994_s1 + $0x30] sm:$0xff] }
 0x48b   :  { %2746 = vmatprep.subr.mxu0 %v7140_v23  ;;  %2817 = vmatprep.subr.mxu1 %v7146_v43  ;;  %8354 = vst [vmem:[#allocation43_spill] sm:$0xff] %v7152_v36  ;;  %8355 = vst [vmem:[#allocation44_spill] sm:$0xff] %v7158_v25  ;;  %v7164_v23 = vld [vmem:[%s7994_s1 + $0x8] sm:$0xff]  ;;  %v7170_v43 = vld [vmem:[%s7994_s1 + $0x18] sm:$0xff] }
 0x48c   :  { %2747 = vmatpush1.msra.mxu0 %v7152_v36  ;;  %2818 = vmatpush1.msra.mxu1 %v7158_v25  ;;  %8356 = vst [vmem:[#allocation45_spill] sm:$0xff] %v7164_v23  ;;  %8357 = vst [vmem:[#allocation46_spill] sm:$0xff] %v7170_v43  ;;  %v7176_v36 = vld [vmem:[%s7994_s1] sm:$0xff] }
 0x48d   :  { %2748 = vmatprep.subr.mxu0 %v7164_v23  ;;  %2819 = vmatprep.subr.mxu1 %v7170_v43  ;;  %8358 = vst [vmem:[#allocation47_spill] sm:$0xff] %v7176_v36  ;;  %v7183_v23 = vld [vmem:[%s7994_s1 + $0x10] sm:$0xff] }
 0x48e   :  { %2749 = vmatpush1.msra.mxu0 %v7176_v36  ;;  %2782 = vmatprep.mubr.f32.mxu0 %v8313_v18  ;;  %8359 = vst [vmem:[#allocation48_spill] sm:$0xff] %v7183_v23 }
 0x48f   :  { %2820 = vmatpush1.msra.mxu1 %v7183_v23  ;;  %2853 = vmatprep.mubr.f32.mxu1 %v8313_v18 }
 0x490   :  { %3230 = vmatprep.subr.mxu0 %v6662_v35  ;;  %3301 = vmatprep.subr.mxu1 %v6668_v33 }
 0x52f   :  { %v2272_v43 = vpop.f32.mrf.mxu0  ;;  %v2343_v25 = vpop.f32.mrf.mxu1 }
 0x531   :  { %v2274_v21 = vpop.f32.mrf.mxu0  ;;  %v2345_v56 = vpop.f32.mrf.mxu1 }
 0x532   :  { %v2352_v36 = vcombine.low %v2272_v43, %v2274_v21  ;;  %v2353_v50 = vcombine.high %v2272_v43, %v2274_v21  ;;  %v2354_v54 = vcombine.low %v2343_v25, %v2345_v56  ;;  %v2355_v44 = vcombine.high %v2343_v25, %v2345_v56  ;;  %v4339_v56 = vld [vmem:[%s7995_s0 + $0x24] ss:$8 sm:$0xf] }
 0x533   :  { %v4341_v21 = vld [vmem:[%s7995_s0 + $0x64] ss:$8 sm:$0xf] }
 0x534   :  { %v2362_v38 = vrot.slane %v2352_v36, %v5682_v62  ;;  %v2369_v42 = vrot.slane %v2353_v50, %v5682_v62  ;;  %v2376_v23 = vrot.slane %v2354_v54, %v5682_v62  ;;  %v2383_v18 = vrot.slane %v2355_v44, %v5682_v62  ;;  %v4340_v50 = vld [vmem:[%s7995_s0 + $0x44] ss:$8 sm:$0xf] }
 0x535   :  { %v4342_v44 = vld [vmem:[%s7995_s0 + $0x84] ss:$8 sm:$0xf] }
 0x536   :  { %v2384_v0 = vcombine.low %v2362_v38, %v2376_v23  ;;  %v2385_v35 = vcombine.high %v2362_v38, %v2376_v23  ;;  %v2386_v46 = vcombine.low %v2369_v42, %v2383_v18  ;;  %v2387_v33 = vcombine.high %v2369_v42, %v2383_v18  ;;  %v4343_v36 = vld [vmem:[%s7995_s0 + $0xa4] ss:$8 sm:$0xf] }
 0x537   :  { %v4344_v25 = vld [vmem:[%s7995_s0 + $0xc4] ss:$8 sm:$0xf] }
 0x538   :  { %v2394_v38 = vrot.slane %v2384_v0, %v5682_v62  ;;  %v2401_v18 = vrot.slane %v2386_v46, %v5682_v62  ;;  %v2408_v42 = vrot.slane %v2385_v35, %v5682_v62  ;;  %v2415_v54 = vrot.slane %v2387_v33, %v5682_v62  ;;  %v4345_v35 = vld [vmem:[%s7995_s0 + $0xe4] ss:$8 sm:$0xf] }
 0x53a   :  { %v2416_v23 = vcombine.high %v2394_v38, %v2394_v38  ;;  %v2417_v0 = vcombine.high %v2401_v18, %v2401_v18  ;;  %v2418_v43 = vcombine.high %v2408_v42, %v2408_v42  ;;  %v2419_v46 = vcombine.high %v2415_v54, %v2415_v54 }
 0x53b   :  { %v7221_v33 = vadd.f32 %v4338_v51, %v2394_v38  ;;  %v7223_v22 = vadd.f32 %v4339_v56, %v2408_v42  ;;  %v7225_v49 = vadd.f32 %v4342_v44, %v2401_v18  ;;  %v7231_v31 = vadd.f32 %v4343_v36, %v2415_v54 }
 0x53c   :  { %v7227_v27 = vadd.f32 %v4340_v50, %v2416_v23  ;;  %v7229_v63 = vadd.f32 %v4341_v21, %v2418_v43  ;;  %v7233_v24 = vadd.f32 %v4344_v25, %v2417_v0  ;;  %v7237_v19 = vadd.f32 %v4345_v35, %v2419_v46 }
 0x53d   :  { %v2436_v34 = vmul.f32 0.5, %v7221_v33  ;;  %v2437_v41 = vmul.f32 0.5, %v7223_v22  ;;  %v2440_v44 = vmul.f32 0.5, %v7225_v49  ;;  %v2476_v50 = vrot.slane %v7221_v33, 1 }
 0x53e   :  { %v2438_v51 = vmul.f32 0.5, %v7227_v27  ;;  %v2439_v56 = vmul.f32 0.5, %v7229_v63  ;;  %v2441_v38 = vmul.f32 0.5, %v7231_v31  ;;  %v2477_v18 = vrot.slane %v7223_v22, 1 }
 0x53f   :  { %4692 = vtanh.f32 %v2436_v34  ;;  %v2442_v42 = vmul.f32 0.5, %v7233_v24  ;;  %v2478_v54 = vrot.slane %v7227_v27, 1  ;;  %v2443_v21 = vmul.f32 0.5, %v7237_v19 }
 0x540   :  { %4694 = vtanh.f32 %v2437_v41  ;;  %v2479_v36 = vrot.slane %v7229_v63, 1  ;;  %v2480_v34 = vrot.slane %v7225_v49, 1  ;;  %v2492_v25 = vmul.f32 0.5, %v2476_v50 }
 0x541   :  { %4696 = vtanh.f32 %v2438_v51  ;;  %v2481_v23 = vrot.slane %v7231_v31, 1  ;;  %v2493_v41 = vmul.f32 0.5, %v2477_v18  ;;  %v2482_v0 = vrot.slane %v7233_v24, 1 }
 0x542   :  { %4698 = vtanh.f32 %v2439_v56  ;;  %v2494_v43 = vmul.f32 0.5, %v2478_v54  ;;  %v2483_v46 = vrot.slane %v7237_v19, 1  ;;  %v2495_v35 = vmul.f32 0.5, %v2479_v36 }
 0x543   :  { %4700 = vtanh.f32 %v2440_v44  ;;  %v2496_v51 = vmul.f32 0.5, %v2480_v34  ;;  %v2497_v56 = vmul.f32 0.5, %v2481_v23  ;;  %v2498_v44 = vmul.f32 0.5, %v2482_v0 }
 0x544   :  { %4702 = vtanh.f32 %v2441_v38  ;;  %v2499_v20 = vmul.f32 0.5, %v2483_v46  ;;  %v2524_v50 = vrot.slane %v7221_v33, 2  ;;  %v2525_v38 = vrot.slane %v7223_v22, 2 }
 0x545   :  { %4704 = vtanh.f32 %v2442_v42  ;;  %v2526_v18 = vrot.slane %v7227_v27, 2  ;;  %v2527_v54 = vrot.slane %v7229_v63, 2  ;;  %v2549_v36 = vrot.slane %v7223_v22, 3 }
 0x546   :  { %4706 = vtanh.f32 %v2443_v21  ;;  %v2548_v21 = vrot.slane %v7221_v33, 3  ;;  %v2550_v23 = vrot.slane %v7227_v27, 3  ;;  %v2552_v46 = vrot.slane %v7225_v49, 3 }
 0x547   :  { %4708 = vtanh.f32 %v2492_v25  ;;  %v2528_v25 = vrot.slane %v7225_v49, 2  ;;  %v2530_v33 = vrot.slane %v7233_v24, 2  ;;  %v2531_v22 = vrot.slane %v7237_v19, 2 }
 0x548   :  { %4710 = vtanh.f32 %v2493_v41  ;;  %v2551_v41 = vrot.slane %v7229_v63, 3  ;;  %v2555_v63 = vrot.slane %v7237_v19, 3  ;;  %v2564_v27 = vmul.f32 0.5, %v2548_v21 }
 0x549   :  { %4712 = vtanh.f32 %v2494_v43  ;;  %v2529_v43 = vrot.slane %v7231_v31, 2  ;;  %v2566_v49 = vmul.f32 0.5, %v2550_v23  ;;  %v2568_v37 = vmul.f32 0.5, %v2552_v46 }
 0x54a   :  { %4714 = vtanh.f32 %v2495_v35  ;;  %v2553_v35 = vrot.slane %v7231_v31, 3  ;;  %v2567_v59 = vmul.f32 0.5, %v2551_v41  ;;  %v2571_v21 = vmul.f32 0.5, %v2555_v63 }
 0x54b   :  { %4716 = vtanh.f32 %v2496_v51 }
 0x54c   :  { %v4693_v42 = vpop.eup %4692  ;;  %4718 = vtanh.f32 %v2497_v56  ;;  %v2554_v56 = vrot.slane %v7233_v24, 3  ;;  %v2569_v14 = vmul.f32 0.5, %v2553_v35 }
 0x54d   :  { %v4695_v34 = vpop.eup %4694  ;;  %4720 = vtanh.f32 %v2498_v44  ;;  %v2452_v58 = vadd.f32 1.0, %v4693_v42 }
 0x54e   :  { %v4697_v0 = vpop.eup %4696  ;;  %4722 = vtanh.f32 %v2499_v20  ;;  %v2565_v20 = vmul.f32 0.5, %v2549_v36  ;;  %v2453_v29 = vadd.f32 1.0, %v4695_v34  ;;  %v2570_v24 = vmul.f32 0.5, %v2554_v56 }
 0x54f   :  { %v4699_v51 = vpop.eup %4698  ;;  %4724 = vtanh.f32 %v2524_v50  ;;  %v2454_v50 = vadd.f32 1.0, %v4697_v0 }
 0x550   :  { %v4701_v44 = vpop.eup %4700  ;;  %4726 = vtanh.f32 %v2525_v38  ;;  %v2455_v40 = vadd.f32 1.0, %v4699_v51 }
 0x551   :  { %v4703_v28 = vpop.eup %4702  ;;  %4728 = vtanh.f32 %v2526_v18  ;;  %v2456_v15 = vadd.f32 1.0, %v4701_v44  ;;  %v2460_v18 = vmul.f32 0.5, %v2452_v58  ;;  %v2462_v0 = vmul.f32 0.5, %v2454_v50 }
 0x552   :  { %v4705_v31 = vpop.eup %4704  ;;  %4730 = vtanh.f32 %v2527_v54  ;;  %v2457_v19 = vadd.f32 1.0, %v4703_v28  ;;  %v2461_v54 = vmul.f32 0.5, %v2453_v29  ;;  %v2463_v51 = vmul.f32 0.5, %v2455_v40 }
 0x553   :  { %v4707_v39 = vpop.eup %4706  ;;  %4732 = vtanh.f32 %v2528_v25  ;;  %v2458_v42 = vadd.f32 1.0, %v4705_v31  ;;  %v2464_v44 = vmul.f32 0.5, %v2456_v15 }
 0x554   :  { %v4709_v38 = vpop.eup %4708  ;;  %4734 = vtanh.f32 %v2529_v43  ;;  %v2459_v34 = vadd.f32 1.0, %v4707_v39  ;;  %v2465_v28 = vmul.f32 0.5, %v2457_v19 }
 0x555   :  { %v4711_v36 = vpop.eup %4710  ;;  %v2508_v23 = vadd.f32 1.0, %v4709_v38  ;;  %4736 = vtanh.f32 %v2530_v33  ;;  %v2466_v31 = vmul.f32 0.5, %v2458_v42 }
 0x556   :  { %v4713_v41 = vpop.eup %4712  ;;  %v2509_v46 = vadd.f32 1.0, %v4711_v36  ;;  %4738 = vtanh.f32 %v2531_v22  ;;  %v2467_v39 = vmul.f32 0.5, %v2459_v34 }
 0x557   :  { %v4715_v35 = vpop.eup %4714  ;;  %v2510_v25 = vadd.f32 1.0, %v4713_v41  ;;  %v2516_v56 = vmul.f32 0.5, %v2508_v23  ;;  %4740 = vtanh.f32 %v2564_v27 }
 0x558   :  { %v4717_v13 = vpop.eup %4716  ;;  %v2511_v43 = vadd.f32 1.0, %v4715_v35  ;;  %v2517_v63 = vmul.f32 0.5, %v2509_v46  ;;  %4742 = vtanh.f32 %v2565_v20 }
 0x559   :  { %v4719_v12 = vpop.eup %4718  ;;  %v2512_v58 = vadd.f32 1.0, %v4717_v13  ;;  %v2518_v38 = vmul.f32 0.5, %v2510_v25  ;;  %4744 = vtanh.f32 %v2566_v49  ;;  %v2596_v23 = vmul.f32 %v2516_v56, %v6756_v47 }
 0x55a   :  { %v4721_v33 = vpop.eup %4720  ;;  %v2513_v29 = vadd.f32 1.0, %v4719_v12  ;;  %v2519_v36 = vmul.f32 0.5, %v2511_v43  ;;  %4746 = vtanh.f32 %v2567_v59  ;;  %v2597_v42 = vmul.f32 %v2517_v63, %v6759_v60 }
 0x55b   :  { %v4723_v22 = vpop.eup %4722  ;;  %v2514_v50 = vadd.f32 1.0, %v4721_v33  ;;  %v2520_v40 = vmul.f32 0.5, %v2512_v58  ;;  %4748 = vtanh.f32 %v2568_v37  ;;  %v2598_v27 = vmul.f32 %v2518_v38, %v6762_v52 }
 0x55c   :  { %v4725_v15 = vpop.eup %4724  ;;  %v2515_v19 = vadd.f32 1.0, %v4723_v22  ;;  %v2521_v41 = vmul.f32 0.5, %v2513_v29  ;;  %4750 = vtanh.f32 %v2569_v14  ;;  %v2599_v35 = vmul.f32 %v2519_v36, %v6766_v57 }
 0x55d   :  { %v4727_v13 = vpop.eup %4726  ;;  %v2522_v46 = vmul.f32 0.5, %v2514_v50  ;;  %v2604_v12 = vmul.f32 %v4725_v15, %v2460_v18  ;;  %4752 = vtanh.f32 %v2570_v24  ;;  %v2600_v47 = vmul.f32 %v2520_v40, %v6769_v17 }
 0x55e   :  { %v4729_v34 = vpop.eup %4728  ;;  %v2523_v20 = vmul.f32 0.5, %v2515_v19  ;;  %v2605_v49 = vmul.f32 %v4727_v13, %v2461_v54  ;;  %4754 = vtanh.f32 %v2571_v21  ;;  %v2601_v37 = vmul.f32 %v2521_v41, %v6772_v55 }
 0x55f   :  { %v4731_v25 = vpop.eup %4730  ;;  %v2606_v56 = vmul.f32 %v4729_v34, %v2462_v0  ;;  %v7274_v59 = vadd.f32 %v2604_v12, %v2596_v23  ;;  %v2602_v14 = vmul.f32 %v2522_v46, %v6775_v16 }
 0x560   :  { %v4733_v60 = vpop.eup %4732  ;;  %v2607_v43 = vmul.f32 %v4731_v25, %v2463_v51  ;;  %v7277_v52 = vadd.f32 %v2605_v49, %v2597_v42  ;;  %v2603_v17 = vmul.f32 %v2523_v20, %v6778_v48 }
 0x561   :  { %v4735_v18 = vpop.eup %4734  ;;  %v2608_v63 = vmul.f32 %v4733_v60, %v2464_v44  ;;  %v7280_v57 = vadd.f32 %v2606_v56, %v2598_v27  ;;  %4756 = vtanh.f32 %v7274_v59 }
 0x562   :  { %v4737_v24 = vpop.eup %4736  ;;  %v2609_v54 = vmul.f32 %v4735_v18, %v2465_v28  ;;  %v7284_v0 = vadd.f32 %v2607_v43, %v2599_v35  ;;  %4758 = vtanh.f32 %v7277_v52 }
 0x563   :  { %v4739_v55 = vpop.eup %4738  ;;  %v2610_v21 = vmul.f32 %v4737_v24, %v2466_v31  ;;  %v7287_v51 = vadd.f32 %v2608_v63, %v2600_v47  ;;  %4760 = vtanh.f32 %v7280_v57 }
 0x564   :  { %v2611_v16 = vmul.f32 %v4739_v55, %v2467_v39  ;;  %v7290_v44 = vadd.f32 %v2609_v54, %v2601_v37  ;;  %4762 = vtanh.f32 %v7284_v0  ;;  %v4741_v48 = vpop.eup %4740 }
 0x565   :  { %v7293_v58 = vadd.f32 %v2610_v21, %v2602_v14  ;;  %4764 = vtanh.f32 %v7287_v51  ;;  %v4743_v38 = vpop.eup %4742  ;;  %v2580_v39 = vadd.f32 1.0, %v4741_v48 }
 0x566   :  { %v7296_v28 = vadd.f32 %v2611_v16, %v2603_v17  ;;  %4766 = vtanh.f32 %v7290_v44  ;;  %v4745_v31 = vpop.eup %4744  ;;  %v2581_v36 = vadd.f32 1.0, %v4743_v38 }
 0x567   :  { %4768 = vtanh.f32 %v7293_v58  ;;  %v4747_v33 = vpop.eup %4746  ;;  %v2582_v50 = vadd.f32 1.0, %v4745_v31  ;;  %v2588_v41 = vmul.f32 0.5, %v2580_v39 }
 0x568   :  { %4770 = vtanh.f32 %v7296_v28  ;;  %v4749_v29 = vpop.eup %4748  ;;  %v2583_v23 = vadd.f32 1.0, %v4747_v33  ;;  %v2589_v46 = vmul.f32 0.5, %v2581_v36 }
 0x569   :  { %v4751_v22 = vpop.eup %4750  ;;  %v2584_v19 = vadd.f32 1.0, %v4749_v29  ;;  %v2590_v34 = vmul.f32 0.5, %v2582_v50 }
 0x56a   :  { %v4753_v40 = vpop.eup %4752  ;;  %v2585_v13 = vadd.f32 1.0, %v4751_v22  ;;  %v2591_v25 = vmul.f32 0.5, %v2583_v23 }
 0x56b   :  { %v4755_v15 = vpop.eup %4754  ;;  %v2586_v12 = vadd.f32 1.0, %v4753_v40  ;;  %v2592_v60 = vmul.f32 0.5, %v2584_v19 }
 0x56c   :  { %v2587_v49 = vadd.f32 1.0, %v4755_v15  ;;  %v2593_v18 = vmul.f32 0.5, %v2585_v13  ;;  %v8377_v13 = vld [vmem:[#allocation21_spill] sm:$0xff] }
 0x56d   :  { %v2594_v17 = vmul.f32 0.5, %v2586_v12  ;;  %v8380_v12 = vld [vmem:[#allocation24_spill] sm:$0xff] }
 0x56e   :  { %v4757_v42 = vpop.eup %4756  ;;  %v2595_v21 = vmul.f32 0.5, %v2587_v49  ;;  %v8384_v49 = vld [vmem:[#allocation28_spill] sm:$0xff] }
 0x56f   :  { %v4759_v27 = vpop.eup %4758  ;;  %v2628_v20 = vmul.f32 %v4757_v42, %v2588_v41 }
 0x570   :  { %v4761_v35 = vpop.eup %4760  ;;  %v2629_v47 = vmul.f32 %v4759_v27, %v2589_v46  ;;  %v8378_v46 = vld [vmem:[#allocation22_spill] sm:$0xff]  ;;  %v8379_v27 = vld [vmem:[#allocation23_spill] sm:$0xff] }
 0x571   :  { %v4763_v56 = vpop.eup %4762  ;;  %v2630_v37 = vmul.f32 %v4761_v35, %v2590_v34  ;;  %2636 = vst [vmem:[%s7996_s2 + $0x4] sm:$0x1] %v2628_v20  ;;  %v8381_v34 = vld [vmem:[#allocation25_spill] sm:$0xff]  ;;  %v8383_v35 = vld [vmem:[#allocation27_spill] sm:$0xff] }
 0x572   :  { %v4765_v43 = vpop.eup %4764  ;;  %v2631_v14 = vmul.f32 %v4763_v56, %v2591_v25  ;;  %2637 = vst [vmem:[%s7996_s2 + $0xc] sm:$0x1] %v2629_v47  ;;  %v2668_v63 = vcombine.low %v2628_v20, %v2629_v47  ;;  %v8382_v20 = vld [vmem:[#allocation26_spill] sm:$0xff]  ;;  %v8385_v25 = vld [vmem:[#allocation29_spill] sm:$0xff]  ;;  %v8387_v56 = vld [vmem:[#allocation31_spill] sm:$0xff] }
 0x573   :  { %v4767_v24 = vpop.eup %4766  ;;  %v2632_v54 = vmul.f32 %v4765_v43, %v2592_v60  ;;  %2638 = vst [vmem:[%s7996_s2 + $0x14] sm:$0x1] %v2630_v37  ;;  %v8386_v47 = vld [vmem:[#allocation30_spill] sm:$0xff]  ;;  %v8388_v60 = vld [vmem:[#allocation32_spill] sm:$0xff] }
 0x574   :  { %v4769_v55 = vpop.eup %4768  ;;  %v2633_v16 = vmul.f32 %v4767_v24, %v2593_v18  ;;  %2639 = vst [vmem:[%s7996_s2 + $0x1c] sm:$0x1] %v2631_v14  ;;  %v2669_v48 = vcombine.low %v2630_v37, %v2631_v14  ;;  %v2678_v29 = vrot.slane %v2668_v63, %v5682_v62  ;;  %v8389_v37 = vld [vmem:[#allocation33_spill] sm:$0xff]  ;;  %v8390_v43 = vld [vmem:[#allocation34_spill] sm:$0xff]  ;;  %v8391_v18 = vld [vmem:[#allocation35_spill] sm:$0xff] }
 0x575   :  { %v4771_v38 = vpop.eup %4770  ;;  %v2634_v31 = vmul.f32 %v4769_v55, %v2594_v17  ;;  %2640 = vst [vmem:[%s7996_s2 + $0x24] sm:$0x1] %v2632_v54  ;;  %v8392_v14 = vld [vmem:[#allocation36_spill] sm:$0xff]  ;;  %v8393_v63 = vld [vmem:[#allocation37_spill] sm:$0xff]  ;;  %v8394_v24 = vld [vmem:[#allocation38_spill] sm:$0xff] }
 0x576   :  { %v2635_v33 = vmul.f32 %v4771_v38, %v2595_v21  ;;  %2641 = vst [vmem:[%s7996_s2 + $0x2c] sm:$0x1] %v2633_v16  ;;  %v2670_v39 = vcombine.low %v2632_v54, %v2633_v16  ;;  %v2685_v36 = vrot.slane %v2669_v48, %v5682_v62  ;;  %v8395_v17 = vld [vmem:[#allocation39_spill] sm:$0xff]  ;;  %v8396_v54 = vld [vmem:[#allocation40_spill] sm:$0xff]  ;;  %v8397_v55 = vld [vmem:[#allocation41_spill] sm:$0xff] }
 0x577   :  { %2642 = vst [vmem:[%s7996_s2 + $0x34] sm:$0x1] %v2634_v31  ;;  %v8398_v21 = vld [vmem:[#allocation42_spill] sm:$0xff]  ;;  %v8399_v16 = vld [vmem:[#allocation43_spill] sm:$0xff]  ;;  %v8400_v48 = vld [vmem:[#allocation44_spill] sm:$0xff] }
 0x578   :  { %2643 = vst [vmem:[%s7996_s2 + $0x3c] sm:$0x1] %v2635_v33  ;;  %v2671_v22 = vcombine.low %v2634_v31, %v2635_v33  ;;  %v2700_v50 = vcombine.low %v2678_v29, %v2685_v36  ;;  %v2692_v40 = vrot.slane %v2670_v39, %v5682_v62  ;;  %v8401_v38 = vld [vmem:[#allocation45_spill] sm:$0xff]  ;;  %v8402_v31 = vld [vmem:[#allocation46_spill] sm:$0xff]  ;;  %v8403_v33 = vld [vmem:[#allocation47_spill] sm:$0xff]  ;;  %v8404_v39 = vmov 0.0  }
 0x579   :  { %v8405_v29 = vld [vmem:[#allocation48_spill] sm:$0xff]  ;;  %v5140_v36 = vld [vmem:[%s7994_s1 + $0x1e8] sm:$0xff] }
 0x57a   :  { %v2699_v23 = vrot.slane %v2671_v22, %v5682_v62  ;;  %v2708_v19 = vrot.slane %v2700_v50, %v5682_v62  ;;  %v5141_v22 = vld [vmem:[%s7994_s1 + $0x1f8] sm:$0xff] }
 0x57c   :  { %v2701_v15 = vcombine.low %v2692_v40, %v2699_v23 }
 0x57e   :  { %v2715_v41 = vrot.slane %v2701_v15, %v5682_v62 }
 0x580   :  { %v2716_v42 = vcombine.low %v2708_v19, %v2715_v41 }
 0x582   :  { %2783 = vmatmul.mubr.f32.vlgmr.msra.gmra.mxu0 %v2716_v42  ;;  %2854 = vmatmul.mubr.f32.vlgmr.msra.gmra.mxu1 %v2716_v42 }
 0x583   :  { %3231 = vmatpush1.msra.mxu0 %v6816_v30  ;;  %3302 = vmatpush1.msra.mxu1 %v6822_v26  ;;  %v8360_v30 = vld [vmem:[#allocation4_spill] sm:$0xff]  ;;  %v8361_v26 = vld [vmem:[#allocation5_spill] sm:$0xff] }
 0x584   :  { %3232 = vmatprep.subr.mxu0 %v6828_v61  ;;  %3303 = vmatprep.subr.mxu1 %v6834_v45  ;;  %v8362_v61 = vld [vmem:[#allocation6_spill] sm:$0xff]  ;;  %v8363_v45 = vld [vmem:[#allocation7_spill] sm:$0xff] }
 0x585   :  { %3233 = vmatpush1.msra.mxu0 %v6840_v53  ;;  %3304 = vmatpush1.msra.mxu1 %v6846_v3  ;;  %v8364_v53 = vld [vmem:[#allocation8_spill] sm:$0xff]  ;;  %v8365_v3 = vld [vmem:[#allocation9_spill] sm:$0xff] }
 0x586   :  { %3234 = vmatprep.subr.mxu0 %v6852_v1  ;;  %3305 = vmatprep.subr.mxu1 %v6858_v32  ;;  %v8366_v1 = vld [vmem:[#allocation10_spill] sm:$0xff]  ;;  %v8367_v32 = vld [vmem:[#allocation11_spill] sm:$0xff] }
 0x587   :  { %3235 = vmatpush1.msra.mxu0 %v6864_v2  ;;  %3306 = vmatpush1.msra.mxu1 %v6870_v4  ;;  %v8368_v2 = vld [vmem:[#allocation12_spill] sm:$0xff]  ;;  %v8369_v4 = vld [vmem:[#allocation13_spill] sm:$0xff] }
 0x588   :  { %3236 = vmatprep.subr.mxu0 %v6876_v5  ;;  %3307 = vmatprep.subr.mxu1 %v6882_v6  ;;  %v8370_v5 = vld [vmem:[#allocation14_spill] sm:$0xff]  ;;  %v8371_v6 = vld [vmem:[#allocation15_spill] sm:$0xff] }
 0x589   :  { %3237 = vmatpush1.msra.mxu0 %v6888_v7  ;;  %3308 = vmatpush1.msra.mxu1 %v6894_v8  ;;  %v8372_v7 = vld [vmem:[#allocation16_spill] sm:$0xff]  ;;  %v8373_v8 = vld [vmem:[#allocation17_spill] sm:$0xff] }
 0x58a   :  { %3238 = vmatprep.subr.mxu0 %v6900_v9  ;;  %3309 = vmatprep.subr.mxu1 %v6906_v10  ;;  %v8374_v9 = vld [vmem:[#allocation18_spill] sm:$0xff]  ;;  %v8375_v10 = vld [vmem:[#allocation19_spill] sm:$0xff] }
 0x58b   :  { %3239 = vmatpush1.msra.mxu0 %v6912_v11  ;;  %3310 = vmatpush1.msra.mxu1 %v8360_v30  ;;  %v8376_v11 = vld [vmem:[#allocation20_spill] sm:$0xff] }
 0x58c   :  { %3240 = vmatprep.subr.mxu0 %v8361_v26  ;;  %3311 = vmatprep.subr.mxu1 %v8362_v61 }
 0x58d   :  { %3241 = vmatpush1.msra.mxu0 %v8363_v45  ;;  %3312 = vmatpush1.msra.mxu1 %v8364_v53 }
 0x58e   :  { %3242 = vmatprep.subr.mxu0 %v8365_v3  ;;  %3313 = vmatprep.subr.mxu1 %v8366_v1 }
 0x58f   :  { %3243 = vmatpush1.msra.mxu0 %v8367_v32  ;;  %3314 = vmatpush1.msra.mxu1 %v8368_v2 }
 0x590   :  { %3244 = vmatprep.subr.mxu0 %v8369_v4  ;;  %3315 = vmatprep.subr.mxu1 %v8370_v5  ;;  %v4346_v4 = vld [vmem:[%s7995_s0 + $0x5] ss:$8 sm:$0xf] }
 0x591   :  { %3245 = vmatpush1.msra.mxu0 %v8371_v6  ;;  %3316 = vmatpush1.msra.mxu1 %v8372_v7  ;;  %v4347_v5 = vld [vmem:[%s7995_s0 + $0x25] ss:$8 sm:$0xf] }
 0x592   :  { %3246 = vmatprep.subr.mxu0 %v8373_v8  ;;  %3317 = vmatprep.subr.mxu1 %v8374_v9  ;;  %v4348_v6 = vld [vmem:[%s7995_s0 + $0x45] ss:$8 sm:$0xf] }
 0x593   :  { %3247 = vmatpush1.msra.mxu0 %v8375_v10  ;;  %3318 = vmatpush1.msra.mxu1 %v8376_v11  ;;  %v4350_v7 = vld [vmem:[%s7995_s0 + $0x85] ss:$8 sm:$0xf] }
 0x594   :  { %3248 = vmatprep.subr.mxu0 %v8377_v13  ;;  %3319 = vmatprep.subr.mxu1 %v8378_v46  ;;  %v4349_v13 = vld [vmem:[%s7995_s0 + $0x65] ss:$8 sm:$0xf] }
 0x595   :  { %3249 = vmatpush1.msra.mxu0 %v8379_v27  ;;  %3320 = vmatpush1.msra.mxu1 %v8380_v12  ;;  %v4351_v46 = vld [vmem:[%s7995_s0 + $0xa5] ss:$8 sm:$0xf] }
 0x596   :  { %3250 = vmatprep.subr.mxu0 %v8381_v34  ;;  %3321 = vmatprep.subr.mxu1 %v8382_v20  ;;  %v4352_v27 = vld [vmem:[%s7995_s0 + $0xc5] ss:$8 sm:$0xf] }
 0x597   :  { %3251 = vmatpush1.msra.mxu0 %v8383_v35  ;;  %3322 = vmatpush1.msra.mxu1 %v8384_v49  ;;  %v4353_v49 = vld [vmem:[%s7995_s0 + $0xe5] ss:$8 sm:$0xf] }
 0x598   :  { %3252 = vmatprep.subr.mxu0 %v8385_v25  ;;  %3323 = vmatprep.subr.mxu1 %v8386_v47 }
 0x599   :  { %3253 = vmatpush1.msra.mxu0 %v8387_v56  ;;  %3324 = vmatpush1.msra.mxu1 %v8388_v60 }
 0x59a   :  { %3254 = vmatprep.subr.mxu0 %v8389_v37  ;;  %3325 = vmatprep.subr.mxu1 %v8390_v43 }
 0x59b   :  { %3255 = vmatpush1.msra.mxu0 %v8391_v18  ;;  %3326 = vmatpush1.msra.mxu1 %v8392_v14 }
 0x59c   :  { %3256 = vmatprep.subr.mxu0 %v8393_v63  ;;  %3327 = vmatprep.subr.mxu1 %v8394_v24 }
 0x59d   :  { %3257 = vmatpush1.msra.mxu0 %v8395_v17  ;;  %3328 = vmatpush1.msra.mxu1 %v8396_v54 }
 0x59e   :  { %3258 = vmatprep.subr.mxu0 %v8397_v55  ;;  %3329 = vmatprep.subr.mxu1 %v8398_v21 }
 0x59f   :  { %3259 = vmatpush1.msra.mxu0 %v8399_v16  ;;  %3330 = vmatpush1.msra.mxu1 %v8400_v48 }
 0x5a0   :  { %3260 = vmatprep.subr.mxu0 %v8401_v38  ;;  %3331 = vmatprep.subr.mxu1 %v8402_v31 }
 0x5a1   :  { %3261 = vmatpush1.msra.mxu0 %v8403_v33  ;;  %3294 = vmatprep.mubr.f32.mxu0 %v8404_v39 }
 0x5a2   :  { %3332 = vmatpush1.msra.mxu1 %v8405_v29  ;;  %3365 = vmatprep.mubr.f32.mxu1 %v8404_v39 }
 0x5a3   :  { %3742 = vmatprep.subr.mxu0 %v5140_v36  ;;  %3813 = vmatprep.subr.mxu1 %v5141_v22 }
 0x642   :  { %v2784_v50 = vpop.f32.mrf.mxu0  ;;  %v2855_v40 = vpop.f32.mrf.mxu1 }
 0x644   :  { %v2786_v23 = vpop.f32.mrf.mxu0  ;;  %v2857_v15 = vpop.f32.mrf.mxu1 }
 0x645   :  { %v2864_v19 = vcombine.low %v2784_v50, %v2786_v23  ;;  %v2865_v41 = vcombine.high %v2784_v50, %v2786_v23  ;;  %v2866_v42 = vcombine.low %v2855_v40, %v2857_v15  ;;  %v2867_v30 = vcombine.high %v2855_v40, %v2857_v15 }
 0x647   :  { %v2874_v26 = vrot.slane %v2864_v19, %v5682_v62  ;;  %v2881_v61 = vrot.slane %v2865_v41, %v5682_v62  ;;  %v2888_v45 = vrot.slane %v2866_v42, %v5682_v62  ;;  %v2895_v53 = vrot.slane %v2867_v30, %v5682_v62 }
 0x649   :  { %v2896_v3 = vcombine.low %v2874_v26, %v2888_v45  ;;  %v2897_v1 = vcombine.high %v2874_v26, %v2888_v45  ;;  %v2898_v32 = vcombine.low %v2881_v61, %v2895_v53  ;;  %v2899_v2 = vcombine.high %v2881_v61, %v2895_v53 }
 0x64b   :  { %v2906_v8 = vrot.slane %v2896_v3, %v5682_v62  ;;  %v2913_v9 = vrot.slane %v2898_v32, %v5682_v62  ;;  %v2920_v10 = vrot.slane %v2897_v1, %v5682_v62  ;;  %v2927_v11 = vrot.slane %v2899_v2, %v5682_v62 }
 0x64d   :  { %v2928_v12 = vcombine.high %v2906_v8, %v2906_v8  ;;  %v2929_v34 = vcombine.high %v2913_v9, %v2913_v9  ;;  %v2930_v20 = vcombine.high %v2920_v10, %v2920_v10  ;;  %v2931_v35 = vcombine.high %v2927_v11, %v2927_v11 }
 0x64e   :  { %v7433_v25 = vadd.f32 %v4346_v4, %v2906_v8  ;;  %v7435_v47 = vadd.f32 %v4347_v5, %v2920_v10  ;;  %v7437_v56 = vadd.f32 %v4350_v7, %v2913_v9  ;;  %v7443_v43 = vadd.f32 %v4351_v46, %v2927_v11 }
 0x64f   :  { %v7439_v60 = vadd.f32 %v4348_v6, %v2928_v12  ;;  %v7441_v37 = vadd.f32 %v4349_v13, %v2930_v20  ;;  %v7445_v18 = vadd.f32 %v4352_v27, %v2929_v34  ;;  %v7449_v24 = vadd.f32 %v4353_v49, %v2931_v35 }
 0x650   :  { %v2948_v14 = vmul.f32 0.5, %v7433_v25  ;;  %v2949_v63 = vmul.f32 0.5, %v7435_v47  ;;  %v2952_v55 = vmul.f32 0.5, %v7437_v56  ;;  %v2988_v21 = vrot.slane %v7433_v25, 1 }
 0x651   :  { %v2950_v17 = vmul.f32 0.5, %v7439_v60  ;;  %v2951_v54 = vmul.f32 0.5, %v7441_v37  ;;  %v2953_v16 = vmul.f32 0.5, %v7443_v43  ;;  %v2989_v48 = vrot.slane %v7435_v47, 1 }
 0x652   :  { %4772 = vtanh.f32 %v2948_v14  ;;  %v2954_v38 = vmul.f32 0.5, %v7445_v18  ;;  %v2990_v31 = vrot.slane %v7439_v60, 1  ;;  %v2955_v33 = vmul.f32 0.5, %v7449_v24 }
 0x653   :  { %4774 = vtanh.f32 %v2949_v63  ;;  %v2991_v29 = vrot.slane %v7441_v37, 1  ;;  %v2992_v36 = vrot.slane %v7437_v56, 1  ;;  %v3004_v22 = vmul.f32 0.5, %v2988_v21 }
 0x654   :  { %4776 = vtanh.f32 %v2950_v17  ;;  %v2993_v50 = vrot.slane %v7443_v43, 1  ;;  %v3005_v40 = vmul.f32 0.5, %v2989_v48  ;;  %v2994_v23 = vrot.slane %v7445_v18, 1 }
 0x655   :  { %4778 = vtanh.f32 %v2951_v54  ;;  %v3006_v15 = vmul.f32 0.5, %v2990_v31  ;;  %v2995_v19 = vrot.slane %v7449_v24, 1  ;;  %v3007_v41 = vmul.f32 0.5, %v2991_v29 }
 0x656   :  { %4780 = vtanh.f32 %v2952_v55  ;;  %v3008_v42 = vmul.f32 0.5, %v2992_v36  ;;  %v3009_v30 = vmul.f32 0.5, %v2993_v50  ;;  %v3010_v26 = vmul.f32 0.5, %v2994_v23 }
 0x657   :  { %4782 = vtanh.f32 %v2953_v16  ;;  %v3011_v61 = vmul.f32 0.5, %v2995_v19  ;;  %v3036_v45 = vrot.slane %v7433_v25, 2  ;;  %v3037_v53 = vrot.slane %v7435_v47, 2 }
 0x658   :  { %4784 = vtanh.f32 %v2954_v38  ;;  %v3038_v3 = vrot.slane %v7439_v60, 2  ;;  %v3039_v32 = vrot.slane %v7441_v37, 2  ;;  %v3060_v2 = vrot.slane %v7433_v25, 3 }
 0x659   :  { %4786 = vtanh.f32 %v2955_v33  ;;  %v3061_v4 = vrot.slane %v7435_v47, 3  ;;  %v3040_v6 = vrot.slane %v7437_v56, 2  ;;  %v3062_v7 = vrot.slane %v7439_v60, 3 }
 0x65a   :  { %4788 = vtanh.f32 %v3004_v22  ;;  %v3063_v8 = vrot.slane %v7441_v37, 3  ;;  %v3041_v10 = vrot.slane %v7443_v43, 2  ;;  %v3064_v11 = vrot.slane %v7437_v56, 3 }
 0x65b   :  { %4790 = vtanh.f32 %v3005_v40  ;;  %v3065_v13 = vrot.slane %v7443_v43, 3  ;;  %v3042_v27 = vrot.slane %v7445_v18, 2  ;;  %v3043_v12 = vrot.slane %v7449_v24, 2 }
 0x65c   :  { %4792 = vtanh.f32 %v3006_v15  ;;  %v3066_v34 = vrot.slane %v7445_v18, 3  ;;  %v3067_v35 = vrot.slane %v7449_v24, 3  ;;  %v3076_v49 = vmul.f32 0.5, %v3060_v2 }
 0x65d   :  { %4794 = vtanh.f32 %v3007_v41  ;;  %v3077_v25 = vmul.f32 0.5, %v3061_v4  ;;  %v3078_v56 = vmul.f32 0.5, %v3062_v7  ;;  %v3079_v37 = vmul.f32 0.5, %v3063_v8 }
 0x65e   :  { %4796 = vtanh.f32 %v3008_v42  ;;  %v3080_v63 = vmul.f32 0.5, %v3064_v11  ;;  %v3081_v17 = vmul.f32 0.5, %v3065_v13  ;;  %v3082_v18 = vmul.f32 0.5, %v3066_v34 }
 0x65f   :  { %v4773_v1 = vpop.eup %4772  ;;  %4798 = vtanh.f32 %v3009_v30  ;;  %v3083_v38 = vmul.f32 0.5, %v3067_v35 }
 0x660   :  { %v4775_v5 = vpop.eup %4774  ;;  %4800 = vtanh.f32 %v3010_v26  ;;  %v2964_v60 = vadd.f32 1.0, %v4773_v1 }
 0x661   :  { %v4777_v9 = vpop.eup %4776  ;;  %4802 = vtanh.f32 %v3011_v61  ;;  %v2965_v14 = vadd.f32 1.0, %v4775_v5 }
 0x662   :  { %v4779_v46 = vpop.eup %4778  ;;  %4804 = vtanh.f32 %v3036_v45  ;;  %v2966_v55 = vadd.f32 1.0, %v4777_v9  ;;  %v2972_v29 = vmul.f32 0.5, %v2964_v60 }
 0x663   :  { %v4781_v20 = vpop.eup %4780  ;;  %4806 = vtanh.f32 %v3037_v53  ;;  %v2967_v21 = vadd.f32 1.0, %v4779_v46  ;;  %v2973_v40 = vmul.f32 0.5, %v2965_v14 }
 0x664   :  { %v4783_v47 = vpop.eup %4782  ;;  %4808 = vtanh.f32 %v3038_v3  ;;  %v2968_v48 = vadd.f32 1.0, %v4781_v20  ;;  %v2974_v19 = vmul.f32 0.5, %v2966_v55 }
 0x665   :  { %v4785_v43 = vpop.eup %4784  ;;  %4810 = vtanh.f32 %v3039_v32  ;;  %v2969_v24 = vadd.f32 1.0, %v4783_v47  ;;  %v2975_v41 = vmul.f32 0.5, %v2967_v21 }
 0x666   :  { %v4787_v54 = vpop.eup %4786  ;;  %4812 = vtanh.f32 %v3040_v6  ;;  %v2970_v33 = vadd.f32 1.0, %v4785_v43  ;;  %v2976_v61 = vmul.f32 0.5, %v2968_v48 }
 0x667   :  { %v4789_v16 = vpop.eup %4788  ;;  %4814 = vtanh.f32 %v3041_v10  ;;  %v2971_v50 = vadd.f32 1.0, %v4787_v54  ;;  %v2977_v45 = vmul.f32 0.5, %v2969_v24 }
 0x668   :  { %v4791_v31 = vpop.eup %4790  ;;  %v3020_v36 = vadd.f32 1.0, %v4789_v16  ;;  %4816 = vtanh.f32 %v3042_v27  ;;  %v2978_v32 = vmul.f32 0.5, %v2970_v33 }
 0x669   :  { %v4793_v22 = vpop.eup %4792  ;;  %v3021_v23 = vadd.f32 1.0, %v4791_v31  ;;  %4818 = vtanh.f32 %v3043_v12  ;;  %v2979_v6 = vmul.f32 0.5, %v2971_v50 }
 0x66a   :  { %v4795_v15 = vpop.eup %4794  ;;  %v3022_v42 = vadd.f32 1.0, %v4793_v22  ;;  %v3028_v30 = vmul.f32 0.5, %v3020_v36  ;;  %4820 = vtanh.f32 %v3076_v49 }
 0x66b   :  { %v4797_v26 = vpop.eup %4796  ;;  %v3023_v53 = vadd.f32 1.0, %v4795_v15  ;;  %v3029_v3 = vmul.f32 0.5, %v3021_v23  ;;  %4822 = vtanh.f32 %v3077_v25 }
 0x66c   :  { %v4799_v1 = vpop.eup %4798  ;;  %v3024_v2 = vadd.f32 1.0, %v4797_v26  ;;  %v3030_v4 = vmul.f32 0.5, %v3022_v42  ;;  %4824 = vtanh.f32 %v3078_v56  ;;  %v3108_v13 = vmul.f32 %v3028_v30, %v7274_v59 }
 0x66d   :  { %v4801_v5 = vpop.eup %4800  ;;  %v3025_v7 = vadd.f32 1.0, %v4799_v1  ;;  %v3031_v8 = vmul.f32 0.5, %v3023_v53  ;;  %4826 = vtanh.f32 %v3079_v37  ;;  %v3109_v34 = vmul.f32 %v3029_v3, %v7277_v52 }
 0x66e   :  { %v4803_v9 = vpop.eup %4802  ;;  %v3026_v10 = vadd.f32 1.0, %v4801_v5  ;;  %v3032_v11 = vmul.f32 0.5, %v3024_v2  ;;  %4828 = vtanh.f32 %v3080_v63  ;;  %v3110_v49 = vmul.f32 %v3030_v4, %v7280_v57 }
 0x66f   :  { %v4805_v46 = vpop.eup %4804  ;;  %v3027_v27 = vadd.f32 1.0, %v4803_v9  ;;  %v3033_v12 = vmul.f32 0.5, %v3025_v7  ;;  %4830 = vtanh.f32 %v3081_v17  ;;  %v3111_v43 = vmul.f32 %v3031_v8, %v7284_v0 }
 0x670   :  { %v4807_v20 = vpop.eup %4806  ;;  %v3034_v35 = vmul.f32 0.5, %v3026_v10  ;;  %v3116_v47 = vmul.f32 %v4805_v46, %v2972_v29  ;;  %4832 = vtanh.f32 %v3082_v18  ;;  %v3112_v59 = vmul.f32 %v3032_v11, %v7287_v51 }
 0x671   :  { %v4809_v60 = vpop.eup %4808  ;;  %v3035_v25 = vmul.f32 0.5, %v3027_v27  ;;  %v3117_v56 = vmul.f32 %v4807_v20, %v2973_v40  ;;  %4834 = vtanh.f32 %v3083_v38  ;;  %v3113_v63 = vmul.f32 %v3033_v12, %v7290_v44 }
 0x672   :  { %v4811_v14 = vpop.eup %4810  ;;  %v3118_v54 = vmul.f32 %v4809_v60, %v2974_v19  ;;  %v7486_v37 = vadd.f32 %v3116_v47, %v3108_v13  ;;  %v3114_v17 = vmul.f32 %v3034_v35, %v7293_v58 }
 0x673   :  { %v4813_v52 = vpop.eup %4812  ;;  %v3119_v55 = vmul.f32 %v4811_v14, %v2975_v41  ;;  %v7489_v57 = vadd.f32 %v3117_v56, %v3109_v34  ;;  %v3115_v51 = vmul.f32 %v3035_v25, %v7296_v28 }
 0x674   :  { %v4815_v21 = vpop.eup %4814  ;;  %v3120_v16 = vmul.f32 %v4813_v52, %v2976_v61  ;;  %v7492_v0 = vadd.f32 %v3118_v54, %v3110_v49  ;;  %4836 = vtanh.f32 %v7486_v37 }
 0x675   :  { %v4817_v18 = vpop.eup %4816  ;;  %v3121_v48 = vmul.f32 %v4815_v21, %v2977_v45  ;;  %v7496_v24 = vadd.f32 %v3119_v55, %v3111_v43  ;;  %4838 = vtanh.f32 %v7489_v57 }
 0x676   :  { %v4819_v44 = vpop.eup %4818  ;;  %v3122_v38 = vmul.f32 %v4817_v18, %v2978_v32  ;;  %v7499_v31 = vadd.f32 %v3120_v16, %v3112_v59  ;;  %4840 = vtanh.f32 %v7492_v0 }
 0x677   :  { %v3123_v58 = vmul.f32 %v4819_v44, %v2979_v6  ;;  %v7502_v33 = vadd.f32 %v3121_v48, %v3113_v63  ;;  %4842 = vtanh.f32 %v7496_v24  ;;  %v4821_v28 = vpop.eup %4820 }
 0x678   :  { %v7505_v29 = vadd.f32 %v3122_v38, %v3114_v17  ;;  %4844 = vtanh.f32 %v7499_v31  ;;  %v4823_v22 = vpop.eup %4822  ;;  %v3092_v23 = vadd.f32 1.0, %v4821_v28  ;;  %v5143_v28 = vld [vmem:[%s7994_s1 + $0x1f0] sm:$0xff] }
 0x679   :  { %v7508_v36 = vadd.f32 %v3123_v58, %v3115_v51  ;;  %4846 = vtanh.f32 %v7502_v33  ;;  %v4825_v50 = vpop.eup %4824  ;;  %v3093_v19 = vadd.f32 1.0, %v4823_v22  ;;  %v5142_v58 = vld [vmem:[%s7994_s1 + $0x1e0] sm:$0xff]  ;;  %v5144_v22 = vld [vmem:[%s7994_s1 + $0x1c8] sm:$0xff] }
 0x67a   :  { %4848 = vtanh.f32 %v7505_v29  ;;  %v4827_v40 = vpop.eup %4826  ;;  %v3094_v42 = vadd.f32 1.0, %v4825_v50  ;;  %v3100_v53 = vmul.f32 0.5, %v3092_v23  ;;  %v5145_v50 = vld [vmem:[%s7994_s1 + $0x1d8] sm:$0xff]  ;;  %v5147_v23 = vld [vmem:[%s7994_s1 + $0x1d0] sm:$0xff] }
 0x67b   :  { %4850 = vtanh.f32 %v7508_v36  ;;  %v4829_v15 = vpop.eup %4828  ;;  %v3095_v26 = vadd.f32 1.0, %v4827_v40  ;;  %v3101_v32 = vmul.f32 0.5, %v3093_v19  ;;  %v5146_v40 = vld [vmem:[%s7994_s1 + $0x1c0] sm:$0xff]  ;;  %v5149_v19 = vld [vmem:[%s7994_s1 + $0x1b8] sm:$0xff] }
 0x67c   :  { %v4831_v41 = vpop.eup %4830  ;;  %v3096_v45 = vadd.f32 1.0, %v4829_v15  ;;  %v3102_v5 = vmul.f32 0.5, %v3094_v42  ;;  %v5148_v15 = vld [vmem:[%s7994_s1 + $0x1a8] sm:$0xff]  ;;  %v5151_v42 = vld [vmem:[%s7994_s1 + $0x1b0] sm:$0xff] }
 0x67d   :  { %v4833_v30 = vpop.eup %4832  ;;  %v3097_v1 = vadd.f32 1.0, %v4831_v41  ;;  %v3103_v9 = vmul.f32 0.5, %v3095_v26  ;;  %v5150_v41 = vld [vmem:[%s7994_s1 + $0x1a0] sm:$0xff]  ;;  %v5153_v26 = vld [vmem:[%s7994_s1 + $0x198] sm:$0xff] }
 0x67e   :  { %v4835_v61 = vpop.eup %4834  ;;  %v3098_v4 = vadd.f32 1.0, %v4833_v30  ;;  %v3104_v13 = vmul.f32 0.5, %v3096_v45  ;;  %v5152_v30 = vld [vmem:[%s7994_s1 + $0x188] sm:$0xff]  ;;  %v5155_v45 = vld [vmem:[%s7994_s1 + $0x190] sm:$0xff] }
 0x67f   :  { %v3099_v8 = vadd.f32 1.0, %v4835_v61  ;;  %v3105_v12 = vmul.f32 0.5, %v3097_v1  ;;  %v5154_v61 = vld [vmem:[%s7994_s1 + $0x180] sm:$0xff] }
 0x680   :  { %v3106_v49 = vmul.f32 0.5, %v3098_v4  ;;  %v5158_v1 = vld [vmem:[%s7994_s1 + $0x160] sm:$0xff]  ;;  %v5161_v4 = vld [vmem:[%s7994_s1 + $0x158] sm:$0xff] }
 0x681   :  { %v4837_v3 = vpop.eup %4836  ;;  %v3107_v25 = vmul.f32 0.5, %v3099_v8  ;;  %v5165_v8 = vld [vmem:[%s7994_s1 + $0x138] sm:$0xff] }
 0x682   :  { %v4839_v2 = vpop.eup %4838  ;;  %v3140_v6 = vmul.f32 %v4837_v3, %v3100_v53  ;;  %v5156_v53 = vld [vmem:[%s7994_s1 + $0x168] sm:$0xff]  ;;  %v5157_v3 = vld [vmem:[%s7994_s1 + $0x178] sm:$0xff] }
 0x683   :  { %v4841_v7 = vpop.eup %4840  ;;  %v3141_v10 = vmul.f32 %v4839_v2, %v3101_v32  ;;  %v5159_v32 = vld [vmem:[%s7994_s1 + $0x170] sm:$0xff]  ;;  %v5160_v2 = vld [vmem:[%s7994_s1 + $0x148] sm:$0xff] }
 0x684   :  { %v4843_v11 = vpop.eup %4842  ;;  %v3142_v46 = vmul.f32 %v4841_v7, %v3102_v5  ;;  %3148 = vst [vmem:[%s7996_s2 + $0x5] sm:$0x1] %v3140_v6  ;;  %v5162_v5 = vld [vmem:[%s7994_s1 + $0x140] sm:$0xff]  ;;  %v5164_v7 = vld [vmem:[%s7994_s1 + $0x128] sm:$0xff] }
 0x685   :  { %v4845_v27 = vpop.eup %4844  ;;  %v3143_v34 = vmul.f32 %v4843_v11, %v3103_v9  ;;  %3149 = vst [vmem:[%s7996_s2 + $0xd] sm:$0x1] %v3141_v10  ;;  %v3180_v20 = vcombine.low %v3140_v6, %v3141_v10  ;;  %v5163_v6 = vld [vmem:[%s7994_s1 + $0x150] sm:$0xff]  ;;  %v5166_v9 = vld [vmem:[%s7994_s1 + $0x120] sm:$0xff]  ;;  %v5168_v11 = vld [vmem:[%s7994_s1 + $0x108] sm:$0xff] }
 0x686   :  { %v4847_v35 = vpop.eup %4846  ;;  %v3144_v47 = vmul.f32 %v4845_v27, %v3104_v13  ;;  %3150 = vst [vmem:[%s7996_s2 + $0x15] sm:$0x1] %v3142_v46  ;;  %v5167_v10 = vld [vmem:[%s7994_s1 + $0x130] sm:$0xff]  ;;  %v5169_v13 = vld [vmem:[%s7994_s1 + $0x118] sm:$0xff] }
 0x687   :  { %v4849_v60 = vpop.eup %4848  ;;  %v3145_v43 = vmul.f32 %v4847_v35, %v3105_v12  ;;  %3151 = vst [vmem:[%s7996_s2 + $0x1d] sm:$0x1] %v3143_v34  ;;  %v3181_v56 = vcombine.low %v3142_v46, %v3143_v34  ;;  %v3190_v63 = vrot.slane %v3180_v20, %v5682_v62  ;;  %v5170_v46 = vld [vmem:[%s7994_s1 + $0x100] sm:$0xff]  ;;  %v5171_v27 = vld [vmem:[%s7994_s1 + $0x110] sm:$0xff]  ;;  %v5172_v12 = vld [vmem:[%s7994_s1 + $0xe8] sm:$0xff] }
 0x688   :  { %v4851_v14 = vpop.eup %4850  ;;  %v3146_v59 = vmul.f32 %v4849_v60, %v3106_v49  ;;  %3152 = vst [vmem:[%s7996_s2 + $0x25] sm:$0x1] %v3144_v47  ;;  %v5173_v34 = vld [vmem:[%s7994_s1 + $0xf8] sm:$0xff]  ;;  %v5174_v20 = vld [vmem:[%s7994_s1 + $0xe0] sm:$0xff]  ;;  %v5175_v35 = vld [vmem:[%s7994_s1 + $0xf0] sm:$0xff] }
 0x689   :  { %v3147_v54 = vmul.f32 %v4851_v14, %v3107_v25  ;;  %3153 = vst [vmem:[%s7996_s2 + $0x2d] sm:$0x1] %v3145_v43  ;;  %v3182_v52 = vcombine.low %v3144_v47, %v3145_v43  ;;  %v3197_v55 = vrot.slane %v3181_v56, %v5682_v62  ;;  %v5176_v49 = vld [vmem:[%s7994_s1 + $0xc8] sm:$0xff]  ;;  %v5177_v47 = vld [vmem:[%s7994_s1 + $0xd8] sm:$0xff]  ;;  %v5178_v60 = vld [vmem:[%s7994_s1 + $0xc0] sm:$0xff] }
 0x68a   :  { %3154 = vst [vmem:[%s7996_s2 + $0x35] sm:$0x1] %v3146_v59  ;;  %v5179_v25 = vld [vmem:[%s7994_s1 + $0xd0] sm:$0xff]  ;;  %v5180_v43 = vld [vmem:[%s7994_s1 + $0xa8] sm:$0xff]  ;;  %v5181_v56 = vld [vmem:[%s7994_s1 + $0xb8] sm:$0xff] }
 0x68b   :  { %3155 = vst [vmem:[%s7996_s2 + $0x3d] sm:$0x1] %v3147_v54  ;;  %v3183_v21 = vcombine.low %v3146_v59, %v3147_v54  ;;  %v3212_v17 = vcombine.low %v3190_v63, %v3197_v55  ;;  %v3204_v16 = vrot.slane %v3182_v52, %v5682_v62  ;;  %v5182_v14 = vld [vmem:[%s7994_s1 + $0xa0] sm:$0xff]  ;;  %v5183_v59 = vld [vmem:[%s7994_s1 + $0xb0] sm:$0xff]  ;;  %v5184_v54 = vld [vmem:[%s7994_s1 + $0x88] sm:$0xff] }
 0x68c   :  { %v5185_v52 = vld [vmem:[%s7994_s1 + $0x98] sm:$0xff]  ;;  %v5186_v63 = vld [vmem:[%s7994_s1 + $0x80] sm:$0xff]  ;;  %v5187_v55 = vld [vmem:[%s7994_s1 + $0x90] sm:$0xff] }
 0x68d   :  { %v3211_v18 = vrot.slane %v3183_v21, %v5682_v62  ;;  %v3220_v48 = vrot.slane %v3212_v17, %v5682_v62  ;;  %v5188_v21 = vld [vmem:[%s7994_s1 + $0x68] sm:$0xff]  ;;  %v5189_v17 = vld [vmem:[%s7994_s1 + $0x78] sm:$0xff] }
 0x68f   :  { %v3213_v51 = vcombine.low %v3204_v16, %v3211_v18  ;;  %v5190_v16 = vld [vmem:[%s7994_s1 + $0x60] sm:$0xff]  ;;  %v5191_v18 = vld [vmem:[%s7994_s1 + $0x70] sm:$0xff] }
 0x691   :  { %v3227_v44 = vrot.slane %v3213_v51, %v5682_v62  ;;  %v5192_v51 = vld [vmem:[%s7994_s1 + $0x48] sm:$0xff] }
 0x693   :  { %v3228_v38 = vcombine.low %v3220_v48, %v3227_v44  ;;  %v5193_v48 = vld [vmem:[%s7994_s1 + $0x58] sm:$0xff]  ;;  %v5194_v44 = vld [vmem:[%s7994_s1 + $0x40] sm:$0xff] }
 0x695   :  { %3295 = vmatmul.mubr.f32.vlgmr.msra.gmra.mxu0 %v3228_v38  ;;  %3366 = vmatmul.mubr.f32.vlgmr.msra.gmra.mxu1 %v3228_v38  ;;  %v5195_v38 = vld [vmem:[%s7994_s1 + $0x50] sm:$0xff] }
 0x696   :  { %3743 = vmatpush1.msra.mxu0 %v5142_v58  ;;  %3814 = vmatpush1.msra.mxu1 %v5143_v28  ;;  %v5196_v58 = vld [vmem:[%s7994_s1 + $0x28] sm:$0xff]  ;;  %v5197_v28 = vld [vmem:[%s7994_s1 + $0x38] sm:$0xff] }
 0x697   :  { %3744 = vmatprep.subr.mxu0 %v5144_v22  ;;  %3815 = vmatprep.subr.mxu1 %v5145_v50  ;;  %v5198_v22 = vld [vmem:[%s7994_s1 + $0x20] sm:$0xff]  ;;  %v5199_v50 = vld [vmem:[%s7994_s1 + $0x30] sm:$0xff] }
 0x698   :  { %3745 = vmatpush1.msra.mxu0 %v5146_v40  ;;  %3816 = vmatpush1.msra.mxu1 %v5147_v23  ;;  %v5200_v40 = vld [vmem:[%s7994_s1 + $0x8] sm:$0xff]  ;;  %v5201_v23 = vld [vmem:[%s7994_s1 + $0x18] sm:$0xff] }
 0x699   :  { %3746 = vmatprep.subr.mxu0 %v5148_v15  ;;  %3817 = vmatprep.subr.mxu1 %v5149_v19  ;;  %v5202_v15 = vld [vmem:[%s7994_s1] sm:$0xff]  ;;  %v5203_v19 = vld [vmem:[%s7994_s1 + $0x10] sm:$0xff] }
 0x69a   :  { %3747 = vmatpush1.msra.mxu0 %v5150_v41  ;;  %3818 = vmatpush1.msra.mxu1 %v5151_v42 }
 0x69b   :  { %3748 = vmatprep.subr.mxu0 %v5152_v30  ;;  %3819 = vmatprep.subr.mxu1 %v5153_v26 }
 0x69c   :  { %3749 = vmatpush1.msra.mxu0 %v5154_v61  ;;  %3820 = vmatpush1.msra.mxu1 %v5155_v45 }
 0x69d   :  { %3750 = vmatprep.subr.mxu0 %v5156_v53  ;;  %3821 = vmatprep.subr.mxu1 %v5157_v3 }
 0x69e   :  { %3751 = vmatpush1.msra.mxu0 %v5158_v1  ;;  %3822 = vmatpush1.msra.mxu1 %v5159_v32 }
 0x69f   :  { %3752 = vmatprep.subr.mxu0 %v5160_v2  ;;  %3823 = vmatprep.subr.mxu1 %v5161_v4 }
 0x6a0   :  { %3753 = vmatpush1.msra.mxu0 %v5162_v5  ;;  %3824 = vmatpush1.msra.mxu1 %v5163_v6 }
 0x6a1   :  { %3754 = vmatprep.subr.mxu0 %v5164_v7  ;;  %3825 = vmatprep.subr.mxu1 %v5165_v8  ;;  %v4354_v8 = vld [vmem:[%s7995_s0 + $0x6] ss:$8 sm:$0xf] }
 0x6a2   :  { %3755 = vmatpush1.msra.mxu0 %v5166_v9  ;;  %3826 = vmatpush1.msra.mxu1 %v5167_v10  ;;  %v4355_v9 = vld [vmem:[%s7995_s0 + $0x26] ss:$8 sm:$0xf] }
 0x6a3   :  { %3756 = vmatprep.subr.mxu0 %v5168_v11  ;;  %3827 = vmatprep.subr.mxu1 %v5169_v13  ;;  %v4356_v10 = vld [vmem:[%s7995_s0 + $0x46] ss:$8 sm:$0xf] }
 0x6a4   :  { %3757 = vmatpush1.msra.mxu0 %v5170_v46  ;;  %3828 = vmatpush1.msra.mxu1 %v5171_v27  ;;  %v4358_v11 = vld [vmem:[%s7995_s0 + $0x86] ss:$8 sm:$0xf] }
 0x6a5   :  { %3758 = vmatprep.subr.mxu0 %v5172_v12  ;;  %3829 = vmatprep.subr.mxu1 %v5173_v34  ;;  %v4357_v34 = vld [vmem:[%s7995_s0 + $0x66] ss:$8 sm:$0xf] }
 0x6a6   :  { %3759 = vmatpush1.msra.mxu0 %v5174_v20  ;;  %3830 = vmatpush1.msra.mxu1 %v5175_v35  ;;  %v4359_v20 = vld [vmem:[%s7995_s0 + $0xa6] ss:$8 sm:$0xf] }
 0x6a7   :  { %3760 = vmatprep.subr.mxu0 %v5176_v49  ;;  %3831 = vmatprep.subr.mxu1 %v5177_v47  ;;  %v4360_v35 = vld [vmem:[%s7995_s0 + $0xc6] ss:$8 sm:$0xf] }
 0x6a8   :  { %3761 = vmatpush1.msra.mxu0 %v5178_v60  ;;  %3832 = vmatpush1.msra.mxu1 %v5179_v25 }
 0x6a9   :  { %3762 = vmatprep.subr.mxu0 %v5180_v43  ;;  %3833 = vmatprep.subr.mxu1 %v5181_v56  ;;  %v4361_v43 = vld [vmem:[%s7995_s0 + $0xe6] ss:$8 sm:$0xf] }
 0x6aa   :  { %3763 = vmatpush1.msra.mxu0 %v5182_v14  ;;  %3834 = vmatpush1.msra.mxu1 %v5183_v59 }
 0x6ab   :  { %3764 = vmatprep.subr.mxu0 %v5184_v54  ;;  %3835 = vmatprep.subr.mxu1 %v5185_v52 }
 0x6ac   :  { %3765 = vmatpush1.msra.mxu0 %v5186_v63  ;;  %3836 = vmatpush1.msra.mxu1 %v5187_v55 }
 0x6ad   :  { %3766 = vmatprep.subr.mxu0 %v5188_v21  ;;  %3837 = vmatprep.subr.mxu1 %v5189_v17 }
 0x6ae   :  { %3767 = vmatpush1.msra.mxu0 %v5190_v16  ;;  %3838 = vmatpush1.msra.mxu1 %v5191_v18 }
 0x6af   :  { %3768 = vmatprep.subr.mxu0 %v5192_v51  ;;  %3839 = vmatprep.subr.mxu1 %v5193_v48 }
 0x6b0   :  { %3769 = vmatpush1.msra.mxu0 %v5194_v44  ;;  %3840 = vmatpush1.msra.mxu1 %v5195_v38 }
 0x6b1   :  { %3770 = vmatprep.subr.mxu0 %v5196_v58  ;;  %3841 = vmatprep.subr.mxu1 %v5197_v28 }
 0x6b2   :  { %3771 = vmatpush1.msra.mxu0 %v5198_v22  ;;  %3842 = vmatpush1.msra.mxu1 %v5199_v50 }
 0x6b3   :  { %3772 = vmatprep.subr.mxu0 %v5200_v40  ;;  %3843 = vmatprep.subr.mxu1 %v5201_v23 }
 0x6b4   :  { %3773 = vmatpush1.msra.mxu0 %v5202_v15  ;;  %3806 = vmatprep.mubr.f32.mxu0 %v8404_v39 }
 0x6b5   :  { %3844 = vmatpush1.msra.mxu1 %v5203_v19  ;;  %3877 = vmatprep.mubr.f32.mxu1 %v8404_v39 }
 0x755   :  { %v3296_v41 = vpop.f32.mrf.mxu0  ;;  %v3367_v42 = vpop.f32.mrf.mxu1 }
 0x757   :  { %v3298_v30 = vpop.f32.mrf.mxu0  ;;  %v3369_v26 = vpop.f32.mrf.mxu1 }
 0x758   :  { %v3376_v61 = vcombine.low %v3296_v41, %v3298_v30  ;;  %v3377_v45 = vcombine.high %v3296_v41, %v3298_v30  ;;  %v3378_v53 = vcombine.low %v3367_v42, %v3369_v26  ;;  %v3379_v3 = vcombine.high %v3367_v42, %v3369_v26 }
 0x75a   :  { %v3386_v1 = vrot.slane %v3376_v61, %v5682_v62  ;;  %v3393_v32 = vrot.slane %v3377_v45, %v5682_v62  ;;  %v3400_v2 = vrot.slane %v3378_v53, %v5682_v62  ;;  %v3407_v4 = vrot.slane %v3379_v3, %v5682_v62 }
 0x75c   :  { %v3408_v5 = vcombine.low %v3386_v1, %v3400_v2  ;;  %v3409_v6 = vcombine.high %v3386_v1, %v3400_v2  ;;  %v3410_v7 = vcombine.low %v3393_v32, %v3407_v4  ;;  %v3411_v39 = vcombine.high %v3393_v32, %v3407_v4 }
 0x75e   :  { %v3418_v13 = vrot.slane %v3408_v5, %v5682_v62  ;;  %v3425_v46 = vrot.slane %v3410_v7, %v5682_v62  ;;  %v3432_v27 = vrot.slane %v3409_v6, %v5682_v62  ;;  %v3439_v12 = vrot.slane %v3411_v39, %v5682_v62 }
 0x760   :  { %v3440_v49 = vcombine.high %v3418_v13, %v3418_v13  ;;  %v3441_v47 = vcombine.high %v3425_v46, %v3425_v46  ;;  %v3442_v60 = vcombine.high %v3432_v27, %v3432_v27  ;;  %v3443_v25 = vcombine.high %v3439_v12, %v3439_v12 }
 0x761   :  { %v7763_v56 = vadd.f32 %v4354_v8, %v3418_v13  ;;  %v7765_v14 = vadd.f32 %v4355_v9, %v3432_v27  ;;  %v7767_v59 = vadd.f32 %v4358_v11, %v3425_v46  ;;  %v7773_v63 = vadd.f32 %v4359_v20, %v3439_v12 }
 0x762   :  { %v7769_v54 = vadd.f32 %v4356_v10, %v3440_v49  ;;  %v7771_v52 = vadd.f32 %v4357_v34, %v3442_v60  ;;  %v7775_v55 = vadd.f32 %v4360_v35, %v3441_v47  ;;  %v7779_v16 = vadd.f32 %v4361_v43, %v3443_v25 }
 0x763   :  { %v3460_v21 = vmul.f32 0.5, %v7763_v56  ;;  %v3461_v17 = vmul.f32 0.5, %v7765_v14  ;;  %v3464_v48 = vmul.f32 0.5, %v7767_v59  ;;  %v3500_v44 = vrot.slane %v7763_v56, 1 }
 0x764   :  { %v3462_v18 = vmul.f32 0.5, %v7769_v54  ;;  %v3463_v51 = vmul.f32 0.5, %v7771_v52  ;;  %v3465_v38 = vmul.f32 0.5, %v7773_v63  ;;  %v3501_v58 = vrot.slane %v7765_v14, 1 }
 0x765   :  { %4852 = vtanh.f32 %v3460_v21  ;;  %v3466_v28 = vmul.f32 0.5, %v7775_v55  ;;  %v3502_v22 = vrot.slane %v7769_v54, 1  ;;  %v3467_v50 = vmul.f32 0.5, %v7779_v16 }
 0x766   :  { %4854 = vtanh.f32 %v3461_v17  ;;  %v3503_v40 = vrot.slane %v7771_v52, 1  ;;  %v3504_v23 = vrot.slane %v7767_v59, 1  ;;  %v3516_v15 = vmul.f32 0.5, %v3500_v44 }
 0x767   :  { %4856 = vtanh.f32 %v3462_v18  ;;  %v3505_v19 = vrot.slane %v7773_v63, 1  ;;  %v3517_v41 = vmul.f32 0.5, %v3501_v58  ;;  %v3506_v42 = vrot.slane %v7775_v55, 1 }
 0x768   :  { %4858 = vtanh.f32 %v3463_v51  ;;  %v3518_v30 = vmul.f32 0.5, %v3502_v22  ;;  %v3507_v26 = vrot.slane %v7779_v16, 1  ;;  %v3519_v61 = vmul.f32 0.5, %v3503_v40 }
 0x769   :  { %4860 = vtanh.f32 %v3464_v48  ;;  %v3520_v45 = vmul.f32 0.5, %v3504_v23  ;;  %v3521_v53 = vmul.f32 0.5, %v3505_v19  ;;  %v3522_v3 = vmul.f32 0.5, %v3506_v42 }
 0x76a   :  { %4862 = vtanh.f32 %v3465_v38  ;;  %v3523_v1 = vmul.f32 0.5, %v3507_v26  ;;  %v3548_v32 = vrot.slane %v7763_v56, 2  ;;  %v3549_v2 = vrot.slane %v7765_v14, 2 }
 0x76b   :  { %4864 = vtanh.f32 %v3466_v28  ;;  %v3550_v4 = vrot.slane %v7769_v54, 2  ;;  %v3551_v6 = vrot.slane %v7771_v52, 2  ;;  %v3572_v7 = vrot.slane %v7763_v56, 3 }
 0x76c   :  { %4866 = vtanh.f32 %v3467_v50  ;;  %v3573_v39 = vrot.slane %v7765_v14, 3  ;;  %v3552_v9 = vrot.slane %v7767_v59, 2  ;;  %v3574_v10 = vrot.slane %v7769_v54, 3 }
 0x76d   :  { %4868 = vtanh.f32 %v3516_v15  ;;  %v3575_v11 = vrot.slane %v7771_v52, 3  ;;  %v3553_v46 = vrot.slane %v7773_v63, 2  ;;  %v3576_v27 = vrot.slane %v7767_v59, 3 }
 0x76e   :  { %4870 = vtanh.f32 %v3517_v41  ;;  %v3577_v12 = vrot.slane %v7773_v63, 3  ;;  %v3554_v20 = vrot.slane %v7775_v55, 2  ;;  %v3555_v35 = vrot.slane %v7779_v16, 2 }
 0x76f   :  { %4872 = vtanh.f32 %v3518_v30  ;;  %v3578_v49 = vrot.slane %v7775_v55, 3  ;;  %v3579_v60 = vrot.slane %v7779_v16, 3  ;;  %v3588_v25 = vmul.f32 0.5, %v3572_v7 }
 0x770   :  { %4874 = vtanh.f32 %v3519_v61  ;;  %v3589_v43 = vmul.f32 0.5, %v3573_v39  ;;  %v3590_v59 = vmul.f32 0.5, %v3574_v10  ;;  %v3591_v54 = vmul.f32 0.5, %v3575_v11 }
 0x771   :  { %4876 = vtanh.f32 %v3520_v45  ;;  %v3592_v21 = vmul.f32 0.5, %v3576_v27  ;;  %v3593_v17 = vmul.f32 0.5, %v3577_v12  ;;  %v3594_v55 = vmul.f32 0.5, %v3578_v49 }
 0x772   :  { %v4853_v5 = vpop.eup %4852  ;;  %4878 = vtanh.f32 %v3521_v53  ;;  %v3595_v58 = vmul.f32 0.5, %v3579_v60 }
 0x773   :  { %v4855_v8 = vpop.eup %4854  ;;  %4880 = vtanh.f32 %v3522_v3  ;;  %v3476_v14 = vadd.f32 1.0, %v4853_v5 }
 0x774   :  { %v4857_v13 = vpop.eup %4856  ;;  %4882 = vtanh.f32 %v3523_v1  ;;  %v3477_v63 = vadd.f32 1.0, %v4855_v8 }
 0x775   :  { %v4859_v34 = vpop.eup %4858  ;;  %4884 = vtanh.f32 %v3548_v32  ;;  %v3478_v51 = vadd.f32 1.0, %v4857_v13  ;;  %v3484_v50 = vmul.f32 0.5, %v3476_v14 }
 0x776   :  { %v4861_v47 = vpop.eup %4860  ;;  %4886 = vtanh.f32 %v3549_v2  ;;  %v3479_v48 = vadd.f32 1.0, %v4859_v34  ;;  %v3485_v19 = vmul.f32 0.5, %v3477_v63 }
 0x777   :  { %v4863_v56 = vpop.eup %4862  ;;  %4888 = vtanh.f32 %v3550_v4  ;;  %v3480_v38 = vadd.f32 1.0, %v4861_v47  ;;  %v3486_v30 = vmul.f32 0.5, %v3478_v51 }
 0x778   :  { %v4865_v52 = vpop.eup %4864  ;;  %4890 = vtanh.f32 %v3551_v6  ;;  %v3481_v16 = vadd.f32 1.0, %v4863_v56  ;;  %v3487_v26 = vmul.f32 0.5, %v3479_v48 }
 0x779   :  { %v4867_v18 = vpop.eup %4866  ;;  %4892 = vtanh.f32 %v3552_v9  ;;  %v3482_v22 = vadd.f32 1.0, %v4865_v52  ;;  %v3488_v3 = vmul.f32 0.5, %v3480_v38 }
 0x77a   :  { %v4869_v44 = vpop.eup %4868  ;;  %4894 = vtanh.f32 %v3553_v46  ;;  %v3483_v15 = vadd.f32 1.0, %v4867_v18  ;;  %v3489_v1 = vmul.f32 0.5, %v3481_v16 }
 0x77b   :  { %v4871_v28 = vpop.eup %4870  ;;  %v3532_v40 = vadd.f32 1.0, %v4869_v44  ;;  %4896 = vtanh.f32 %v3554_v20  ;;  %v3490_v5 = vmul.f32 0.5, %v3482_v22 }
 0x77c   :  { %v4873_v23 = vpop.eup %4872  ;;  %v3533_v41 = vadd.f32 1.0, %v4871_v28  ;;  %4898 = vtanh.f32 %v3555_v35  ;;  %v3491_v8 = vmul.f32 0.5, %v3483_v15 }
 0x77d   :  { %v4875_v42 = vpop.eup %4874  ;;  %v3534_v61 = vadd.f32 1.0, %v4873_v23  ;;  %v3540_v45 = vmul.f32 0.5, %v3532_v40  ;;  %4900 = vtanh.f32 %v3588_v25 }
 0x77e   :  { %v4877_v53 = vpop.eup %4876  ;;  %v3535_v32 = vadd.f32 1.0, %v4875_v42  ;;  %v3541_v2 = vmul.f32 0.5, %v3533_v41  ;;  %4902 = vtanh.f32 %v3589_v43 }
 0x77f   :  { %v4879_v4 = vpop.eup %4878  ;;  %v3536_v6 = vadd.f32 1.0, %v4877_v53  ;;  %v3542_v7 = vmul.f32 0.5, %v3534_v61  ;;  %4904 = vtanh.f32 %v3590_v59  ;;  %v3620_v27 = vmul.f32 %v3540_v45, %v7486_v37 }
 0x780   :  { %v4881_v39 = vpop.eup %4880  ;;  %v3537_v9 = vadd.f32 1.0, %v4879_v4  ;;  %v3543_v10 = vmul.f32 0.5, %v3535_v32  ;;  %4906 = vtanh.f32 %v3591_v54  ;;  %v3621_v35 = vmul.f32 %v3541_v2, %v7489_v57 }
 0x781   :  { %v4883_v11 = vpop.eup %4882  ;;  %v3538_v13 = vadd.f32 1.0, %v4881_v39  ;;  %v3544_v46 = vmul.f32 0.5, %v3536_v6  ;;  %4908 = vtanh.f32 %v3592_v21  ;;  %v3622_v60 = vmul.f32 %v3542_v7, %v7492_v0 }
 0x782   :  { %v4885_v12 = vpop.eup %4884  ;;  %v3539_v34 = vadd.f32 1.0, %v4883_v11  ;;  %v3545_v20 = vmul.f32 0.5, %v3537_v9  ;;  %4910 = vtanh.f32 %v3593_v17  ;;  %v3623_v14 = vmul.f32 %v3543_v10, %v7496_v24 }
 0x783   :  { %v4887_v49 = vpop.eup %4886  ;;  %v3546_v47 = vmul.f32 0.5, %v3538_v13  ;;  %v3628_v25 = vmul.f32 %v4885_v12, %v3484_v50  ;;  %4912 = vtanh.f32 %v3594_v55  ;;  %v3624_v37 = vmul.f32 %v3544_v46, %v7499_v31 }
 0x784   :  { %v4889_v56 = vpop.eup %4888  ;;  %v3547_v43 = vmul.f32 0.5, %v3539_v34  ;;  %v3629_v59 = vmul.f32 %v4887_v49, %v3485_v19  ;;  %4914 = vtanh.f32 %v3595_v58  ;;  %v3625_v21 = vmul.f32 %v3545_v20, %v7502_v33 }
 0x785   :  { %v4891_v52 = vpop.eup %4890  ;;  %v3630_v63 = vmul.f32 %v4889_v56, %v3486_v30  ;;  %v7816_v54 = vadd.f32 %v3628_v25, %v3620_v27  ;;  %v3626_v17 = vmul.f32 %v3546_v47, %v7505_v29 }
 0x786   :  { %v4893_v57 = vpop.eup %4892  ;;  %v3631_v18 = vmul.f32 %v4891_v52, %v3487_v26  ;;  %v7819_v0 = vadd.f32 %v3629_v59, %v3621_v35  ;;  %v3627_v31 = vmul.f32 %v3547_v43, %v7508_v36 }
 0x787   :  { %v4895_v51 = vpop.eup %4894  ;;  %v3632_v48 = vmul.f32 %v4893_v57, %v3488_v3  ;;  %v7822_v24 = vadd.f32 %v3630_v63, %v3622_v60  ;;  %4916 = vtanh.f32 %v7816_v54 }
 0x788   :  { %v4897_v55 = vpop.eup %4896  ;;  %v3633_v44 = vmul.f32 %v4895_v51, %v3489_v1  ;;  %v7826_v38 = vadd.f32 %v3631_v18, %v3623_v14  ;;  %4918 = vtanh.f32 %v7819_v0 }
 0x789   :  { %v4899_v33 = vpop.eup %4898  ;;  %v3634_v16 = vmul.f32 %v4897_v55, %v3490_v5  ;;  %v7829_v58 = vadd.f32 %v3632_v48, %v3624_v37  ;;  %4920 = vtanh.f32 %v7822_v24 }
 0x78a   :  { %v3635_v29 = vmul.f32 %v4899_v33, %v3491_v8  ;;  %v7832_v28 = vadd.f32 %v3633_v44, %v3625_v21  ;;  %4922 = vtanh.f32 %v7826_v38  ;;  %v4901_v36 = vpop.eup %4900 }
 0x78b   :  { %v7835_v22 = vadd.f32 %v3634_v16, %v3626_v17  ;;  %4924 = vtanh.f32 %v7829_v58  ;;  %v4903_v40 = vpop.eup %4902  ;;  %v3604_v19 = vadd.f32 1.0, %v4901_v36 }
 0x78c   :  { %v7838_v50 = vadd.f32 %v3635_v29, %v3627_v31  ;;  %4926 = vtanh.f32 %v7832_v28  ;;  %v4905_v23 = vpop.eup %4904  ;;  %v3605_v42 = vadd.f32 1.0, %v4903_v40 }
 0x78d   :  { %4928 = vtanh.f32 %v7835_v22  ;;  %v4907_v15 = vpop.eup %4906  ;;  %v3606_v26 = vadd.f32 1.0, %v4905_v23  ;;  %v3612_v1 = vmul.f32 0.5, %v3604_v19 }
 0x78e   :  { %4930 = vtanh.f32 %v7838_v50  ;;  %v4909_v41 = vpop.eup %4908  ;;  %v3607_v45 = vadd.f32 1.0, %v4907_v15  ;;  %v3613_v4 = vmul.f32 0.5, %v3605_v42 }
 0x78f   :  { %v4911_v30 = vpop.eup %4910  ;;  %v3608_v3 = vadd.f32 1.0, %v4909_v41  ;;  %v3614_v7 = vmul.f32 0.5, %v3606_v26 }
 0x790   :  { %v4913_v61 = vpop.eup %4912  ;;  %v3609_v2 = vadd.f32 1.0, %v4911_v30  ;;  %v3615_v10 = vmul.f32 0.5, %v3607_v45 }
 0x791   :  { %v4915_v53 = vpop.eup %4914  ;;  %v3610_v6 = vadd.f32 1.0, %v4913_v61  ;;  %v3616_v46 = vmul.f32 0.5, %v3608_v3 }
 0x792   :  { %v3611_v9 = vadd.f32 1.0, %v4915_v53  ;;  %v3617_v34 = vmul.f32 0.5, %v3609_v2  ;;  %v4363_v2 = vld [vmem:[%s7995_s0 + $0x27] ss:$8 sm:$0xf] }
 0x793   :  { %v3618_v47 = vmul.f32 0.5, %v3610_v6 }
 0x794   :  { %v4917_v32 = vpop.eup %4916  ;;  %v3619_v56 = vmul.f32 0.5, %v3611_v9  ;;  %v4365_v9 = vld [vmem:[%s7995_s0 + $0x67] ss:$8 sm:$0xf] }
 0x795   :  { %v4919_v5 = vpop.eup %4918  ;;  %v3652_v39 = vmul.f32 %v4917_v32, %v3612_v1  ;;  %v4362_v32 = vld [vmem:[%s7995_s0 + $0x7] ss:$8 sm:$0xf] }
 0x796   :  { %v4921_v8 = vpop.eup %4920  ;;  %v3653_v11 = vmul.f32 %v4919_v5, %v3613_v4  ;;  %v4364_v4 = vld [vmem:[%s7995_s0 + $0x47] ss:$8 sm:$0xf] }
 0x797   :  { %v4923_v13 = vpop.eup %4922  ;;  %v3654_v27 = vmul.f32 %v4921_v8, %v3614_v7  ;;  %3660 = vst [vmem:[%s7996_s2 + $0x6] sm:$0x1] %v3652_v39  ;;  %v4366_v5 = vld [vmem:[%s7995_s0 + $0x87] ss:$8 sm:$0xf] }
 0x798   :  { %v4925_v12 = vpop.eup %4924  ;;  %v3655_v20 = vmul.f32 %v4923_v13, %v3615_v10  ;;  %3661 = vst [vmem:[%s7996_s2 + $0xe] sm:$0x1] %v3653_v11  ;;  %v3692_v35 = vcombine.low %v3652_v39, %v3653_v11  ;;  %v4367_v10 = vld [vmem:[%s7995_s0 + $0xa7] ss:$8 sm:$0xf] }
 0x799   :  { %v4927_v49 = vpop.eup %4926  ;;  %v3656_v60 = vmul.f32 %v4925_v12, %v3616_v46  ;;  %3662 = vst [vmem:[%s7996_s2 + $0x16] sm:$0x1] %v3654_v27  ;;  %v4368_v11 = vld [vmem:[%s7995_s0 + $0xc7] ss:$8 sm:$0xf] }
 0x79a   :  { %v4929_v25 = vpop.eup %4928  ;;  %v3657_v43 = vmul.f32 %v4927_v49, %v3617_v34  ;;  %3663 = vst [vmem:[%s7996_s2 + $0x1e] sm:$0x1] %v3655_v20  ;;  %v3693_v14 = vcombine.low %v3654_v27, %v3655_v20  ;;  %v3702_v57 = vrot.slane %v3692_v35, %v5682_v62  ;;  %v4369_v34 = vld [vmem:[%s7995_s0 + $0xe7] ss:$8 sm:$0xf] }
 0x79b   :  { %v4931_v59 = vpop.eup %4930  ;;  %v3658_v52 = vmul.f32 %v4929_v25, %v3618_v47  ;;  %3664 = vst [vmem:[%s7996_s2 + $0x26] sm:$0x1] %v3656_v60 }
 0x79c   :  { %v3659_v37 = vmul.f32 %v4931_v59, %v3619_v56  ;;  %3665 = vst [vmem:[%s7996_s2 + $0x2e] sm:$0x1] %v3657_v43  ;;  %v3694_v63 = vcombine.low %v3656_v60, %v3657_v43  ;;  %v3709_v21 = vrot.slane %v3693_v14, %v5682_v62 }
 0x79d   :  { %3666 = vst [vmem:[%s7996_s2 + $0x36] sm:$0x1] %v3658_v52 }
 0x79e   :  { %3667 = vst [vmem:[%s7996_s2 + $0x3e] sm:$0x1] %v3659_v37  ;;  %v3695_v18 = vcombine.low %v3658_v52, %v3659_v37  ;;  %v3724_v51 = vcombine.low %v3702_v57, %v3709_v21  ;;  %v3716_v17 = vrot.slane %v3694_v63, %v5682_v62 }
 0x7a0   :  { %v3723_v48 = vrot.slane %v3695_v18, %v5682_v62  ;;  %v3732_v31 = vrot.slane %v3724_v51, %v5682_v62 }
 0x7a2   :  { %v3725_v55 = vcombine.low %v3716_v17, %v3723_v48 }
 0x7a4   :  { %v3739_v44 = vrot.slane %v3725_v55, %v5682_v62 }
 0x7a6   :  { %v3740_v33 = vcombine.low %v3732_v31, %v3739_v44 }
 0x7a8   :  { %3807 = vmatmul.mubr.f32.vlgmr.msra.gmra.mxu0 %v3740_v33  ;;  %3878 = vmatmul.mubr.f32.vlgmr.msra.gmra.mxu1 %v3740_v33 }
 0x868   :  { %v3808_v16 = vpop.f32.mrf.mxu0  ;;  %v3879_v29 = vpop.f32.mrf.mxu1 }
 0x86a   :  { %v3810_v36 = vpop.f32.mrf.mxu0  ;;  %v3881_v40 = vpop.f32.mrf.mxu1 }
 0x86b   :  { %v3888_v23 = vcombine.low %v3808_v16, %v3810_v36  ;;  %v3889_v15 = vcombine.high %v3808_v16, %v3810_v36  ;;  %v3890_v19 = vcombine.low %v3879_v29, %v3881_v40  ;;  %v3891_v41 = vcombine.high %v3879_v29, %v3881_v40 }
 0x86d   :  { %v3898_v42 = vrot.slane %v3888_v23, %v5682_v62  ;;  %v3905_v30 = vrot.slane %v3889_v15, %v5682_v62  ;;  %v3912_v26 = vrot.slane %v3890_v19, %v5682_v62  ;;  %v3919_v61 = vrot.slane %v3891_v41, %v5682_v62 }
 0x86f   :  { %v3920_v45 = vcombine.low %v3898_v42, %v3912_v26  ;;  %v3921_v53 = vcombine.high %v3898_v42, %v3912_v26  ;;  %v3922_v3 = vcombine.low %v3905_v30, %v3919_v61  ;;  %v3923_v1 = vcombine.high %v3905_v30, %v3919_v61 }
 0x871   :  { %v3930_v6 = vrot.slane %v3920_v45, %v5682_v62  ;;  %v3937_v7 = vrot.slane %v3922_v3, %v5682_v62  ;;  %v3944_v39 = vrot.slane %v3921_v53, %v5682_v62  ;;  %v3951_v8 = vrot.slane %v3923_v1, %v5682_v62 }
 0x873   :  { %v3952_v13 = vcombine.high %v3930_v6, %v3930_v6  ;;  %v3953_v46 = vcombine.high %v3937_v7, %v3937_v7  ;;  %v3954_v27 = vcombine.high %v3944_v39, %v3944_v39  ;;  %v3955_v12 = vcombine.high %v3951_v8, %v3951_v8 }
 0x874   :  { %v7905_v20 = vadd.f32 %v4362_v32, %v3930_v6  ;;  %v7907_v35 = vadd.f32 %v4363_v2, %v3944_v39  ;;  %v7909_v49 = vadd.f32 %v4366_v5, %v3937_v7  ;;  %v7915_v25 = vadd.f32 %v4367_v10, %v3951_v8 }
 0x875   :  { %v7911_v47 = vadd.f32 %v4364_v4, %v3952_v13  ;;  %v7913_v60 = vadd.f32 %v4365_v9, %v3954_v27  ;;  %v7917_v56 = vadd.f32 %v4368_v11, %v3953_v46  ;;  %v7921_v59 = vadd.f32 %v4369_v34, %v3955_v12 }
 0x876   :  { %v3972_v43 = vmul.f32 0.5, %v7905_v20  ;;  %v3973_v14 = vmul.f32 0.5, %v7907_v35  ;;  %v3976_v63 = vmul.f32 0.5, %v7909_v49  ;;  %v4012_v57 = vrot.slane %v7905_v20, 1 }
 0x877   :  { %v3974_v52 = vmul.f32 0.5, %v7911_v47  ;;  %v3975_v37 = vmul.f32 0.5, %v7913_v60  ;;  %v3977_v21 = vmul.f32 0.5, %v7915_v25  ;;  %v4013_v18 = vrot.slane %v7907_v35, 1 }
 0x878   :  { %4932 = vtanh.f32 %v3972_v43  ;;  %v3978_v51 = vmul.f32 0.5, %v7917_v56  ;;  %v4014_v17 = vrot.slane %v7911_v47, 1  ;;  %v3979_v48 = vmul.f32 0.5, %v7921_v59 }
 0x879   :  { %4934 = vtanh.f32 %v3973_v14  ;;  %v4015_v55 = vrot.slane %v7913_v60, 1  ;;  %v4016_v31 = vrot.slane %v7909_v49, 1  ;;  %v4028_v44 = vmul.f32 0.5, %v4012_v57 }
 0x87a   :  { %4936 = vtanh.f32 %v3974_v52  ;;  %v4017_v33 = vrot.slane %v7915_v25, 1  ;;  %v4029_v16 = vmul.f32 0.5, %v4013_v18  ;;  %v4018_v29 = vrot.slane %v7917_v56, 1 }
 0x87b   :  { %4938 = vtanh.f32 %v3975_v37  ;;  %v4030_v36 = vmul.f32 0.5, %v4014_v17  ;;  %v4019_v40 = vrot.slane %v7921_v59, 1  ;;  %v4031_v23 = vmul.f32 0.5, %v4015_v55 }
 0x87c   :  { %4940 = vtanh.f32 %v3976_v63  ;;  %v4032_v15 = vmul.f32 0.5, %v4016_v31  ;;  %v4033_v19 = vmul.f32 0.5, %v4017_v33  ;;  %v4034_v41 = vmul.f32 0.5, %v4018_v29 }
 0x87d   :  { %4942 = vtanh.f32 %v3977_v21  ;;  %v4035_v42 = vmul.f32 0.5, %v4019_v40  ;;  %v4060_v30 = vrot.slane %v7905_v20, 2  ;;  %v4061_v26 = vrot.slane %v7907_v35, 2 }
 0x87e   :  { %4944 = vtanh.f32 %v3978_v51  ;;  %v4062_v61 = vrot.slane %v7911_v47, 2  ;;  %v4063_v53 = vrot.slane %v7913_v60, 2  ;;  %v4084_v3 = vrot.slane %v7905_v20, 3 }
 0x87f   :  { %4946 = vtanh.f32 %v3979_v48  ;;  %v4085_v1 = vrot.slane %v7907_v35, 3  ;;  %v4064_v2 = vrot.slane %v7909_v49, 2  ;;  %v4086_v4 = vrot.slane %v7911_v47, 3 }
 0x880   :  { %4948 = vtanh.f32 %v4028_v44  ;;  %v4087_v5 = vrot.slane %v7913_v60, 3  ;;  %v4065_v7 = vrot.slane %v7915_v25, 2  ;;  %v4088_v39 = vrot.slane %v7909_v49, 3 }
 0x881   :  { %4950 = vtanh.f32 %v4029_v16  ;;  %v4089_v8 = vrot.slane %v7915_v25, 3  ;;  %v4066_v10 = vrot.slane %v7917_v56, 2  ;;  %v4067_v11 = vrot.slane %v7921_v59, 2 }
 0x882   :  { %4952 = vtanh.f32 %v4030_v36  ;;  %v4090_v13 = vrot.slane %v7917_v56, 3  ;;  %v4091_v27 = vrot.slane %v7921_v59, 3  ;;  %v4100_v12 = vmul.f32 0.5, %v4084_v3 }
 0x883   :  { %4954 = vtanh.f32 %v4031_v23  ;;  %v4101_v34 = vmul.f32 0.5, %v4085_v1  ;;  %v4102_v49 = vmul.f32 0.5, %v4086_v4  ;;  %v4103_v47 = vmul.f32 0.5, %v4087_v5 }
 0x884   :  { %4956 = vtanh.f32 %v4032_v15  ;;  %v4104_v43 = vmul.f32 0.5, %v4088_v39  ;;  %v4105_v14 = vmul.f32 0.5, %v4089_v8  ;;  %v4106_v56 = vmul.f32 0.5, %v4090_v13 }
 0x885   :  { %v4933_v45 = vpop.eup %4932  ;;  %4958 = vtanh.f32 %v4033_v19  ;;  %v4107_v18 = vmul.f32 0.5, %v4091_v27 }
 0x886   :  { %v4935_v32 = vpop.eup %4934  ;;  %4960 = vtanh.f32 %v4034_v41  ;;  %v3988_v35 = vadd.f32 1.0, %v4933_v45 }
 0x887   :  { %v4937_v6 = vpop.eup %4936  ;;  %4962 = vtanh.f32 %v4035_v42  ;;  %v3989_v25 = vadd.f32 1.0, %v4935_v32 }
 0x888   :  { %v4939_v9 = vpop.eup %4938  ;;  %4964 = vtanh.f32 %v4060_v30  ;;  %v3990_v37 = vadd.f32 1.0, %v4937_v6  ;;  %v3996_v48 = vmul.f32 0.5, %v3988_v35 }
 0x889   :  { %v4941_v46 = vpop.eup %4940  ;;  %4966 = vtanh.f32 %v4061_v26  ;;  %v3991_v63 = vadd.f32 1.0, %v4939_v9  ;;  %v3997_v33 = vmul.f32 0.5, %v3989_v25 }
 0x88a   :  { %v4943_v20 = vpop.eup %4942  ;;  %4968 = vtanh.f32 %v4062_v61  ;;  %v3992_v21 = vadd.f32 1.0, %v4941_v46  ;;  %v3998_v36 = vmul.f32 0.5, %v3990_v37 }
 0x88b   :  { %v4945_v60 = vpop.eup %4944  ;;  %4970 = vtanh.f32 %v4063_v53  ;;  %v3993_v59 = vadd.f32 1.0, %v4943_v20  ;;  %v3999_v40 = vmul.f32 0.5, %v3991_v63 }
 0x88c   :  { %v4947_v52 = vpop.eup %4946  ;;  %4972 = vtanh.f32 %v4064_v2  ;;  %v3994_v17 = vadd.f32 1.0, %v4945_v60  ;;  %v4000_v41 = vmul.f32 0.5, %v3992_v21 }
 0x88d   :  { %v4949_v57 = vpop.eup %4948  ;;  %4974 = vtanh.f32 %v4065_v7  ;;  %v3995_v44 = vadd.f32 1.0, %v4947_v52  ;;  %v4001_v42 = vmul.f32 0.5, %v3993_v59 }
 0x88e   :  { %v4951_v51 = vpop.eup %4950  ;;  %v4044_v55 = vadd.f32 1.0, %v4949_v57  ;;  %4976 = vtanh.f32 %v4066_v10  ;;  %v4002_v45 = vmul.f32 0.5, %v3994_v17 }
 0x88f   :  { %v4953_v31 = vpop.eup %4952  ;;  %v4045_v16 = vadd.f32 1.0, %v4951_v51  ;;  %4978 = vtanh.f32 %v4067_v11  ;;  %v4003_v32 = vmul.f32 0.5, %v3995_v44 }
 0x890   :  { %v4955_v29 = vpop.eup %4954  ;;  %v4046_v23 = vadd.f32 1.0, %v4953_v31  ;;  %v4052_v15 = vmul.f32 0.5, %v4044_v55  ;;  %4980 = vtanh.f32 %v4100_v12 }
 0x891   :  { %v4957_v19 = vpop.eup %4956  ;;  %v4047_v30 = vadd.f32 1.0, %v4955_v29  ;;  %v4053_v26 = vmul.f32 0.5, %v4045_v16  ;;  %4982 = vtanh.f32 %v4101_v34 }
 0x892   :  { %v4959_v61 = vpop.eup %4958  ;;  %v4048_v53 = vadd.f32 1.0, %v4957_v19  ;;  %v4054_v3 = vmul.f32 0.5, %v4046_v23  ;;  %4984 = vtanh.f32 %v4102_v49  ;;  %v4132_v39 = vmul.f32 %v4052_v15, %v7816_v54 }
 0x893   :  { %v4961_v1 = vpop.eup %4960  ;;  %v4049_v2 = vadd.f32 1.0, %v4959_v61  ;;  %v4055_v4 = vmul.f32 0.5, %v4047_v30  ;;  %4986 = vtanh.f32 %v4103_v47  ;;  %v4133_v11 = vmul.f32 %v4053_v26, %v7819_v0 }
 0x894   :  { %v4963_v5 = vpop.eup %4962  ;;  %v4050_v6 = vadd.f32 1.0, %v4961_v1  ;;  %v4056_v7 = vmul.f32 0.5, %v4048_v53  ;;  %4988 = vtanh.f32 %v4104_v43  ;;  %v4134_v27 = vmul.f32 %v4054_v3, %v7822_v24 }
 0x895   :  { %v4965_v8 = vpop.eup %4964  ;;  %v4051_v9 = vadd.f32 1.0, %v4963_v5  ;;  %v4057_v10 = vmul.f32 0.5, %v4049_v2  ;;  %4990 = vtanh.f32 %v4105_v14  ;;  %v4135_v35 = vmul.f32 %v4055_v4, %v7826_v38 }
 0x896   :  { %v4967_v13 = vpop.eup %4966  ;;  %v4058_v46 = vmul.f32 0.5, %v4050_v6  ;;  %v4140_v12 = vmul.f32 %v4965_v8, %v3996_v48  ;;  %4992 = vtanh.f32 %v4106_v56  ;;  %v4136_v54 = vmul.f32 %v4056_v7, %v7829_v58 }
 0x897   :  { %v4969_v20 = vpop.eup %4968  ;;  %v4059_v34 = vmul.f32 0.5, %v4051_v9  ;;  %v4141_v49 = vmul.f32 %v4967_v13, %v3997_v33  ;;  %4994 = vtanh.f32 %v4107_v18  ;;  %v4137_v0 = vmul.f32 %v4057_v10, %v7832_v28 }
 0x898   :  { %v4971_v60 = vpop.eup %4970  ;;  %v4142_v25 = vmul.f32 %v4969_v20, %v3998_v36  ;;  %v4148_v47 = vadd.f32 %v4140_v12, %v4132_v39  ;;  %v4138_v63 = vmul.f32 %v4058_v46, %v7835_v22 }
 0x899   :  { %v4973_v52 = vpop.eup %4972  ;;  %v4143_v43 = vmul.f32 %v4971_v60, %v3999_v40  ;;  %v4149_v37 = vadd.f32 %v4141_v49, %v4133_v11  ;;  %v4139_v21 = vmul.f32 %v4059_v34, %v7838_v50 }
 0x89a   :  { %v4975_v24 = vpop.eup %4974  ;;  %v4144_v57 = vmul.f32 %v4973_v52, %v4000_v41  ;;  %v4150_v14 = vadd.f32 %v4142_v25, %v4134_v27  ;;  %4996 = vtanh.f32 %v4148_v47 }
 0x89b   :  { %v4977_v38 = vpop.eup %4976  ;;  %v4145_v56 = vmul.f32 %v4975_v24, %v4001_v42  ;;  %v4151_v59 = vadd.f32 %v4143_v43, %v4135_v35  ;;  %4998 = vtanh.f32 %v4149_v37  ;;  %v4247_v18 = vcombine.low %v4148_v47, %v4149_v37 }
 0x89c   :  { %v4979_v58 = vpop.eup %4978  ;;  %v4146_v51 = vmul.f32 %v4977_v38, %v4002_v45  ;;  %v4152_v17 = vadd.f32 %v4144_v57, %v4136_v54  ;;  %5000 = vtanh.f32 %v4150_v14 }
 0x89d   :  { %v4147_v28 = vmul.f32 %v4979_v58, %v4003_v32  ;;  %v4153_v48 = vadd.f32 %v4145_v56, %v4137_v0  ;;  %5002 = vtanh.f32 %v4151_v59  ;;  %v4248_v55 = vcombine.low %v4150_v14, %v4151_v59  ;;  %v4981_v22 = vpop.eup %4980 }
 0x89e   :  { %v4154_v31 = vadd.f32 %v4146_v51, %v4138_v63  ;;  %5004 = vtanh.f32 %v4152_v17  ;;  %v4983_v16 = vpop.eup %4982  ;;  %v4257_v50 = vrot.slane %v4247_v18, %v5682_v62  ;;  %v4116_v15 = vadd.f32 1.0, %v4981_v22 }
 0x89f   :  { %v4155_v44 = vadd.f32 %v4147_v28, %v4139_v21  ;;  %5006 = vtanh.f32 %v4153_v48  ;;  %v4249_v33 = vcombine.low %v4152_v17, %v4153_v48  ;;  %v4264_v29 = vrot.slane %v4248_v55, %v5682_v62  ;;  %v4985_v36 = vpop.eup %4984 }
 0x8a0   :  { %5008 = vtanh.f32 %v4154_v31  ;;  %v4987_v23 = vpop.eup %4986  ;;  %v4117_v42 = vadd.f32 1.0, %v4983_v16  ;;  %v4118_v45 = vadd.f32 1.0, %v4985_v36  ;;  %v4124_v5 = vmul.f32 0.5, %v4116_v15 }
 0x8a1   :  { %5010 = vtanh.f32 %v4155_v44  ;;  %v4250_v40 = vcombine.low %v4154_v31, %v4155_v44  ;;  %v4279_v19 = vcombine.low %v4257_v50, %v4264_v29  ;;  %v4989_v41 = vpop.eup %4988  ;;  %v4271_v30 = vrot.slane %v4249_v33, %v5682_v62 }
 0x8a2   :  { %v4991_v61 = vpop.eup %4990  ;;  %v4119_v3 = vadd.f32 1.0, %v4987_v23  ;;  %v4120_v4 = vadd.f32 1.0, %v4989_v41  ;;  %v4125_v39 = vmul.f32 0.5, %v4117_v42  ;;  %v4126_v11 = vmul.f32 0.5, %v4118_v45 }
 0x8a3   :  { %v4278_v26 = vrot.slane %v4250_v40, %v5682_v62  ;;  %v4993_v53 = vpop.eup %4992  ;;  %v4287_v32 = vrot.slane %v4279_v19, %v5682_v62  ;;  %v4121_v7 = vadd.f32 1.0, %v4991_v61 }
 0x8a4   :  { %v4995_v2 = vpop.eup %4994  ;;  %v4122_v10 = vadd.f32 1.0, %v4993_v53  ;;  %v4127_v12 = vmul.f32 0.5, %v4119_v3  ;;  %v4128_v49 = vmul.f32 0.5, %v4120_v4 }
 0x8a5   :  { %v4280_v1 = vcombine.low %v4271_v30, %v4278_v26  ;;  %v4123_v27 = vadd.f32 1.0, %v4995_v2  ;;  %v4129_v25 = vmul.f32 0.5, %v4121_v7 }
 0x8a6   :  { %v4130_v52 = vmul.f32 0.5, %v4122_v10 }
 0x8a7   :  { %v4997_v6 = vpop.eup %4996  ;;  %v4294_v8 = vrot.slane %v4280_v1, %v5682_v62  ;;  %v4131_v37 = vmul.f32 0.5, %v4123_v27 }
 0x8a8   :  { %v4999_v9 = vpop.eup %4998  ;;  %v4164_v13 = vmul.f32 %v4997_v6, %v4124_v5 }
 0x8a9   :  { %v5001_v46 = vpop.eup %5000  ;;  %v4165_v20 = vmul.f32 %v4999_v9, %v4125_v39  ;;  %v4295_v34 = vcombine.low %v4287_v32, %v4294_v8 }
 0x8aa   :  { %v5003_v35 = vpop.eup %5002  ;;  %v4166_v60 = vmul.f32 %v5001_v46, %v4126_v11  ;;  %4172 = vst [vmem:[%s7996_s2 + $0x7] sm:$0x1] %v4164_v13 }
 0x8ab   :  { %v5005_v54 = vpop.eup %5004  ;;  %v4167_v47 = vmul.f32 %v5003_v35, %v4127_v12  ;;  %4173 = vst [vmem:[%s7996_s2 + $0xf] sm:$0x1] %v4165_v20  ;;  %4298 = vst [vmem:[%s7997_s3] sm:$0xff] %v4295_v34 }
 0x8ac   :  { %v5007_v62 = vpop.eup %5006  ;;  %v4168_v0 = vmul.f32 %v5005_v54, %v4128_v49  ;;  %4174 = vst [vmem:[%s7996_s2 + $0x17] sm:$0x1] %v4166_v60 }
 0x8ad   :  { %v5009_v43 = vpop.eup %5008  ;;  %v4169_v24 = vmul.f32 %v5007_v62, %v4129_v25  ;;  %4175 = vst [vmem:[%s7996_s2 + $0x1f] sm:$0x1] %v4167_v47 }
 0x8ae   :  { %v5011_v63 = vpop.eup %5010  ;;  %v4170_v57 = vmul.f32 %v5009_v43, %v4130_v52  ;;  %4176 = vst [vmem:[%s7996_s2 + $0x27] sm:$0x1] %v4168_v0 }
 0x8af   :  { %v4171_v14 = vmul.f32 %v5011_v63, %v4131_v37  ;;  %4177 = vst [vmem:[%s7996_s2 + $0x2f] sm:$0x1] %v4169_v24 }
 0x8b0   :  { %4178 = vst [vmem:[%s7996_s2 + $0x37] sm:$0x1] %v4170_v57 }
 0x8b1   :  { %4179 = vst [vmem:[%s7996_s2 + $0x3f] sm:$0x1] %v4171_v14 }

</bundles_post_ra>
